<compile_context>
chip_gen: v6e
topology: v6e:2x2x1
jax: 0.10.0
libtpu: 0.0.40
codegen_flags: <defaults>
</compile_context>

<pallas_src>
import functools

import jax
import jax.numpy as jnp
from jax import lax
from jax.experimental import pallas as pl
from jax.experimental.pallas import tpu as pltpu


# -----------------------------------------------------------------------------
# Pallas kernel: one (batch, H-tile) step of the fused residual block
# -----------------------------------------------------------------------------
def _sn_resblock_kernel(x_hbm, w1_ref, b1_ref, w2_ref, b2_ref, o_ref,
                        xbuf, sem, h_pad_ref, *,
                        tile_h, width, col0, c_pad, compute_dtype):
    # x_hbm:     (N, H+4, Wp, Cp)   cdt  padded x, left in HBM (pl.ANY)
    # w*_ref:    (3, 3*Cp, Cp)      cdt  per-dw weight blocks, K ordered (dh, cin)
    # b*_ref:    (1, Cp)            f32
    # o_ref:     (1, TH, W, Cp)     f32
    # xbuf:      (2, TH+4, Wp, Cp)  cdt  double-buffered x halo window
    # sem:       DMA semaphores (2,)
    # h_pad_ref: (TH+2, Wp, Cp)     cdt  conv1 output with halo for conv2
    TH, W, CL, Cp = tile_h, width, col0, c_pad
    n = pl.program_id(0)
    j = pl.program_id(1)
    n_h = pl.num_programs(1)
    slot = j & 1

    def start_fetch(j_src, slot_dst):
        pltpu.make_async_copy(
            x_hbm.at[n, pl.ds(j_src * TH, TH + 4)],
            xbuf.at[slot_dst], sem.at[slot_dst]).start()

    # Prime the pipeline at the first H-tile of every batch row, prefetch the next window,
    # then wait for the current one.
    @pl.when(j == 0)
    def _():
        start_fetch(j, slot)

    @pl.when(j + 1 < n_h)
    def _():
        start_fetch(j + 1, 1 - slot)

    pltpu.make_async_copy(
        x_hbm.at[0, pl.ds(0, TH + 4)], xbuf.at[slot], sem.at[slot]).wait()

    xw = xbuf[slot]                                       # (TH+4, Wp, Cp) compute dtype

    # ---- conv1: h rows [0, TH+2) (1-row halo each side, needed by conv2) ----
    m1 = (TH + 2) * W
    acc = jnp.zeros((m1, Cp), jnp.float32)
    for dw in range(3):
        xs = xw[:, CL - 1 + dw: CL - 1 + dw + W, :]       # one sublane realign per dw
        slab = jnp.concatenate(
            [xs[dh:dh + TH + 2].reshape(m1, Cp) for dh in range(3)], axis=-1)
        acc = acc + jnp.dot(slab, w1_ref[dw], preferred_element_type=jnp.float32)
    h = acc + b1_ref[...]
    h = jnp.where(h >= 0, h, 0.05 * h)                    # LeakyReLU(0.05) in f32
    h_pad_ref[:, CL:CL + W, :] = h.reshape(TH + 2, W, Cp).astype(compute_dtype)

    # conv2's zero padding of h: only the two halo columns conv2 reads, rewritten every step.
    zc = jnp.zeros((TH + 2, 1, Cp), compute_dtype)
    h_pad_ref[:, CL - 1:CL, :] = zc
    h_pad_ref[:, CL + W:CL + W + 1, :] = zc
    # Top/bottom halo rows are zero only at the image boundary.
    zr = jnp.zeros((1, W + 2, Cp), compute_dtype)

    @pl.when(j == 0)
    def _():
        h_pad_ref[0:1, CL - 1:CL + W + 1, :] = zr

    @pl.when(j == n_h - 1)
    def _():
        h_pad_ref[TH + 1:TH + 2, CL - 1:CL + W + 1, :] = zr

    # ---- conv2 + residual add ----
    m2 = TH * W
    acc = jnp.zeros((m2, Cp), jnp.float32)
    for dw in range(3):
        hs = h_pad_ref[:, CL - 1 + dw: CL - 1 + dw + W, :]    # (TH+2, W, Cp)
        slab = jnp.concatenate(
            [hs[dh:dh + TH].reshape(m2, Cp) for dh in range(3)], axis=-1)
        acc = acc + jnp.dot(slab, w2_ref[dw], preferred_element_type=jnp.float32)
    y = acc + b2_ref[...]
    x_in = xw[2:TH + 2, CL:CL + W, :].astype(jnp.float32)     # TH x W interior only
    o_ref[0] = (x_in + y.reshape(TH, W, Cp)).astype(o_ref.dtype)


# -----------------------------------------------------------------------------
# Wrapper helpers
# -----------------------------------------------------------------------------
def _vmem_capacity_bytes():
    try:
        return int(pltpu.get_tpu_info().vmem_capacity_bytes)
    except Exception:
        return 64 * 1024 * 1024        # conservative (v7x per-core VMEM)


def _round_up(v, m):
    return ((v + m - 1) // m) * m


def _estimate_vmem(tile_h, w, wp, cp, cbytes):
    f32 = 4
    xbuf = 2 * (tile_h + 4) * wp * cp * cbytes              # double-buffered x window
    hpad = (tile_h + 2) * wp * cp * cbytes                  # h scratch
    outb = 2 * tile_h * w * cp * f32                        # double-buffered output block
    wts = 2 * (2 * 9 * cp * cp * cbytes + 2 * cp * f32)     # weights + biases (x2 buffers)
    m1 = (tile_h + 2) * w
    slabs = 2 * m1 * 3 * cp * cbytes + 2 * m1 * cp * f32    # live im2col slabs + f32 acc
    return xbuf + hpad + outb + wts + slabs


def _pick_tile_h(h, w, wp, cp, cbytes, budget):
    best = 1
    for th in range(1, h + 1):
        if h % th == 0 and _estimate_vmem(th, w, wp, cp, cbytes) <= budget:
            best = th
    return best


def _prep_conv(w_oihw, b, c_pad, compute_dtype):
    """(Cout, Cin, 3, 3) -> (3[dw], 3*c_pad[dh,cin], c_pad[cout]) packed weight blocks."""
    cout, cin, kh, kw = w_oihw.shape
    w_hwio = jnp.transpose(w_oihw, (2, 3, 1, 0))                    # (3, 3, Cin, Cout)
    w_full = jnp.zeros((kh, kw, c_pad, c_pad), jnp.float32)
    w_full = w_full.at[:, :, :cin, :cout].set(w_hwio)
    w_mat = jnp.transpose(w_full, (1, 0, 2, 3)).reshape(kw, kh * c_pad, c_pad)
    b_pad = jnp.zeros((1, c_pad), jnp.float32).at[0, :cout].set(b.astype(jnp.float32))
    return w_mat.astype(compute_dtype), b_pad


# -----------------------------------------------------------------------------
# Public forward: NCHW in, NCHW out
# -----------------------------------------------------------------------------
def sn_residual_block(x_nchw, w1, b1, w2, b2, *, compute_dtype=jnp.bfloat16, tile_h=None):
    N, C, H, W = x_nchw.shape
    assert w1.shape[0] == C and w2.shape[0] == C, "residual add requires dim_in == dim_out"

    # Lane-dense channel axis; pad to 256 when the true channel count allows (v6e/v7x MXU
    # is 256 wide), else 128.
    c_pad = 128 if C <= 128 else 256 * pl.cdiv(C, 256)

    # Column geometry: 8-column left halo so interior slices / stores are sublane aligned;
    # right pad so the total width is a multiple of 8 with >=1 zero halo column.
    col0 = 8
    w_pad = col0 + _round_up(W + 1, 8)

    cbytes = jnp.dtype(compute_dtype).itemsize
    vmem_cap = _vmem_capacity_bytes()
    vmem_limit = int(min(96 * 2**20, int(vmem_cap * 0.75)))     # ~96MiB (v5e/v6e), ~48MiB (v7x)
    if tile_h is None:
        tile_h = _pick_tile_h(H, W, w_pad, c_pad, cbytes, budget=int(vmem_limit * 0.6))
    assert H % tile_h == 0, "tile_h must divide H"
    n_h = H // tile_h

    # ONE padded copy of x in HBM (no overlapping-tile duplication); cast to the matmul
    # operand dtype here so each per-tile DMA moves compute_dtype bytes.
    x_nhwc = jnp.transpose(x_nchw, (0, 2, 3, 1)).astype(compute_dtype)
    x_p = jnp.pad(x_nhwc, ((0, 0), (2, 2), (col0, w_pad - col0 - W), (0, c_pad - C)))

    w1m, b1p = _prep_conv(w1, b1, c_pad, compute_dtype)
    w2m, b2p = _prep_conv(w2, b2, c_pad, compute_dtype)

    kernel = functools.partial(
        _sn_resblock_kernel, tile_h=tile_h, width=W, col0=col0, c_pad=c_pad,
        compute_dtype=compute_dtype)

    out = pl.pallas_call(
        kernel,
        out_shape=jax.ShapeDtypeStruct((N, H, W, c_pad), jnp.float32),
        grid_spec=pltpu.PrefetchScalarGridSpec(
            num_scalar_prefetch=0,
            grid=(N, n_h),
            in_specs=[
                pl.BlockSpec(memory_space=pl.ANY),                             # x_p (HBM)
                pl.BlockSpec((3, 3 * c_pad, c_pad), lambda n, j: (0, 0, 0)),   # w1
                pl.BlockSpec((1, c_pad), lambda n, j: (0, 0)),                 # b1
                pl.BlockSpec((3, 3 * c_pad, c_pad), lambda n, j: (0, 0, 0)),   # w2
                pl.BlockSpec((1, c_pad), lambda n, j: (0, 0)),                 # b2
            ],
            out_specs=pl.BlockSpec((1, tile_h, W, c_pad), lambda n, j: (n, j, 0, 0)),
            scratch_shapes=[
                pltpu.VMEM((2, tile_h + 4, w_pad, c_pad), compute_dtype),  # x window x2
                pltpu.SemaphoreType.DMA((2,)),
                pltpu.VMEM((tile_h + 2, w_pad, c_pad), compute_dtype),     # h + halo
            ],
        ),
        compiler_params=pltpu.CompilerParams(
            # Batch axis split across TensorCores on multi-core parts; the H-tile axis is
            # sequential so the in-kernel prefetch of tile j+1 is always consumed by j+1.
            dimension_semantics=("parallel", "arbitrary"),
            vmem_limit_bytes=vmem_limit,
        ),
    )(x_p, w1m, b1p, w2m, b2p)

    out = out[..., :C]                               # drop channel padding
    return jnp.transpose(out, (0, 3, 1, 2))          # back to NCHW


# -----------------------------------------------------------------------------
# Parameter setup (plain JAX glue): deterministic init + spectral normalization
# -----------------------------------------------------------------------------
def spectral_normalize(w_oihw, key, eps=1e-12):
    """One power iteration (PyTorch spectral_norm default) from a deterministic u."""
    cout = w_oihw.shape[0]
    w_mat = w_oihw.reshape(cout, -1)
    u = jax.random.normal(key, (cout,), dtype=jnp.float32)
    u = u / (jnp.linalg.norm(u) + eps)
    v = w_mat.T @ u
    v = v / (jnp.linalg.norm(v) + eps)
    u = w_mat @ v
    u = u / (jnp.linalg.norm(u) + eps)
    sigma = u @ (w_mat @ v)
    return w_oihw / sigma


def make_params(key, dim_in, dim_out):
    k1, k2, k3, k4, ku1, ku2 = jax.random.split(key, 6)
    fan_in = dim_in * 3 * 3
    bound = 1.0 / jnp.sqrt(fan_in)
    w1 = jax.random.uniform(k1, (dim_out, dim_in, 3, 3), jnp.float32, -bound, bound)
    b1 = jax.random.uniform(k2, (dim_out,), jnp.float32, -bound, bound)
    w2 = jax.random.uniform(k3, (dim_out, dim_out, 3, 3), jnp.float32, -bound, bound)
    b2 = jax.random.uniform(k4, (dim_out,), jnp.float32, -bound, bound)
    return spectral_normalize(w1, ku1), b1, spectral_normalize(w2, ku2), b2


# -----------------------------------------------------------------------------
# Plain-JAX reference for correctness
# -----------------------------------------------------------------------------
def reference(x_nchw, w1, b1, w2, b2):
    dn = ("NCHW", "OIHW", "NCHW")
    h = lax.conv_general_dilated(x_nchw, w1, (1, 1), ((1, 1), (1, 1)),
                                 dimension_numbers=dn) + b1[None, :, None, None]
    h = jnp.where(h >= 0, h, 0.05 * h)
    y = lax.conv_general_dilated(h, w2, (1, 1), ((1, 1), (1, 1)),
                                 dimension_numbers=dn) + b2[None, :, None, None]
    return x_nchw + y


if __name__ == "__main__":
    key = jax.random.PRNGKey(0)
    kx, kp = jax.random.split(key)

    N, C, H, W = 2, 4, 16, 16            # dim_in == dim_out (required by the residual add)
    x = jax.random.normal(kx, (N, C, H, W), dtype=jnp.float32)
    w1, b1, w2, b2 = make_params(kp, C, C)

    ref = reference(x, w1, b1, w2, b2)

    # f32-operand path: tight correctness check (exact data path, different accumulation order)
    out_f32 = jax.block_until_ready(
        sn_residual_block(x, w1, b1, w2, b2, compute_dtype=jnp.float32))
    assert out_f32.shape == (N, C, H, W)
    assert jnp.max(jnp.abs(out_f32 - ref)) < 1e-4

    # Default bf16-operand path (f32 accumulation): MXU-native throughput; activations,
    # weights and the residual input are bf16-quantized, hence the loose tolerance.
    out = jax.block_until_ready(sn_residual_block(x, w1, b1, w2, b2))
    assert out.shape == (N, C, H, W)
    assert jnp.max(jnp.abs(out - ref)) < 0.3

    print("KERNEL_OK")
</pallas_src>

<mosaic_0001>
module attributes {stable_mosaic.version = 11 : i64} {
  func.func @_sn_resblock_kernel(%arg0: i32, %arg1: i32, %arg2: memref<2x20x32x128xf32, #tpu.memory_space<any>>, %arg3: memref<3x384x128xf32, #tpu.memory_space<vmem>>, %arg4: memref<1x128xf32, #tpu.memory_space<vmem>>, %arg5: memref<3x384x128xf32, #tpu.memory_space<vmem>>, %arg6: memref<1x128xf32, #tpu.memory_space<vmem>>, %arg7: memref<1x16x16x128xf32, #tpu.memory_space<vmem>>, %arg8: memref<2x20x32x128xf32, #tpu.memory_space<vmem>>, %arg9: memref<2x!tpu.dma_semaphore, #tpu.memory_space<semaphore_mem>>, %arg10: memref<18x32x128xf32, #tpu.memory_space<vmem>>) attributes {dimension_semantics = [#tpu.dimension_semantics<parallel>, #tpu.dimension_semantics<arbitrary>], iteration_bounds = array<i64: 2, 1>, scalar_prefetch = 0 : i64, scratch_operands = 3 : i64, tpu.core_type = #tpu.core_type<tc>, window_params = [{}, {pipeline_mode = #tpu.pipeline_mode<synchronous>, transform_indices = @transform_1, window_bounds = array<i64: 3, 384, 128>}, {pipeline_mode = #tpu.pipeline_mode<synchronous>, transform_indices = @transform_2, window_bounds = array<i64: 1, 128>}, {pipeline_mode = #tpu.pipeline_mode<synchronous>, transform_indices = @transform_3, window_bounds = array<i64: 3, 384, 128>}, {pipeline_mode = #tpu.pipeline_mode<synchronous>, transform_indices = @transform_4, window_bounds = array<i64: 1, 128>}, {transform_indices = @transform_5, window_bounds = array<i64: 1, 16, 16, 128>}]} {
    %c1_i32 = arith.constant 1 : i32
    %0 = arith.andi %arg1, %c1_i32 : i32
    %c0_i32 = arith.constant 0 : i32
    %1 = arith.cmpi eq, %arg1, %c0_i32 : i32
    %2 = arith.extui %1 : i1 to i32
    %c0_i32_0 = arith.constant 0 : i32
    %3 = arith.cmpi ne, %2, %c0_i32_0 : i32
    scf.if %3 {
      %c16_i32 = arith.constant 16 : i32
      %120 = arith.muli %arg1, %c16_i32 : i32
      %c0_i32_66 = arith.constant 0 : i32
      %c0_i32_67 = arith.constant 0 : i32
      %121 = tpu.memref_slice %arg2[%arg0, %120, %c0_i32_66, %c0_i32_67] : memref<2x20x32x128xf32, #tpu.memory_space<any>> -> memref<1x20x32x128xf32, #tpu.memory_space<any>>
      %122 = tpu.memref_squeeze %121 : memref<1x20x32x128xf32, #tpu.memory_space<any>> -> memref<20x32x128xf32, #tpu.memory_space<any>>
      %c0_i32_68 = arith.constant 0 : i32
      %c0_i32_69 = arith.constant 0 : i32
      %c0_i32_70 = arith.constant 0 : i32
      %123 = tpu.memref_slice %arg8[%0, %c0_i32_68, %c0_i32_69, %c0_i32_70] : memref<2x20x32x128xf32, #tpu.memory_space<vmem>> -> memref<1x20x32x128xf32, #tpu.memory_space<vmem>>
      %124 = tpu.memref_squeeze %123 : memref<1x20x32x128xf32, #tpu.memory_space<vmem>> -> memref<20x32x128xf32, #tpu.memory_space<vmem>>
      %125 = tpu.memref_slice %arg9[%0] : memref<2x!tpu.dma_semaphore, #tpu.memory_space<semaphore_mem>> -> memref<1x!tpu.dma_semaphore, #tpu.memory_space<semaphore_mem>>
      %126 = tpu.memref_squeeze %125 : memref<1x!tpu.dma_semaphore, #tpu.memory_space<semaphore_mem>> -> memref<!tpu.dma_semaphore, #tpu.memory_space<semaphore_mem>>
      tpu.enqueue_dma source(%122 : memref<20x32x128xf32, #tpu.memory_space<any>>) target(%124 : memref<20x32x128xf32, #tpu.memory_space<vmem>>) target_semaphore(%126 : memref<!tpu.dma_semaphore, #tpu.memory_space<semaphore_mem>>)
    } else {
    }
    %c1_i32_1 = arith.constant 1 : i32
    %4 = arith.addi %arg1, %c1_i32_1 : i32
    %c1_i32_2 = arith.constant 1 : i32
    %5 = arith.cmpi slt, %4, %c1_i32_2 : i32
    %6 = arith.extui %5 : i1 to i32
    %c0_i32_3 = arith.constant 0 : i32
    %7 = arith.cmpi ne, %6, %c0_i32_3 : i32
    scf.if %7 {
      %c1_i32_66 = arith.constant 1 : i32
      %120 = arith.addi %arg1, %c1_i32_66 : i32
      %c1_i32_67 = arith.constant 1 : i32
      %121 = arith.subi %c1_i32_67, %0 : i32
      %c16_i32 = arith.constant 16 : i32
      %122 = arith.muli %120, %c16_i32 : i32
      %c0_i32_68 = arith.constant 0 : i32
      %c0_i32_69 = arith.constant 0 : i32
      %123 = tpu.memref_slice %arg2[%arg0, %122, %c0_i32_68, %c0_i32_69] : memref<2x20x32x128xf32, #tpu.memory_space<any>> -> memref<1x20x32x128xf32, #tpu.memory_space<any>>
      %124 = tpu.memref_squeeze %123 : memref<1x20x32x128xf32, #tpu.memory_space<any>> -> memref<20x32x128xf32, #tpu.memory_space<any>>
      %c0_i32_70 = arith.constant 0 : i32
      %c0_i32_71 = arith.constant 0 : i32
      %c0_i32_72 = arith.constant 0 : i32
      %125 = tpu.memref_slice %arg8[%121, %c0_i32_70, %c0_i32_71, %c0_i32_72] : memref<2x20x32x128xf32, #tpu.memory_space<vmem>> -> memref<1x20x32x128xf32, #tpu.memory_space<vmem>>
      %126 = tpu.memref_squeeze %125 : memref<1x20x32x128xf32, #tpu.memory_space<vmem>> -> memref<20x32x128xf32, #tpu.memory_space<vmem>>
      %127 = tpu.memref_slice %arg9[%121] : memref<2x!tpu.dma_semaphore, #tpu.memory_space<semaphore_mem>> -> memref<1x!tpu.dma_semaphore, #tpu.memory_space<semaphore_mem>>
      %128 = tpu.memref_squeeze %127 : memref<1x!tpu.dma_semaphore, #tpu.memory_space<semaphore_mem>> -> memref<!tpu.dma_semaphore, #tpu.memory_space<semaphore_mem>>
      tpu.enqueue_dma source(%124 : memref<20x32x128xf32, #tpu.memory_space<any>>) target(%126 : memref<20x32x128xf32, #tpu.memory_space<vmem>>) target_semaphore(%128 : memref<!tpu.dma_semaphore, #tpu.memory_space<semaphore_mem>>)
    } else {
    }
    %c0_i32_4 = arith.constant 0 : i32
    %c0_i32_5 = arith.constant 0 : i32
    %c0_i32_6 = arith.constant 0 : i32
    %c0_i32_7 = arith.constant 0 : i32
    %8 = tpu.memref_slice %arg2[%c0_i32_4, %c0_i32_5, %c0_i32_6, %c0_i32_7] : memref<2x20x32x128xf32, #tpu.memory_space<any>> -> memref<1x20x32x128xf32, #tpu.memory_space<any>>
    %9 = tpu.memref_squeeze %8 : memref<1x20x32x128xf32, #tpu.memory_space<any>> -> memref<20x32x128xf32, #tpu.memory_space<any>>
    %c0_i32_8 = arith.constant 0 : i32
    %c0_i32_9 = arith.constant 0 : i32
    %c0_i32_10 = arith.constant 0 : i32
    %10 = tpu.memref_slice %arg8[%0, %c0_i32_8, %c0_i32_9, %c0_i32_10] : memref<2x20x32x128xf32, #tpu.memory_space<vmem>> -> memref<1x20x32x128xf32, #tpu.memory_space<vmem>>
    %11 = tpu.memref_squeeze %10 : memref<1x20x32x128xf32, #tpu.memory_space<vmem>> -> memref<20x32x128xf32, #tpu.memory_space<vmem>>
    %12 = tpu.memref_slice %arg9[%0] : memref<2x!tpu.dma_semaphore, #tpu.memory_space<semaphore_mem>> -> memref<1x!tpu.dma_semaphore, #tpu.memory_space<semaphore_mem>>
    %13 = tpu.memref_squeeze %12 : memref<1x!tpu.dma_semaphore, #tpu.memory_space<semaphore_mem>> -> memref<!tpu.dma_semaphore, #tpu.memory_space<semaphore_mem>>
    tpu.wait_dma2 semaphore(%13 : memref<!tpu.dma_semaphore, #tpu.memory_space<semaphore_mem>>) src(%9 : memref<20x32x128xf32, #tpu.memory_space<any>>) dst(%11 : memref<20x32x128xf32, #tpu.memory_space<vmem>>)
    %14 = arith.index_cast %0 : i32 to index
    %c0 = arith.constant 0 : index
    %c0_11 = arith.constant 0 : index
    %c0_12 = arith.constant 0 : index
    %15 = vector.load %arg8[%14, %c0, %c0_11, %c0_12] : memref<2x20x32x128xf32, #tpu.memory_space<vmem>>, vector<1x20x32x128xf32>
    %16 = vector.shape_cast %15 : vector<1x20x32x128xf32> to vector<20x32x128xf32>
    %cst = arith.constant 0.000000e+00 : f32
    %17 = vector.broadcast %cst : f32 to vector<288x128xf32>
    %18 = vector.extract_strided_slice %16 {offsets = [0, 7, 0], sizes = [20, 16, 128], strides = [1, 1, 1]} : vector<20x32x128xf32> to vector<20x16x128xf32>
    %19 = vector.extract_strided_slice %18 {offsets = [0, 0, 0], sizes = [18, 16, 128], strides = [1, 1, 1]} : vector<20x16x128xf32> to vector<18x16x128xf32>
    %20 = vector.shape_cast %19 : vector<18x16x128xf32> to vector<288x128xf32>
    %21 = vector.extract_strided_slice %18 {offsets = [1, 0, 0], sizes = [18, 16, 128], strides = [1, 1, 1]} : vector<20x16x128xf32> to vector<18x16x128xf32>
    %22 = vector.shape_cast %21 : vector<18x16x128xf32> to vector<288x128xf32>
    %23 = vector.extract_strided_slice %18 {offsets = [2, 0, 0], sizes = [18, 16, 128], strides = [1, 1, 1]} : vector<20x16x128xf32> to vector<18x16x128xf32>
    %24 = vector.shape_cast %23 : vector<18x16x128xf32> to vector<288x128xf32>
    %25 = tpu.concatenate %20, %22, %24 in 1 : vector<288x128xf32>, vector<288x128xf32>, vector<288x128xf32> -> vector<288x384xf32>
    %c0_13 = arith.constant 0 : index
    %c0_14 = arith.constant 0 : index
    %c0_15 = arith.constant 0 : index
    %26 = vector.load %arg3[%c0_13, %c0_14, %c0_15] : memref<3x384x128xf32, #tpu.memory_space<vmem>>, vector<1x384x128xf32>
    %27 = vector.shape_cast %26 : vector<1x384x128xf32> to vector<384x128xf32>
    %cst_16 = arith.constant dense<0.000000e+00> : vector<288x128xf32>
    %28 = tpu.matmul %25, %27, %cst_16 {dimension_numbers = #tpu.dot_dimension_numbers<[1], [0], [0], [1], [0, 0, 1, 1], [], []>} : vector<288x384xf32>, vector<384x128xf32>, vector<288x128xf32> -> vector<288x128xf32>
    %29 = arith.addf %17, %28 : vector<288x128xf32>
    %30 = vector.extract_strided_slice %16 {offsets = [0, 8, 0], sizes = [20, 16, 128], strides = [1, 1, 1]} : vector<20x32x128xf32> to vector<20x16x128xf32>
    %31 = vector.extract_strided_slice %30 {offsets = [0, 0, 0], sizes = [18, 16, 128], strides = [1, 1, 1]} : vector<20x16x128xf32> to vector<18x16x128xf32>
    %32 = vector.shape_cast %31 : vector<18x16x128xf32> to vector<288x128xf32>
    %33 = vector.extract_strided_slice %30 {offsets = [1, 0, 0], sizes = [18, 16, 128], strides = [1, 1, 1]} : vector<20x16x128xf32> to vector<18x16x128xf32>
    %34 = vector.shape_cast %33 : vector<18x16x128xf32> to vector<288x128xf32>
    %35 = vector.extract_strided_slice %30 {offsets = [2, 0, 0], sizes = [18, 16, 128], strides = [1, 1, 1]} : vector<20x16x128xf32> to vector<18x16x128xf32>
    %36 = vector.shape_cast %35 : vector<18x16x128xf32> to vector<288x128xf32>
    %37 = tpu.concatenate %32, %34, %36 in 1 : vector<288x128xf32>, vector<288x128xf32>, vector<288x128xf32> -> vector<288x384xf32>
    %c1 = arith.constant 1 : index
    %c0_17 = arith.constant 0 : index
    %c0_18 = arith.constant 0 : index
    %38 = vector.load %arg3[%c1, %c0_17, %c0_18] : memref<3x384x128xf32, #tpu.memory_space<vmem>>, vector<1x384x128xf32>
    %39 = vector.shape_cast %38 : vector<1x384x128xf32> to vector<384x128xf32>
    %cst_19 = arith.constant dense<0.000000e+00> : vector<288x128xf32>
    %40 = tpu.matmul %37, %39, %cst_19 {dimension_numbers = #tpu.dot_dimension_numbers<[1], [0], [0], [1], [0, 0, 1, 1], [], []>} : vector<288x384xf32>, vector<384x128xf32>, vector<288x128xf32> -> vector<288x128xf32>
    %41 = arith.addf %29, %40 : vector<288x128xf32>
    %42 = vector.extract_strided_slice %16 {offsets = [0, 9, 0], sizes = [20, 16, 128], strides = [1, 1, 1]} : vector<20x32x128xf32> to vector<20x16x128xf32>
    %43 = vector.extract_strided_slice %42 {offsets = [0, 0, 0], sizes = [18, 16, 128], strides = [1, 1, 1]} : vector<20x16x128xf32> to vector<18x16x128xf32>
    %44 = vector.shape_cast %43 : vector<18x16x128xf32> to vector<288x128xf32>
    %45 = vector.extract_strided_slice %42 {offsets = [1, 0, 0], sizes = [18, 16, 128], strides = [1, 1, 1]} : vector<20x16x128xf32> to vector<18x16x128xf32>
    %46 = vector.shape_cast %45 : vector<18x16x128xf32> to vector<288x128xf32>
    %47 = vector.extract_strided_slice %42 {offsets = [2, 0, 0], sizes = [18, 16, 128], strides = [1, 1, 1]} : vector<20x16x128xf32> to vector<18x16x128xf32>
    %48 = vector.shape_cast %47 : vector<18x16x128xf32> to vector<288x128xf32>
    %49 = tpu.concatenate %44, %46, %48 in 1 : vector<288x128xf32>, vector<288x128xf32>, vector<288x128xf32> -> vector<288x384xf32>
    %c2 = arith.constant 2 : index
    %c0_20 = arith.constant 0 : index
    %c0_21 = arith.constant 0 : index
    %50 = vector.load %arg3[%c2, %c0_20, %c0_21] : memref<3x384x128xf32, #tpu.memory_space<vmem>>, vector<1x384x128xf32>
    %51 = vector.shape_cast %50 : vector<1x384x128xf32> to vector<384x128xf32>
    %cst_22 = arith.constant dense<0.000000e+00> : vector<288x128xf32>
    %52 = tpu.matmul %49, %51, %cst_22 {dimension_numbers = #tpu.dot_dimension_numbers<[1], [0], [0], [1], [0, 0, 1, 1], [], []>} : vector<288x384xf32>, vector<384x128xf32>, vector<288x128xf32> -> vector<288x128xf32>
    %53 = arith.addf %41, %52 : vector<288x128xf32>
    %c0_23 = arith.constant 0 : index
    %c0_24 = arith.constant 0 : index
    %54 = vector.load %arg4[%c0_23, %c0_24] : memref<1x128xf32, #tpu.memory_space<vmem>>, vector<1x128xf32>
    %55 = vector.broadcast %54 : vector<1x128xf32> to vector<288x128xf32>
    %56 = arith.addf %53, %55 : vector<288x128xf32>
    %cst_25 = arith.constant 0.000000e+00 : f32
    %57 = vector.broadcast %cst_25 : f32 to vector<288x128xf32>
    %58 = arith.cmpf oge, %56, %57 : vector<288x128xf32>
    %cst_26 = arith.constant 5.000000e-02 : f32
    %59 = vector.broadcast %cst_26 : f32 to vector<288x128xf32>
    %60 = arith.mulf %59, %56 : vector<288x128xf32>
    %61 = arith.select %58, %56, %60 : vector<288x128xi1>, vector<288x128xf32>
    %62 = vector.shape_cast %61 : vector<288x128xf32> to vector<18x16x128xf32>
    %c0_27 = arith.constant 0 : index
    %c8 = arith.constant 8 : index
    %c0_28 = arith.constant 0 : index
    %63 = vector.load %arg10[%c0_27, %c8, %c0_28] : memref<18x32x128xf32, #tpu.memory_space<vmem>>, vector<18x16x128xf32>
    tpu.vector_store %arg10[%c0_27, %c8, %c0_28], %62 {strides = array<i32>} : memref<18x32x128xf32, #tpu.memory_space<vmem>>, vector<18x16x128xf32>,
    %cst_29 = arith.constant 0.000000e+00 : f32
    %64 = vector.broadcast %cst_29 : f32 to vector<18x1x128xf32>
    %c0_30 = arith.constant 0 : index
    %c7 = arith.constant 7 : index
    %c0_31 = arith.constant 0 : index
    %65 = vector.load %arg10[%c0_30, %c7, %c0_31] : memref<18x32x128xf32, #tpu.memory_space<vmem>>, vector<18x1x128xf32>
    tpu.vector_store %arg10[%c0_30, %c7, %c0_31], %64 {strides = array<i32>} : memref<18x32x128xf32, #tpu.memory_space<vmem>>, vector<18x1x128xf32>,
    %c0_32 = arith.constant 0 : index
    %c24 = arith.constant 24 : index
    %c0_33 = arith.constant 0 : index
    %66 = vector.load %arg10[%c0_32, %c24, %c0_33] : memref<18x32x128xf32, #tpu.memory_space<vmem>>, vector<18x1x128xf32>
    tpu.vector_store %arg10[%c0_32, %c24, %c0_33], %64 {strides = array<i32>} : memref<18x32x128xf32, #tpu.memory_space<vmem>>, vector<18x1x128xf32>,
    %cst_34 = arith.constant 0.000000e+00 : f32
    %67 = vector.broadcast %cst_34 : f32 to vector<1x18x128xf32>
    %c0_i32_35 = arith.constant 0 : i32
    %68 = arith.cmpi eq, %arg1, %c0_i32_35 : i32
    %69 = arith.extui %68 : i1 to i32
    %c0_i32_36 = arith.constant 0 : i32
    %70 = arith.cmpi ne, %69, %c0_i32_36 : i32
    scf.if %70 {
      %c0_66 = arith.constant 0 : index
      %c7_67 = arith.constant 7 : index
      %c0_68 = arith.constant 0 : index
      %120 = vector.load %arg10[%c0_66, %c7_67, %c0_68] : memref<18x32x128xf32, #tpu.memory_space<vmem>>, vector<1x18x128xf32>
      tpu.vector_store %arg10[%c0_66, %c7_67, %c0_68], %67 {strides = array<i32>} : memref<18x32x128xf32, #tpu.memory_space<vmem>>, vector<1x18x128xf32>,
    } else {
    }
    %c0_i32_37 = arith.constant 0 : i32
    %71 = arith.cmpi eq, %arg1, %c0_i32_37 : i32
    %72 = arith.extui %71 : i1 to i32
    %c0_i32_38 = arith.constant 0 : i32
    %73 = arith.cmpi ne, %72, %c0_i32_38 : i32
    scf.if %73 {
      %c17 = arith.constant 17 : index
      %c7_66 = arith.constant 7 : index
      %c0_67 = arith.constant 0 : index
      %120 = vector.load %arg10[%c17, %c7_66, %c0_67] : memref<18x32x128xf32, #tpu.memory_space<vmem>>, vector<1x18x128xf32>
      tpu.vector_store %arg10[%c17, %c7_66, %c0_67], %67 {strides = array<i32>} : memref<18x32x128xf32, #tpu.memory_space<vmem>>, vector<1x18x128xf32>,
    } else {
    }
    %cst_39 = arith.constant 0.000000e+00 : f32
    %74 = vector.broadcast %cst_39 : f32 to vector<256x128xf32>
    %c0_40 = arith.constant 0 : index
    %c7_41 = arith.constant 7 : index
    %c0_42 = arith.constant 0 : index
    %75 = vector.load %arg10[%c0_40, %c7_41, %c0_42] : memref<18x32x128xf32, #tpu.memory_space<vmem>>, vector<18x16x128xf32>
    %76 = vector.extract_strided_slice %75 {offsets = [0, 0, 0], sizes = [16, 16, 128], strides = [1, 1, 1]} : vector<18x16x128xf32> to vector<16x16x128xf32>
    %77 = vector.shape_cast %76 : vector<16x16x128xf32> to vector<256x128xf32>
    %78 = vector.extract_strided_slice %75 {offsets = [1, 0, 0], sizes = [16, 16, 128], strides = [1, 1, 1]} : vector<18x16x128xf32> to vector<16x16x128xf32>
    %79 = vector.shape_cast %78 : vector<16x16x128xf32> to vector<256x128xf32>
    %80 = vector.extract_strided_slice %75 {offsets = [2, 0, 0], sizes = [16, 16, 128], strides = [1, 1, 1]} : vector<18x16x128xf32> to vector<16x16x128xf32>
    %81 = vector.shape_cast %80 : vector<16x16x128xf32> to vector<256x128xf32>
    %82 = tpu.concatenate %77, %79, %81 in 1 : vector<256x128xf32>, vector<256x128xf32>, vector<256x128xf32> -> vector<256x384xf32>
    %c0_43 = arith.constant 0 : index
    %c0_44 = arith.constant 0 : index
    %c0_45 = arith.constant 0 : index
    %83 = vector.load %arg5[%c0_43, %c0_44, %c0_45] : memref<3x384x128xf32, #tpu.memory_space<vmem>>, vector<1x384x128xf32>
    %84 = vector.shape_cast %83 : vector<1x384x128xf32> to vector<384x128xf32>
    %cst_46 = arith.constant dense<0.000000e+00> : vector<256x128xf32>
    %85 = tpu.matmul %82, %84, %cst_46 {dimension_numbers = #tpu.dot_dimension_numbers<[1], [0], [0], [1], [0, 0, 1, 1], [], []>} : vector<256x384xf32>, vector<384x128xf32>, vector<256x128xf32> -> vector<256x128xf32>
    %86 = arith.addf %74, %85 : vector<256x128xf32>
    %c0_47 = arith.constant 0 : index
    %c8_48 = arith.constant 8 : index
    %c0_49 = arith.constant 0 : index
    %87 = vector.load %arg10[%c0_47, %c8_48, %c0_49] : memref<18x32x128xf32, #tpu.memory_space<vmem>>, vector<18x16x128xf32>
    %88 = vector.extract_strided_slice %87 {offsets = [0, 0, 0], sizes = [16, 16, 128], strides = [1, 1, 1]} : vector<18x16x128xf32> to vector<16x16x128xf32>
    %89 = vector.shape_cast %88 : vector<16x16x128xf32> to vector<256x128xf32>
    %90 = vector.extract_strided_slice %87 {offsets = [1, 0, 0], sizes = [16, 16, 128], strides = [1, 1, 1]} : vector<18x16x128xf32> to vector<16x16x128xf32>
    %91 = vector.shape_cast %90 : vector<16x16x128xf32> to vector<256x128xf32>
    %92 = vector.extract_strided_slice %87 {offsets = [2, 0, 0], sizes = [16, 16, 128], strides = [1, 1, 1]} : vector<18x16x128xf32> to vector<16x16x128xf32>
    %93 = vector.shape_cast %92 : vector<16x16x128xf32> to vector<256x128xf32>
    %94 = tpu.concatenate %89, %91, %93 in 1 : vector<256x128xf32>, vector<256x128xf32>, vector<256x128xf32> -> vector<256x384xf32>
    %c1_50 = arith.constant 1 : index
    %c0_51 = arith.constant 0 : index
    %c0_52 = arith.constant 0 : index
    %95 = vector.load %arg5[%c1_50, %c0_51, %c0_52] : memref<3x384x128xf32, #tpu.memory_space<vmem>>, vector<1x384x128xf32>
    %96 = vector.shape_cast %95 : vector<1x384x128xf32> to vector<384x128xf32>
    %cst_53 = arith.constant dense<0.000000e+00> : vector<256x128xf32>
    %97 = tpu.matmul %94, %96, %cst_53 {dimension_numbers = #tpu.dot_dimension_numbers<[1], [0], [0], [1], [0, 0, 1, 1], [], []>} : vector<256x384xf32>, vector<384x128xf32>, vector<256x128xf32> -> vector<256x128xf32>
    %98 = arith.addf %86, %97 : vector<256x128xf32>
    %c0_54 = arith.constant 0 : index
    %c9 = arith.constant 9 : index
    %c0_55 = arith.constant 0 : index
    %99 = vector.load %arg10[%c0_54, %c9, %c0_55] : memref<18x32x128xf32, #tpu.memory_space<vmem>>, vector<18x16x128xf32>
    %100 = vector.extract_strided_slice %99 {offsets = [0, 0, 0], sizes = [16, 16, 128], strides = [1, 1, 1]} : vector<18x16x128xf32> to vector<16x16x128xf32>
    %101 = vector.shape_cast %100 : vector<16x16x128xf32> to vector<256x128xf32>
    %102 = vector.extract_strided_slice %99 {offsets = [1, 0, 0], sizes = [16, 16, 128], strides = [1, 1, 1]} : vector<18x16x128xf32> to vector<16x16x128xf32>
    %103 = vector.shape_cast %102 : vector<16x16x128xf32> to vector<256x128xf32>
    %104 = vector.extract_strided_slice %99 {offsets = [2, 0, 0], sizes = [16, 16, 128], strides = [1, 1, 1]} : vector<18x16x128xf32> to vector<16x16x128xf32>
    %105 = vector.shape_cast %104 : vector<16x16x128xf32> to vector<256x128xf32>
    %106 = tpu.concatenate %101, %103, %105 in 1 : vector<256x128xf32>, vector<256x128xf32>, vector<256x128xf32> -> vector<256x384xf32>
    %c2_56 = arith.constant 2 : index
    %c0_57 = arith.constant 0 : index
    %c0_58 = arith.constant 0 : index
    %107 = vector.load %arg5[%c2_56, %c0_57, %c0_58] : memref<3x384x128xf32, #tpu.memory_space<vmem>>, vector<1x384x128xf32>
    %108 = vector.shape_cast %107 : vector<1x384x128xf32> to vector<384x128xf32>
    %cst_59 = arith.constant dense<0.000000e+00> : vector<256x128xf32>
    %109 = tpu.matmul %106, %108, %cst_59 {dimension_numbers = #tpu.dot_dimension_numbers<[1], [0], [0], [1], [0, 0, 1, 1], [], []>} : vector<256x384xf32>, vector<384x128xf32>, vector<256x128xf32> -> vector<256x128xf32>
    %110 = arith.addf %98, %109 : vector<256x128xf32>
    %c0_60 = arith.constant 0 : index
    %c0_61 = arith.constant 0 : index
    %111 = vector.load %arg6[%c0_60, %c0_61] : memref<1x128xf32, #tpu.memory_space<vmem>>, vector<1x128xf32>
    %112 = vector.broadcast %111 : vector<1x128xf32> to vector<256x128xf32>
    %113 = arith.addf %110, %112 : vector<256x128xf32>
    %114 = vector.extract_strided_slice %16 {offsets = [2, 8, 0], sizes = [16, 16, 128], strides = [1, 1, 1]} : vector<20x32x128xf32> to vector<16x16x128xf32>
    %115 = vector.shape_cast %113 : vector<256x128xf32> to vector<16x16x128xf32>
    %116 = arith.addf %114, %115 : vector<16x16x128xf32>
    %c0_62 = arith.constant 0 : index
    %c0_63 = arith.constant 0 : index
    %c0_64 = arith.constant 0 : index
    %c0_65 = arith.constant 0 : index
    %117 = vector.load %arg7[%c0_62, %c0_63, %c0_64, %c0_65] : memref<1x16x16x128xf32, #tpu.memory_space<vmem>>, vector<1x16x16x128xf32>
    %118 = vector.shape_cast %117 : vector<1x16x16x128xf32> to vector<16x16x128xf32>
    %119 = vector.shape_cast %116 : vector<16x16x128xf32> to vector<1x16x16x128xf32>
    tpu.vector_store %arg7[%c0_62, %c0_63, %c0_64, %c0_65], %119 {strides = array<i32>} : memref<1x16x16x128xf32, #tpu.memory_space<vmem>>, vector<1x16x16x128xf32>,
    return
  }
  func.func @transform_1(%arg0: i32, %arg1: i32) -> (i32, i32, i32) {
    %c0_i32 = arith.constant 0 : i32
    %c0_i32_0 = arith.constant 0 : i32
    %c0_i32_1 = arith.constant 0 : i32
    %c0_i32_2 = arith.constant 0 : i32
    return %c0_i32, %c0_i32_0, %c0_i32_1 : i32, i32, i32
  }
  func.func @transform_2(%arg0: i32, %arg1: i32) -> (i32, i32) {
    %c0_i32 = arith.constant 0 : i32
    %c0_i32_0 = arith.constant 0 : i32
    %c0_i32_1 = arith.constant 0 : i32
    return %c0_i32, %c0_i32_0 : i32, i32
  }
  func.func @transform_3(%arg0: i32, %arg1: i32) -> (i32, i32, i32) {
    %c0_i32 = arith.constant 0 : i32
    %c0_i32_0 = arith.constant 0 : i32
    %c0_i32_1 = arith.constant 0 : i32
    %c0_i32_2 = arith.constant 0 : i32
    return %c0_i32, %c0_i32_0, %c0_i32_1 : i32, i32, i32
  }
  func.func @transform_4(%arg0: i32, %arg1: i32) -> (i32, i32) {
    %c0_i32 = arith.constant 0 : i32
    %c0_i32_0 = arith.constant 0 : i32
    %c0_i32_1 = arith.constant 0 : i32
    return %c0_i32, %c0_i32_0 : i32, i32
  }
  func.func @transform_5(%arg0: i32, %arg1: i32) -> (i32, i32, i32, i32) {
    %c0_i32 = arith.constant 0 : i32
    %c0_i32_0 = arith.constant 0 : i32
    %c0_i32_1 = arith.constant 0 : i32
    return %arg0, %arg1, %c0_i32, %c0_i32_0 : i32, i32, i32, i32
  }
}

</mosaic_0001>

<bundles_post_ra>
// kernel: tpu_custom_call.1
= control target key start
LH: loop header
LB: loop body
LE: loop exit
PB: predicated region body
PF: predicated region fallthrough
CT: control target
= control target key end

     0   :  { %10 = vsyncpa [#allocation6], 0  ;;  %s7821_s0 = inlined_call_operand.hbm [shape: f32[2,20,32,128], index: 0, kind: input, shape index: {}]   ;;  %s7822_s1 = inlined_call_operand.hbm [shape: f32[3,384,128], index: 1, kind: input, shape index: {}]   ;;  %s7823_s2 = inlined_call_operand.vmem [shape: f32[1,128], index: 2, kind: input, shape index: {}]   ;;  %s7824_s3 = inlined_call_operand.hbm [shape: f32[3,384,128], index: 3, kind: input, shape index: {}]   ;;  %s7825_s4 = inlined_call_operand.vmem [shape: f32[1,128], index: 4, kind: input, shape index: {}]   ;;  %s7826_s5 = inlined_call_operand.hbm [shape: f32[2,16,16,128], index: 5, kind: output, shape index: {}]  }
   0x1   :  { %11 = vsyncpa [#allocation9], 0 }
   0x2   :  { %12 = vsyncpa [#allocation7], 0 }
   0x3   :  { %14 = vsyncpa [#allocation7 + $0x1], 0  ;;  %s5654_s18 = smov 0   ;;  %s5656_s19 = smov 0  }
   0x4   :  { %s5658_s20 = smov 0   ;;  %s5660_s21 = smov 0  }
   0x5   :  { %s5662_s22 = smov 0   ;;  %s5664_s23 = smov 0  }
   0x6 LB: > { %s4479_s24 = sadd.s32 4294967295, %s5613_s23   ;;  %s4480_s25 = sadd.s32 4294967294, %s5613_s23   ;;  %s5613_s23 = sphi %s5664_s23, %s20_s23   ;;  %s5609_s22 = sphi %s5662_s22, %s7886_s22   ;;  %s5605_s21 = sphi %s5660_s21, %s7885_s21   ;;  %s5601_s20 = sphi %s5658_s20, %s7884_s20   ;;  %s5597_s19 = sphi %s5656_s19, %s7883_s19   ;;  %s5593_s18 = sphi %s5654_s18, %s7882_s18  }
   0x7   : > { %s32_s26 = sadd.s32 1, %s5609_s22  ;;  %s125_s27 = sadd.s32 1, %s5601_s20 }
   0x8   : > { %p34_p0 = scmp.ge.s32.totalorder %s32_s26, 2  ;;  %p135_p1 = scmp.ne.s32.totalorder %s5601_s20, %s5597_s19 }
   0x9   : > { %p136_p2 = scmp.eq.s32.totalorder %s4479_s24, 1  ;;  %p141_p3 = scmp.ne.s32.totalorder %s5597_s19, %s5593_s18 }
   0xa   : > { %s7888_s26 = smov (%p34_p0, %s32_s26), 0  ;;  %p142_p5 = scmp.eq.s32.totalorder %s4480_s25, 1 }
   0xb   : > { %p5694_p4 = por %p136_p2, %p135_p1  ;;  %s120_s29 = ssub.s32 %s5609_s22, %s7888_s26 }
   0xc   : > { %p4481_p6 = scmp.ge.s32.totalorder %s5613_s23, 1  ;;  %p123_p7 = scmp.eq.s32.totalorder %s120_s29, 0 }
   0xd   : > { %s7830_s28 = scalar_select %p5694_p4, 1, 0 }
   0xe   : > { %p5701_p8 = por %p142_p5, %p141_p3  ;;  %p149_p9 = scmp.lt.s32.totalorder %s5613_s23, 3 }
   0xf   : > { %s5707_s6 = scalar_select %p123_p7, %s5601_s20, %s125_s27  }
  0x10   : > { %s7831_s30 = scalar_select %p5701_p8, 1, 0 }
  0x11   : > { %p5709_p10 = pnand %p4481_p6, %p149_p9  ;;  %p5713_p11 = scmp.eq.s32.totalorder %s4479_s24, 0 }
  0x12   : > { %s5615_s9 = smov [#allocation5]   ;;  %s5616_s12 = smov [#allocation8]  }
  0x13   : > { %p5309_p12 = pneg %p5709_p10  ;;  %s161_s10 = sshll.u32 %s5615_s9, 4  ;;  %s162_s10 = int_to_ptr.vmem [resolvable:$true] %s161_s10 }
  0x14   : > { %s177_s13 = sshll.u32 %s5616_s12, 4  ;;  %s5464_s14 = scalar_lea.vmem %s162_s10, 18432  ;;  %s178_s13 = int_to_ptr.vmem [resolvable:$true] %s177_s13 }
  0x15   : > { %p5721_p13 = pnand %p5713_p11, %p5309_p12  ;;  %p5465_p1 = scmp.ne.s32.totalorder %s162_s10, %s5464_s14 }
  0x16   : > { %p5472_p5 = scmp.lt.s32.totalorder %s162_s10, %s162_s10  ;;  %p5473_p6 = scmp.lt.s32.totalorder %s5464_s14, %s5464_s14 }
  0x17   : > { %p5455_p0 = pneg %p5721_p13 }
  0x18   : > { %p5474_p7 = por %p5473_p6, %p5472_p5 }
  0x19   : > { %p5467_p2 = pnand %p5465_p1, %p5455_p0 }
  0x1b   : > { %p5468_p3 = pneg %p5467_p2 }
  0x1d   : > { %p5475_p9 = pnand %p5474_p7, %p5468_p3 }
  0x1f   : > { %5478 = shalt.err (!%p5475_p9)
}
  0x20   : > { %s5617_s15 = smov 128   ;;  %s5618_s16 = smov 8  }
  0x21   : > { %5312 = dma.hbm_to_vmem [thread:$0]  (!%p5721_p13), %s7822_s1, 18432, %s162_s10, [#allocation6], %s5617_s15, %s5617_s15, %s5618_s16  }
  0x22   : > { %s5490_s25 = scalar_lea.vmem %s178_s13, 18432  ;;  %p5498_p8 = scmp.lt.s32.totalorder %s178_s13, %s178_s13 }
  0x23   : > { %p5491_p12 = scmp.ne.s32.totalorder %s178_s13, %s5490_s25  ;;  %p5499_p4 = scmp.lt.s32.totalorder %s5490_s25, %s5490_s25 }
  0x25   : > { %p5493_p1 = pnand %p5491_p12, %p5455_p0  ;;  %p5500_p5 = por %p5499_p4, %p5498_p8 }
  0x27   : > { %p5494_p2 = pneg %p5493_p1 }
  0x29   : > { %p5501_p3 = pnand %p5500_p5, %p5494_p2 }
  0x2b   : > { %5504 = shalt.err (!%p5501_p3)
}
  0x2c   : > { %5315 = dma.hbm_to_vmem [thread:$0]  (!%p5721_p13), %s7824_s3, 18432, %s178_s13, [#allocation9], %s5617_s15, %s5617_s15, %s5618_s16  }
  0x2d   : > { %196 = sbr.rel (%p5709_p10) target bundleno = 1114 (0x45a), region = 36 }
  0x32   : > { %5578 = dma.done.wait (%p5713_p11), [#allocation6], 18432  }
  0x33   : > { %5580 = vsyncadd (%p5713_p11), [#allocation6], 4294948864 }
  0x34   : > { %5582 = dma.done.wait (%p5713_p11), [#allocation9], 18432  }
  0x35   : > { %5584 = vsyncadd (%p5713_p11), [#allocation9], 4294948864  ;;  %s218_s9 = sand.u32 1, %s5597_s19   ;;  %s4499_s10 = smul.u32 10240, %s5605_s21 }
  0x36   : > { %s4487_s7 = sshll.u32 %s218_s9, 8  ;;  %s5619_s14 = smov [#allocation2]  }
  0x37   : > { %s232_s13 = scalar_lea.hbm %s7821_s0, %s4499_s10  ;;  %s243_s15 = sshll.u32 %s5619_s14, 4  ;;  %s244_s15 = int_to_ptr.vmem [resolvable:$true] %s243_s15 }
  0x38   : > { %s5505_s16 = scalar_lea.hbm %s232_s13, 10240  ;;  %s5507_s8 = scalar_lea.hbm %s7821_s0, 20480 }
  0x39   : > { %p5506_p4 = scmp.ne.s32.totalorder %s232_s13, %s5505_s16  ;;  %p5508_p8 = scmp.lt.s32.totalorder %s232_s13, %s7821_s0 }
  0x3a   : > { %p5509_p10 = scmp.lt.s32.totalorder %s5507_s8, %s5505_s16 }
  0x3c   : > { %p5510_p11 = por %p5509_p10, %p5508_p8 }
  0x3e   : > { %p5511_p13 = pnand %p5510_p11, %p5506_p4 }
  0x40   : > { %5514 = shalt.err (!%p5511_p13)  }
  0x41   : > { %s5515_s29 = scalar_lea.vmem %s244_s15, 10240  ;;  %s5519_s10 = scalar_lea.vmem %s244_s15, 20480 }
  0x42   : > { %p5516_p0 = scmp.ne.s32.totalorder %s244_s15, %s5515_s29  ;;  %p5520_p6 = scmp.lt.s32.totalorder %s244_s15, %s244_s15 }
  0x43   : > { %p5521_p7 = scmp.lt.s32.totalorder %s5519_s10, %s5515_s29 }
  0x45   : > { %p5522_p9 = por %p5521_p7, %p5520_p6 }
  0x47   : > { %p5523_p12 = pnand %p5522_p9, %p5516_p0 }
  0x49   : > { %5526 = shalt.err (!%p5523_p12)  }
  0x4a   : > { %246 = dma.hbm_to_vmem [thread:$0]  %s232_s13, 10240, %s244_s15, [#allocation3] }
  0x4b   : > { %s5766_s11 = scalar_lea.vmem [#allocation10], %s4487_s7 }
  0x4c   : > { %5585 = dma.done.wait [#allocation3], 10240 }
  0x4d   : > { %5586 = vsyncadd [#allocation3], 4294957056  ;;  %v7828_v0 = vmov 0.0   ;;  %v625_v1 = vld [vmem:[#allocation5 + $0x1f8] sm:$0xff]  ;;  %v624_v3 = vld [vmem:[#allocation5 + $0x1f0] sm:$0xff]  ;;  %vm414_vm0 = vcmask 1040384  }
  0x4e   : > { %658 = vmatprep.subr.mxu0 %v7828_v0  ;;  %2561 = vst [vmem:[#allocation4 + $0x7] sm:$0x1] %v7828_v0  ;;  %2562 = vst [vmem:[#allocation4 + $0x27] sm:$0x1] %v7828_v0  ;;  %v657_v2 = vld [vmem:[#allocation5 + $0x2f8] sm:$0xff]  ;;  %v656_v4 = vld [vmem:[#allocation5 + $0x2f0] sm:$0xff] }
  0x4f   : > { %2563 = vst [vmem:[#allocation4 + $0x47] sm:$0x1] %v7828_v0  ;;  %2564 = vst [vmem:[#allocation4 + $0x67] sm:$0x1] %v7828_v0  ;;  %659 = vmatpush1.msra.mxu0 %v625_v1  ;;  %4801 = vmatprep.subr.mxu1 %v657_v2  ;;  %v623_v5 = vld [vmem:[#allocation5 + $0x1e8] sm:$0xff]  ;;  %v622_v7 = vld [vmem:[#allocation5 + $0x1e0] sm:$0xff] }
  0x50   : > { %2565 = vst [vmem:[#allocation4 + $0x87] sm:$0x1] %v7828_v0  ;;  %2566 = vst [vmem:[#allocation4 + $0xa7] sm:$0x1] %v7828_v0  ;;  %660 = vmatprep.subr.mxu0 %v7828_v0  ;;  %4802 = vmatpush3.msra.mxu1 %v657_v2  ;;  %v655_v6 = vld [vmem:[#allocation5 + $0x2e8] sm:$0xff]  ;;  %v654_v8 = vld [vmem:[#allocation5 + $0x2e0] sm:$0xff] }
  0x51   : > { %2567 = vst [vmem:[#allocation4 + $0xc7] sm:$0x1] %v7828_v0  ;;  %2568 = vst [vmem:[#allocation4 + $0xe7] sm:$0x1] %v7828_v0  ;;  %661 = vmatpush1.msra.mxu0 %v624_v3  ;;  %4803 = vmatprep.subr.mxu1 %v656_v4  ;;  %v621_v9 = vld [vmem:[#allocation5 + $0x1d8] sm:$0xff]  ;;  %v620_v11 = vld [vmem:[#allocation5 + $0x1d0] sm:$0xff] }
  0x52   : > { %2569 = vst [vmem:[#allocation4 + $0x107] sm:$0x1] %v7828_v0  ;;  %2570 = vst [vmem:[#allocation4 + $0x127] sm:$0x1] %v7828_v0  ;;  %662 = vmatprep.subr.mxu0 %v7828_v0  ;;  %4804 = vmatpush3.msra.mxu1 %v656_v4  ;;  %v653_v10 = vld [vmem:[#allocation5 + $0x2d8] sm:$0xff]  ;;  %v652_v12 = vld [vmem:[#allocation5 + $0x2d0] sm:$0xff] }
  0x53   : > { %2571 = vst [vmem:[#allocation4 + $0x147] sm:$0x1] %v7828_v0  ;;  %2572 = vst [vmem:[#allocation4 + $0x167] sm:$0x1] %v7828_v0  ;;  %663 = vmatpush1.msra.mxu0 %v623_v5  ;;  %4805 = vmatprep.subr.mxu1 %v655_v6  ;;  %v619_v13 = vld [vmem:[#allocation5 + $0x1c8] sm:$0xff]  ;;  %v618_v15 = vld [vmem:[#allocation5 + $0x1c0] sm:$0xff] }
  0x54   : > { %2573 = vst [vmem:[#allocation4 + $0x187] sm:$0x1] %v7828_v0  ;;  %2574 = vst [vmem:[#allocation4 + $0x1a7] sm:$0x1] %v7828_v0  ;;  %664 = vmatprep.subr.mxu0 %v7828_v0  ;;  %4806 = vmatpush3.msra.mxu1 %v655_v6  ;;  %v651_v14 = vld [vmem:[#allocation5 + $0x2c8] sm:$0xff]  ;;  %v650_v16 = vld [vmem:[#allocation5 + $0x2c0] sm:$0xff] }
  0x55   : > { %2575 = vst [vmem:[#allocation4 + $0x1c7] sm:$0x1] %v7828_v0  ;;  %2576 = vst [vmem:[#allocation4 + $0x1e7] sm:$0x1] %v7828_v0  ;;  %665 = vmatpush1.msra.mxu0 %v622_v7  ;;  %4807 = vmatprep.subr.mxu1 %v654_v8  ;;  %v617_v17 = vld [vmem:[#allocation5 + $0x1b8] sm:$0xff]  ;;  %v616_v19 = vld [vmem:[#allocation5 + $0x1b0] sm:$0xff] }
  0x56   : > { %2577 = vst [vmem:[#allocation4 + $0x207] sm:$0x1] %v7828_v0  ;;  %2579 = vst [vmem:[#allocation4 + $0x18] sm:$0x1] %v7828_v0  ;;  %666 = vmatprep.subr.mxu0 %v7828_v0  ;;  %4808 = vmatpush3.msra.mxu1 %v654_v8  ;;  %v649_v18 = vld [vmem:[#allocation5 + $0x2b8] sm:$0xff]  ;;  %v648_v20 = vld [vmem:[#allocation5 + $0x2b0] sm:$0xff] }
  0x57   : > { %2580 = vst [vmem:[#allocation4 + $0x38] sm:$0x1] %v7828_v0  ;;  %2581 = vst [vmem:[#allocation4 + $0x58] sm:$0x1] %v7828_v0  ;;  %667 = vmatpush1.msra.mxu0 %v621_v9  ;;  %4809 = vmatprep.subr.mxu1 %v653_v10  ;;  %v615_v21 = vld [vmem:[#allocation5 + $0x1a8] sm:$0xff]  ;;  %v614_v23 = vld [vmem:[#allocation5 + $0x1a0] sm:$0xff] }
  0x58   : > { %2582 = vst [vmem:[#allocation4 + $0x78] sm:$0x1] %v7828_v0  ;;  %2583 = vst [vmem:[#allocation4 + $0x98] sm:$0x1] %v7828_v0  ;;  %668 = vmatprep.subr.mxu0 %v7828_v0  ;;  %4810 = vmatpush3.msra.mxu1 %v653_v10  ;;  %v647_v22 = vld [vmem:[#allocation5 + $0x2a8] sm:$0xff]  ;;  %v646_v24 = vld [vmem:[#allocation5 + $0x2a0] sm:$0xff] }
  0x59   : > { %2584 = vst [vmem:[#allocation4 + $0xb8] sm:$0x1] %v7828_v0  ;;  %2585 = vst [vmem:[#allocation4 + $0xd8] sm:$0x1] %v7828_v0  ;;  %669 = vmatpush1.msra.mxu0 %v620_v11  ;;  %4811 = vmatprep.subr.mxu1 %v652_v12  ;;  %v613_v25 = vld [vmem:[#allocation5 + $0x198] sm:$0xff]  ;;  %v612_v27 = vld [vmem:[#allocation5 + $0x190] sm:$0xff] }
  0x5a   : > { %2586 = vst [vmem:[#allocation4 + $0xf8] sm:$0x1] %v7828_v0  ;;  %2587 = vst [vmem:[#allocation4 + $0x118] sm:$0x1] %v7828_v0  ;;  %670 = vmatprep.subr.mxu0 %v7828_v0  ;;  %4812 = vmatpush3.msra.mxu1 %v652_v12  ;;  %v645_v26 = vld [vmem:[#allocation5 + $0x298] sm:$0xff]  ;;  %v644_v28 = vld [vmem:[#allocation5 + $0x290] sm:$0xff] }
  0x5b   : > { %2588 = vst [vmem:[#allocation4 + $0x138] sm:$0x1] %v7828_v0  ;;  %2589 = vst [vmem:[#allocation4 + $0x158] sm:$0x1] %v7828_v0  ;;  %671 = vmatpush1.msra.mxu0 %v619_v13  ;;  %4813 = vmatprep.subr.mxu1 %v651_v14  ;;  %v611_v29 = vld [vmem:[#allocation5 + $0x188] sm:$0xff]  ;;  %v610_v31 = vld [vmem:[#allocation5 + $0x180] sm:$0xff] }
  0x5c   : > { %2590 = vst [vmem:[#allocation4 + $0x178] sm:$0x1] %v7828_v0  ;;  %2591 = vst [vmem:[#allocation4 + $0x198] sm:$0x1] %v7828_v0  ;;  %672 = vmatprep.subr.mxu0 %v7828_v0  ;;  %4814 = vmatpush3.msra.mxu1 %v651_v14  ;;  %v643_v30 = vld [vmem:[#allocation5 + $0x288] sm:$0xff]  ;;  %v642_v32 = vld [vmem:[#allocation5 + $0x280] sm:$0xff] }
  0x5d   : > { %2592 = vst [vmem:[#allocation4 + $0x1b8] sm:$0x1] %v7828_v0  ;;  %2593 = vst [vmem:[#allocation4 + $0x1d8] sm:$0x1] %v7828_v0  ;;  %673 = vmatpush1.msra.mxu0 %v618_v15  ;;  %4815 = vmatprep.subr.mxu1 %v650_v16  ;;  %v5819_v33 = vld [vmem:[#allocation2 + $0x48] sm:$0xff]  ;;  %v641_v34 = vld [vmem:[#allocation5 + $0x278] sm:$0xff] }
  0x5e   : > { %2594 = vst [vmem:[#allocation4 + $0x1f8] sm:$0x1] %v7828_v0  ;;  %2595 = vst [vmem:[#allocation4 + $0x218] sm:$0x1] %v7828_v0  ;;  %674 = vmatprep.subr.mxu0 %v7828_v0  ;;  %4816 = vmatpush3.msra.mxu1 %v650_v16  ;;  %v5821_v35 = vld [vmem:[#allocation2 + $0x50] sm:$0xff]  ;;  %v5824_v37 = vld [vmem:[#allocation2 + $0x68] sm:$0xff] }
  0x5f   : > { %2596 = vst [vmem:[#allocation4 + $0x238] sm:$0x1] %v7828_v0  ;;  %675 = vmatpush1.msra.mxu0 %v617_v17  ;;  %4817 = vmatprep.subr.mxu1 %v649_v18  ;;  %v640_v36 = vld [vmem:[#allocation5 + $0x270] sm:$0xff]  ;;  %v639_v38 = vld [vmem:[#allocation5 + $0x268] sm:$0xff]  ;;  %v576_v39 = vld [vmem:[#allocation5 + $0x78] sm:$0xff]  ;;  %vm1656_vm1 = vcmask 1046528  }
  0x60   : > { %676 = vmatprep.subr.mxu0 %v7828_v0  ;;  %4818 = vmatpush3.msra.mxu1 %v649_v18  ;;  %v5830_v40 = vld [vmem:[#allocation2 + $0x70] sm:$0xff]  ;;  %v638_v41 = vld [vmem:[#allocation5 + $0x260] sm:$0xff]  ;;  %v5833_v42 = vld [vmem:[#allocation2 + $0x88] sm:$0xff]  ;;  %s4500_s17 = sshll.u32 %s5605_s21, 12  ;;  %s4363_s24 = sshll.u32 %s5766_s11, 4  ;;  %s7771_s24 = int_to_ptr.vmem [resolvable:$true] %s4363_s24 }
  0x61   : > { %677 = vmatpush1.msra.mxu0 %v616_v19  ;;  %4819 = vmatprep.subr.mxu1 %v648_v20  ;;  %v637_v43 = vld [vmem:[#allocation5 + $0x258] sm:$0xff]  ;;  %v575_v44 = vld [vmem:[#allocation5 + $0x70] sm:$0xff]  ;;  %v5843_v47 = vld [vmem:[#allocation2 + $0xa8] sm:$0xff]  ;;  %s7769_s27 = scalar_lea.hbm %s7826_s5, %s4500_s17  ;;  %s7776_s29 = scalar_lea.sflag [#allocation7], %s218_s9 }
  0x62   : > { %678 = vmatprep.subr.mxu0 %v7828_v0  ;;  %4820 = vmatpush3.msra.mxu1 %v648_v20  ;;  %v5839_v45 = vld [vmem:[#allocation2 + $0x90] sm:$0xff]  ;;  %v635_v48 = vld [vmem:[#allocation5 + $0x248] sm:$0xff]  ;;  %v634_v51 = vld [vmem:[#allocation5 + $0x240] sm:$0xff]  ;;  %s5527_s21 = scalar_lea.vmem %s7771_s24, 4096  ;;  %p7880_p2 = scmp.ne.s32.totalorder %s7830_s28, 0 }
  0x63   : > { %679 = vmatpush1.msra.mxu0 %v615_v21  ;;  %4821 = vmatprep.subr.mxu1 %v647_v22  ;;  %v636_v46 = vld [vmem:[#allocation5 + $0x250] sm:$0xff]  ;;  %v574_v49 = vld [vmem:[#allocation5 + $0x68] sm:$0xff]  ;;  %v573_v53 = vld [vmem:[#allocation5 + $0x60] sm:$0xff]  ;;  %p5528_p1 = scmp.ne.s32.totalorder %s7771_s24, %s5527_s21  ;;  %s5621_s10 = smov [#allocation10]  }
  0x64   : > { %680 = vmatprep.subr.mxu0 %v7828_v0  ;;  %4822 = vmatpush3.msra.mxu1 %v647_v22  ;;  %v5848_v50 = vld [vmem:[#allocation2 + $0xb0] sm:$0xff]  ;;  %v5852_v52 = vld [vmem:[#allocation2 + $0xc8] sm:$0xff]  ;;  %v633_v54 = vld [vmem:[#allocation5 + $0x238] sm:$0xff]  ;;  %s5531_s7 = sshll.u32 %s5621_s10, 4  ;;  %s5532_s7 = int_to_ptr.vmem [resolvable:$false] %s5531_s7 }
  0x65   : > { %681 = vmatpush1.msra.mxu0 %v614_v23  ;;  %4823 = vmatprep.subr.mxu1 %v646_v24  ;;  %v5857_v55 = vld [vmem:[#allocation2 + $0xd0] sm:$0xff]  ;;  %v572_v56 = vld [vmem:[#allocation5 + $0x58] sm:$0xff]  ;;  %v5863_v58 = vld [vmem:[#allocation2 + $0xe8] sm:$0xff]  ;;  %p5529_p5 = pnand %p5528_p1, %p7880_p2  ;;  %s5533_s12 = scalar_lea.vmem %s5532_s7, 8192 }
  0x66   : > { %682 = vmatprep.subr.mxu0 %v7828_v0  ;;  %4824 = vmatpush3.msra.mxu1 %v646_v24  ;;  %v632_v57 = vld [vmem:[#allocation5 + $0x230] sm:$0xff]  ;;  %v631_v60 = vld [vmem:[#allocation5 + $0x228] sm:$0xff]  ;;  %v630_v63 = vld [vmem:[#allocation5 + $0x220] sm:$0xff]  ;;  %p5534_p4 = scmp.lt.s32.totalorder %s7771_s24, %s5532_s7  ;;  %p5535_p8 = scmp.lt.s32.totalorder %s5533_s12, %s5527_s21 }
  0x67   : > { %683 = vmatpush1.msra.mxu0 %v613_v25  ;;  %4825 = vmatprep.subr.mxu1 %v645_v26  ;;  %v571_v59 = vld [vmem:[#allocation5 + $0x50] sm:$0xff]  ;;  %v570_v62 = vld [vmem:[#allocation5 + $0x48] sm:$0xff]  ;;  %v569_v2 = vld [vmem:[#allocation5 + $0x40] sm:$0xff]  ;;  %p5530_p3 = pneg %p5529_p5 }
  0x68   : > { %684 = vmatprep.subr.mxu0 %v7828_v0  ;;  %4826 = vmatpush3.msra.mxu1 %v645_v26  ;;  %v5867_v61 = vld [vmem:[#allocation2 + $0xf0] sm:$0xff]  ;;  %v5873_v1 = vld [vmem:[#allocation2 + $0x108] sm:$0xff]  ;;  %v629_v3 = vld [vmem:[#allocation5 + $0x218] sm:$0xff]  ;;  %p5536_p10 = por %p5535_p8, %p5534_p4 }
  0x69   : > { %685 = vmatpush1.msra.mxu0 %v612_v27  ;;  %4827 = vmatprep.subr.mxu1 %v644_v28  ;;  %v5877_v4 = vld [vmem:[#allocation2 + $0x110] sm:$0xff]  ;;  %v568_v5 = vld [vmem:[#allocation5 + $0x38] sm:$0xff]  ;;  %v5883_v7 = vld [vmem:[#allocation2 + $0x128] sm:$0xff] }
  0x6a   : > { %686 = vmatprep.subr.mxu0 %v7828_v0  ;;  %4828 = vmatpush3.msra.mxu1 %v644_v28  ;;  %v628_v6 = vld [vmem:[#allocation5 + $0x210] sm:$0xff]  ;;  %v627_v9 = vld [vmem:[#allocation5 + $0x208] sm:$0xff]  ;;  %v626_v12 = vld [vmem:[#allocation5 + $0x200] sm:$0xff]  ;;  %p5537_p11 = pnand %p5536_p10, %p5530_p3 }
  0x6b   : > { %687 = vmatpush1.msra.mxu0 %v611_v29  ;;  %4829 = vmatprep.subr.mxu1 %v643_v30  ;;  %v567_v8 = vld [vmem:[#allocation5 + $0x30] sm:$0xff]  ;;  %v566_v11 = vld [vmem:[#allocation5 + $0x28] sm:$0xff]  ;;  %v565_v16 = vld [vmem:[#allocation5 + $0x20] sm:$0xff] }
  0x6c   : > { %688 = vmatprep.subr.mxu0 %v7828_v0  ;;  %4830 = vmatpush3.msra.mxu1 %v643_v30  ;;  %v5887_v10 = vld [vmem:[#allocation2 + $0x130] sm:$0xff]  ;;  %v5891_v13 = vld [vmem:[#allocation2 + $0x28] sm:$0xff]  ;;  %v608_v17 = vld [vmem:[#allocation5 + $0x178] sm:$0xff] }
  0x6d   : > { %689 = vmatpush1.msra.mxu0 %v610_v31  ;;  %4831 = vmatprep.subr.mxu1 %v642_v32  ;;  %v5895_v14 = vld [vmem:[#allocation2 + $0x8] sm:$0xff]  ;;  %v5901_v18 = vld [vmem:[#allocation2 + $0x150] sm:$0xff]  ;;  %v564_v19 = vld [vmem:[#allocation5 + $0x18] sm:$0xff] }
  0x6e   : > { %690 = vmatprep.subr.mxu0 %v7828_v0  ;;  %4832 = vmatpush3.msra.mxu1 %v642_v32  ;;  %v5898_v15 = vld [vmem:[#allocation2 + $0x148] sm:$0xff]  ;;  %v5906_v20 = vld [vmem:[#allocation2 + $0x30] sm:$0xff]  ;;  %v561_v27 = vld [vmem:[#allocation5] sm:$0xff] }
  0x6f   : > { %4833 = vmatprep.mubr.f32.mxu1 %v5819_v33  ;;  %691 = vmatpush2.msra.mxu0 %v641_v34  ;;  %v5909_v21 = vld [vmem:[#allocation2 + $0x10] sm:$0xff]  ;;  %v5912_v22 = vld [vmem:[#allocation2 + $0x168] sm:$0xff]  ;;  %v592_v30 = vld [vmem:[#allocation5 + $0xf8] sm:$0xff] }
  0x70   : > { %4834 = vmatmul.mubr.f32.vlgmr.msra.gmra.mxu1 %v5821_v35  ;;  %692 = vmatprep.subr.mxu0 %v7828_v0  ;;  %v563_v23 = vld [vmem:[#allocation5 + $0x10] sm:$0xff]  ;;  %v562_v25 = vld [vmem:[#allocation5 + $0x8] sm:$0xff] }
  0x71   : > { %693 = vmatpush2.msra.mxu0 %v640_v36  ;;  %4836 = vmatprep.mubr.f32.mxu1 %v5824_v37  ;;  %v5915_v24 = vld [vmem:[#allocation2 + $0x170] sm:$0xff]  ;;  %v5922_v26 = vld [vmem:[#allocation2 + $0x188] sm:$0xff] }
  0x72   : > { %694 = vmatprep.subr.mxu0 %v7828_v0  ;;  %1148 = vmatprep.subr.mxu1 %v7828_v0  ;;  %v5925_v28 = vld [vmem:[#allocation2 + $0x190] sm:$0xff]  ;;  %v5932_v31 = vld [vmem:[#allocation2 + $0x1a8] sm:$0xff] }
  0x73   : > { %695 = vmatpush2.msra.mxu0 %v639_v38  ;;  %1149 = vmatpush1.msra.mxu1 %v576_v39  ;;  %v607_v29 = vld [vmem:[#allocation5 + $0x170] sm:$0xff]  ;;  %v590_v36 = vld [vmem:[#allocation5 + $0xe8] sm:$0xff]  ;;  %v589_v39 = vld [vmem:[#allocation5 + $0xe0] sm:$0xff] }
  0x74   : > { %4837 = vmatmul.mubr.f32.gmra.mxu1 %v5830_v40  ;;  %696 = vmatprep.subr.mxu0 %v7828_v0  ;;  %v591_v32 = vld [vmem:[#allocation5 + $0xf0] sm:$0xff]  ;;  %v5942_v38 = vld [vmem:[#allocation2 + $0x1c8] sm:$0xff] }
  0x75   : > { %697 = vmatpush2.msra.mxu0 %v638_v41  ;;  %4839 = vmatprep.mubr.f32.mxu1 %v5833_v42  ;;  %v5935_v34 = vld [vmem:[#allocation2 + $0x1b0] sm:$0xff] }
  0x76   : > { %698 = vmatprep.subr.mxu0 %v7828_v0  ;;  %1150 = vmatprep.subr.mxu1 %v7828_v0  ;;  %v5945_v41 = vld [vmem:[#allocation2 + $0x1d0] sm:$0xff] }
  0x77   : > { %699 = vmatpush2.msra.mxu0 %v637_v43  ;;  %1151 = vmatpush1.msra.mxu1 %v575_v44  ;;  %v588_v43 = vld [vmem:[#allocation5 + $0xd8] sm:$0xff]  ;;  %v606_v44 = vld [vmem:[#allocation5 + $0x168] sm:$0xff] }
  0x78   : > { %4840 = vmatmul.mubr.f32.gmra.mxu1 %v5839_v45  ;;  %700 = vmatprep.subr.mxu0 %v7828_v0 }
  0x79   : > { %701 = vmatpush2.msra.mxu0 %v636_v46  ;;  %4842 = vmatprep.mubr.f32.mxu1 %v5843_v47  ;;  %v5952_v46 = vld [vmem:[#allocation2 + $0x1e8] sm:$0xff] }
  0x7a   : > { %702 = vmatprep.subr.mxu0 %v7828_v0  ;;  %1152 = vmatprep.subr.mxu1 %v7828_v0 }
  0x7b   : > { %703 = vmatpush2.msra.mxu0 %v635_v48  ;;  %1153 = vmatpush1.msra.mxu1 %v574_v49  ;;  %v587_v48 = vld [vmem:[#allocation5 + $0xd0] sm:$0xff] }
  0x7c   : > { %4843 = vmatmul.mubr.f32.gmra.mxu1 %v5848_v50  ;;  %704 = vmatprep.subr.mxu0 %v7828_v0  ;;  %v5956_v49 = vld [vmem:[#allocation2 + $0x1f0] sm:$0xff] }
  0x7d   : > { %705 = vmatpush2.msra.mxu0 %v634_v51  ;;  %1154 = vmatprep.subr.mxu1 %v7828_v0  ;;  %v586_v51 = vld [vmem:[#allocation5 + $0xc8] sm:$0xff] }
  0x7e   : > { %706 = vmatprep.subr.mxu0 %v7828_v0  ;;  %4845 = vmatprep.mubr.f32.mxu1 %v5852_v52 }
  0x7f   : > { %1155 = vmatpush1.msra.mxu1 %v573_v53  ;;  %707 = vmatpush2.msra.mxu0 %v633_v54  ;;  %v5960_v53 = vld [vmem:[#allocation2 + $0x208] sm:$0xff]  ;;  %v585_v54 = vld [vmem:[#allocation5 + $0xc0] sm:$0xff] }
  0x80   : > { %4846 = vmatmul.mubr.f32.gmra.mxu1 %v5857_v55  ;;  %1156 = vmatprep.subr.mxu1 %v7828_v0 }
  0x81   : > { %708 = vmatprep.subr.mxu0 %v7828_v0  ;;  %1157 = vmatpush1.msra.mxu1 %v572_v56  ;;  %v5965_v56 = vld [vmem:[#allocation2 + $0x210] sm:$0xff] }
  0x82   : > { %709 = vmatpush2.msra.mxu0 %v632_v57  ;;  %1158 = vmatprep.subr.mxu1 %v7828_v0  ;;  %v584_v57 = vld [vmem:[#allocation5 + $0xb8] sm:$0xff] }
  0x83   : > { %710 = vmatprep.subr.mxu0 %v7828_v0  ;;  %4848 = vmatprep.mubr.f32.mxu1 %v5863_v58 }
  0x84   : > { %1159 = vmatpush1.msra.mxu1 %v571_v59  ;;  %711 = vmatpush2.msra.mxu0 %v631_v60  ;;  %v605_v59 = vld [vmem:[#allocation5 + $0x160] sm:$0xff]  ;;  %v5972_v60 = vld [vmem:[#allocation2 + $0x228] sm:$0xff] }
  0x85   : > { %4849 = vmatmul.mubr.f32.gmra.mxu1 %v5867_v61  ;;  %1160 = vmatprep.subr.mxu1 %v7828_v0 }
  0x86   : > { %712 = vmatprep.subr.mxu0 %v7828_v0  ;;  %1161 = vmatpush1.msra.mxu1 %v570_v62  ;;  %v583_v62 = vld [vmem:[#allocation5 + $0xb0] sm:$0xff] }
  0x87   : > { %713 = vmatpush2.msra.mxu0 %v630_v63  ;;  %1162 = vmatprep.subr.mxu1 %v7828_v0  ;;  %v5976_v63 = vld [vmem:[#allocation2 + $0x230] sm:$0xff] }
  0x88   : > { %714 = vmatprep.subr.mxu0 %v7828_v0  ;;  %4851 = vmatprep.mubr.f32.mxu1 %v5873_v1 }
  0x89   : > { %1163 = vmatpush1.msra.mxu1 %v569_v2  ;;  %715 = vmatpush2.msra.mxu0 %v629_v3  ;;  %v582_v2 = vld [vmem:[#allocation5 + $0xa8] sm:$0xff] }
  0x8a   : > { %4852 = vmatmul.mubr.f32.gmra.mxu1 %v5877_v4  ;;  %1164 = vmatprep.subr.mxu1 %v7828_v0  ;;  %v5982_v3 = vld [vmem:[#allocation2 + $0x248] sm:$0xff] }
  0x8b   : > { %716 = vmatprep.subr.mxu0 %v7828_v0  ;;  %1165 = vmatpush1.msra.mxu1 %v568_v5  ;;  %v581_v5 = vld [vmem:[#allocation5 + $0xa0] sm:$0xff] }
  0x8c   : > { %717 = vmatpush2.msra.mxu0 %v628_v6  ;;  %1166 = vmatprep.subr.mxu1 %v7828_v0  ;;  %v5985_v6 = vld [vmem:[#allocation2 + $0x250] sm:$0xff] }
  0x8d   : > { %718 = vmatprep.subr.mxu0 %v7828_v0  ;;  %4854 = vmatprep.mubr.f32.mxu1 %v5883_v7 }
  0x8e   : > { %1167 = vmatpush1.msra.mxu1 %v567_v8  ;;  %719 = vmatpush2.msra.mxu0 %v627_v9  ;;  %v580_v8 = vld [vmem:[#allocation5 + $0x98] sm:$0xff]  ;;  %v284_v9 = vld [vmem:[#allocation2 + $0x20] sm:$0xff] }
  0x8f   : > { %4855 = vmatmul.mubr.f32.gmra.mxu1 %v5887_v10  ;;  %1168 = vmatprep.subr.mxu1 %v7828_v0 }
  0x90   : > { %720 = vmatprep.subr.mxu0 %v7828_v0  ;;  %1169 = vmatpush1.msra.mxu1 %v566_v11  ;;  %v280_v11 = vld [vmem:[#allocation2] sm:$0xff] }
  0x91   : > { %721 = vmatpush2.msra.mxu0 %v626_v12  ;;  %722 = vmatprep.mubr.f32.mxu0 %v5891_v13  ;;  %v357_v12 = vld [vmem:[#allocation2 + $0x268] sm:$0xff] }
  0x92   : > { %1170 = vmatprep.subr.mxu1 %v7828_v0  ;;  %723 = vmatmul.mubr.f32.vlgmr.msra.gmra.mxu0 %v5895_v14 }
  0x93   : > { %4857 = vmatprep.mubr.f32.mxu1 %v5898_v15  ;;  %1171 = vmatpush1.msra.mxu1 %v565_v16  ;;  %v579_v16 = vld [vmem:[#allocation5 + $0x90] sm:$0xff] }
  0x94   : > { %4887 = vmatprep.subr.mxu0 %v608_v17  ;;  %4858 = vmatmul.mubr.f32.gmra.mxu1 %v5901_v18 }
  0x95   : > { %1172 = vmatprep.subr.mxu1 %v7828_v0  ;;  %4888 = vmatpush3.msra.mxu0 %v608_v17  ;;  %v604_v17 = vld [vmem:[#allocation5 + $0x158] sm:$0xff] }
  0x96   : > { %1173 = vmatpush1.msra.mxu1 %v564_v19  ;;  %727 = vmatprep.mubr.f32.mxu0 %v5906_v20  ;;  %v358_v19 = vld [vmem:[#allocation2 + $0x270] sm:$0xff] }
  0x97   : > { %1174 = vmatprep.subr.mxu1 %v7828_v0  ;;  %728 = vmatmul.mubr.f32.gmra.mxu0 %v5909_v21 }
  0x98   : > { %4860 = vmatprep.mubr.f32.mxu1 %v5912_v22  ;;  %1175 = vmatpush1.msra.mxu1 %v563_v23  ;;  %v420_v23 = vrot.slane %v284_v9, 7 }
  0x99   : > { %4861 = vmatmul.mubr.f32.gmra.mxu1 %v5915_v24  ;;  %1176 = vmatprep.subr.mxu1 %v7828_v0 }
  0x9a   : > { %1177 = vmatpush1.msra.mxu1 %v562_v25  ;;  %732 = vmatprep.mubr.f32.mxu0 %v5819_v33  ;;  %v421_v25 = vrot.slane %v5891_v13, 7 }
  0x9b   : > { %1178 = vmatprep.subr.mxu1 %v7828_v0  ;;  %733 = vmatmul.mubr.f32.gmra.mxu0 %v5891_v13  ;;  %v577_v13 = vld [vmem:[#allocation5 + $0x80] sm:$0xff] }
  0x9c   : > { %4863 = vmatprep.mubr.f32.mxu1 %v5922_v26  ;;  %1179 = vmatpush1.msra.mxu1 %v561_v27  ;;  %v416_v27 = vrot.slane %v5895_v14, 7 }
  0x9d   : > { %4864 = vmatmul.mubr.f32.gmra.mxu1 %v5925_v28  ;;  %1180 = vmatprep.subr.mxu1 %v7828_v0 }
  0x9e   : > { %4889 = vmatprep.subr.mxu0 %v607_v29  ;;  %1181 = vmatpush2.msra.mxu1 %v592_v30  ;;  %v578_v30 = vld [vmem:[#allocation5 + $0x88] sm:$0xff] }
  0x9f   : > { %4890 = vmatpush3.msra.mxu0 %v607_v29  ;;  %737 = vmatprep.mubr.f32.mxu0 %v5821_v35  ;;  %v415_v29 = vrot.slane %v280_v11, 7 }
  0xa0   : > { %1182 = vmatprep.subr.mxu1 %v7828_v0  ;;  %738 = vmatmul.mubr.f32.gmra.mxu0 %v5906_v20 }
  0xa1   : > { %4866 = vmatprep.mubr.f32.mxu1 %v5932_v31  ;;  %1183 = vmatpush2.msra.mxu1 %v591_v32  ;;  %v423_v32 = vrot.slane %v5906_v20, 7 }
  0xa2   : > { %4867 = vmatmul.mubr.f32.gmra.mxu1 %v5935_v34  ;;  %1184 = vmatprep.subr.mxu1 %v7828_v0 }
  0xa3   : > { %1185 = vmatpush2.msra.mxu1 %v590_v36  ;;  %742 = vmatprep.mubr.f32.mxu0 %v5824_v37  ;;  %v288_v36 = vld [vmem:[#allocation2 + $0x40] sm:$0xff]  ;;  %v424_v20 = vsel %vm414_vm0, %v421_v25, %v423_v32 }
  0xa4   : > { %1186 = vmatprep.subr.mxu1 %v7828_v0  ;;  %743 = vmatmul.mubr.f32.gmra.mxu0 %v5819_v33  ;;  %v1812_v32 = vld [vmem:[#allocation5 + $0x360] sm:$0xff] }
  0xa5   : > { %4869 = vmatprep.mubr.f32.mxu1 %v5942_v38  ;;  %1187 = vmatpush2.msra.mxu1 %v589_v39  ;;  %v422_v39 = vsel %vm414_vm0, %v420_v23, %v421_v25  ;;  %v433_v23 = vrot.slane %v5830_v40, 7  ;;  %v1813_v25 = vld [vmem:[#allocation5 + $0x368] sm:$0xff] }
  0xa6   : > { %4870 = vmatmul.mubr.f32.gmra.mxu1 %v5945_v41  ;;  %1188 = vmatprep.subr.mxu1 %v7828_v0 }
  0xa7   : > { %1189 = vmatpush2.msra.mxu1 %v588_v43  ;;  %4891 = vmatprep.subr.mxu0 %v606_v44  ;;  %v418_v43 = vrot.slane %v5909_v21, 7 }
  0xa8   : > { %747 = vmatprep.mubr.f32.mxu0 %v5830_v40  ;;  %1190 = vmatprep.subr.mxu1 %v7828_v0 }
  0xa9   : > { %4892 = vmatpush3.msra.mxu0 %v606_v44  ;;  %4872 = vmatprep.mubr.f32.mxu1 %v5952_v46  ;;  %v417_v44 = vsel %vm414_vm0, %v415_v29, %v416_v27 }
  0xaa   : > { %748 = vmatmul.mubr.f32.gmra.mxu0 %v5821_v35  ;;  %1191 = vmatpush2.msra.mxu1 %v587_v48  ;;  %v603_v48 = vld [vmem:[#allocation5 + $0x150] sm:$0xff] }
  0xab   : > { %4873 = vmatmul.mubr.f32.gmra.mxu1 %v5956_v49  ;;  %1192 = vmatprep.subr.mxu1 %v7828_v0 }
  0xac   : > { %1193 = vmatpush2.msra.mxu1 %v586_v51  ;;  %752 = vmatprep.mubr.f32.mxu0 %v5833_v42  ;;  %v425_v51 = vrot.slane %v288_v36, 7 }
  0xad   : > { %1194 = vmatprep.subr.mxu1 %v7828_v0  ;;  %4875 = vmatprep.mubr.f32.mxu1 %v5960_v53 }
  0xae   : > { %753 = vmatmul.mubr.f32.gmra.mxu0 %v5824_v37  ;;  %1195 = vmatpush2.msra.mxu1 %v585_v54  ;;  %v426_v54 = vrot.slane %v5819_v33, 7  ;;  %v292_v33 = vld [vmem:[#allocation2 + $0x60] sm:$0xff] }
  0xaf   : > { %4876 = vmatmul.mubr.f32.gmra.mxu1 %v5965_v56  ;;  %1196 = vmatprep.subr.mxu1 %v7828_v0  ;;  %v430_v11 = vrot.slane %v292_v33, 7  ;;  %v304_v33 = vld [vmem:[#allocation2 + $0xc0] sm:$0xff] }
  0xb0   : > { %1197 = vmatpush2.msra.mxu1 %v584_v57  ;;  %757 = vmatprep.mubr.f32.mxu0 %v5839_v45  ;;  %v419_v57 = vsel %vm414_vm0, %v416_v27, %v418_v43  ;;  %v296_v27 = vld [vmem:[#allocation2 + $0x80] sm:$0xff] }
  0xb1   : > { %1198 = vmatprep.subr.mxu1 %v7828_v0  ;;  %4893 = vmatprep.subr.mxu0 %v605_v59  ;;  %v300_v43 = vld [vmem:[#allocation2 + $0xa0] sm:$0xff] }
  0xb2   : > { %758 = vmatmul.mubr.f32.gmra.mxu0 %v5830_v40  ;;  %4878 = vmatprep.mubr.f32.mxu1 %v5972_v60  ;;  %v435_v40 = vrot.slane %v296_v27, 7 }
  0xb3   : > { %1199 = vmatpush2.msra.mxu1 %v583_v62  ;;  %4894 = vmatpush3.msra.mxu0 %v605_v59  ;;  %v602_v59 = vld [vmem:[#allocation5 + $0x148] sm:$0xff]  ;;  %v6011_v62 = vsel %vm414_vm0, %v425_v51, %v426_v54  ;;  %v441_v51 = vrot.slane %v5843_v47, 7 }
  0xb4   : > { %4879 = vmatmul.mubr.f32.gmra.mxu1 %v5976_v63  ;;  %1200 = vmatprep.subr.mxu1 %v7828_v0 }
  0xb5   : > { %1201 = vmatpush2.msra.mxu1 %v582_v2  ;;  %762 = vmatprep.mubr.f32.mxu0 %v5843_v47  ;;  %v428_v2 = vrot.slane %v5821_v35, 7  ;;  %v431_v35 = vrot.slane %v5824_v37, 7 }
  0xb6   : > { %1202 = vmatprep.subr.mxu1 %v7828_v0  ;;  %763 = vmatmul.mubr.f32.gmra.mxu0 %v5833_v42 }
  0xb7   : > { %4881 = vmatprep.mubr.f32.mxu1 %v5982_v3  ;;  %1203 = vmatpush2.msra.mxu1 %v581_v5  ;;  %v1815_v5 = vld [vmem:[#allocation5 + $0x378] sm:$0xff]  ;;  %v6019_v9 = vsel %vm414_vm0, %v426_v54, %v428_v2  ;;  %v6029_v37 = vsel %vm414_vm0, %v430_v11, %v431_v35  ;;  %v6037_v29 = vsel %vm414_vm0, %v431_v35, %v433_v23  ;;  %v1809_v54 = vld [vmem:[#allocation5 + $0x348] sm:$0xff]  ;;  %v1808_v2 = vld [vmem:[#allocation5 + $0x340] sm:$0xff]  ;;  %v446_v11 = vrot.slane %v5852_v52, 7 }
  0xb8   : > { %4882 = vmatmul.mubr.f32.gmra.mxu1 %v5985_v6  ;;  %1204 = vmatprep.subr.mxu1 %v7828_v0  ;;  %v1806_v35 = vld [vmem:[#allocation5 + $0x330] sm:$0xff]  ;;  %v308_v23 = vld [vmem:[#allocation2 + $0xe0] sm:$0xff] }
  0xb9   : > { %1205 = vmatpush2.msra.mxu1 %v580_v8  ;;  %767 = vmatprep.mubr.f32.mxu0 %v5848_v50  ;;  %v601_v8 = vld [vmem:[#allocation5 + $0x140] sm:$0xff] }
  0xba   : > { %1206 = vmatprep.subr.mxu1 %v7828_v0  ;;  %768 = vmatmul.mubr.f32.gmra.mxu0 %v5839_v45 }
  0xbb   : > { %4884 = vmatprep.mubr.f32.mxu1 %v357_v12  ;;  %1207 = vmatpush2.msra.mxu1 %v579_v16  ;;  %v1814_v12 = vld [vmem:[#allocation5 + $0x370] sm:$0xff]  ;;  %v600_v16 = vld [vmem:[#allocation5 + $0x138] sm:$0xff] }
  0xbc   : > { %4895 = vmatprep.subr.mxu0 %v604_v17  ;;  %4885 = vmatmul.mubr.f32.gmra.mxu1 %v358_v19  ;;  %v1658_v19 = vrot.slane %v5909_v21, 1 }
  0xbd   : > { %1208 = vmatprep.subr.mxu1 %v7828_v0  ;;  %4896 = vmatpush3.msra.mxu0 %v604_v17  ;;  %v1657_v17 = vrot.slane %v5895_v14, 1  ;;  %v599_v14 = vld [vmem:[#allocation5 + $0x130] sm:$0xff] }
  0xbe   : > { %1209 = vmatpush2.msra.mxu1 %v578_v30  ;;  %772 = vmatprep.mubr.f32.mxu0 %v5852_v52  ;;  %v436_v30 = vrot.slane %v5833_v42, 7 }
  0xbf   : > { %1210 = vmatprep.subr.mxu1 %v7828_v0  ;;  %773 = vmatmul.mubr.f32.gmra.mxu0 %v5843_v47  ;;  %v6044_v36 = vsel %vm1656_vm1, %v1657_v17, %v1658_v19  ;;  %v443_v47 = vrot.slane %v5848_v50, 7  ;;  %v1805_v17 = vld [vmem:[#allocation5 + $0x328] sm:$0xff] }
  0xc0   : > { %1211 = vmatpush2.msra.mxu1 %v577_v13  ;;  %1212 = vmatprep.mubr.f32.mxu1 %v422_v39  ;;  %v1811_v13 = vld [vmem:[#allocation5 + $0x358] sm:$0xff]  ;;  %v6051_v42 = vsel %vm414_vm0, %v435_v40, %v436_v30  ;;  %v1804_v40 = vld [vmem:[#allocation5 + $0x320] sm:$0xff] }
  0xc1   : > { %1213 = vmatmul.mubr.f32.vlgmr.msra.gmra.mxu1 %v417_v44  ;;  %777 = vmatprep.mubr.f32.mxu0 %v5857_v55  ;;  %v1810_v44 = vld [vmem:[#allocation5 + $0x350] sm:$0xff] }
  0xc2   : > { %1217 = vmatprep.mubr.f32.mxu1 %v424_v20  ;;  %4897 = vmatprep.subr.mxu0 %v603_v48 }
  0xc3   : > { %778 = vmatmul.mubr.f32.gmra.mxu0 %v5848_v50  ;;  %1848 = vmatprep.subr.mxu1 %v7828_v0  ;;  %v445_v50 = vrot.slane %v304_v33, 7 }
  0xc4   : > { %4898 = vmatpush3.msra.mxu0 %v603_v48  ;;  %782 = vmatprep.mubr.f32.mxu0 %v5863_v58 }
  0xc5   : > { %1218 = vmatmul.mubr.f32.gmra.mxu1 %v419_v57  ;;  %4899 = vmatprep.subr.mxu0 %v602_v59  ;;  %v597_v57 = vld [vmem:[#allocation5 + $0x120] sm:$0xff] }
  0xc6   : > { %1222 = vmatprep.mubr.f32.mxu1 %v6011_v62  ;;  %4900 = vmatpush3.msra.mxu0 %v602_v59 }
  0xc7   : > { %783 = vmatmul.mubr.f32.gmra.mxu0 %v5852_v52  ;;  %1849 = vmatpush1.msra.mxu1 %v1815_v5  ;;  %v1807_v5 = vld [vmem:[#allocation5 + $0x338] sm:$0xff]  ;;  %v448_v52 = vrot.slane %v5857_v55, 7 }
  0xc8   : > { %787 = vmatprep.mubr.f32.mxu0 %v5867_v61  ;;  %4901 = vmatprep.subr.mxu0 %v601_v8 }
  0xc9   : > { %1223 = vmatmul.mubr.f32.gmra.mxu1 %v422_v39  ;;  %4902 = vmatpush3.msra.mxu0 %v601_v8  ;;  %v438_v39 = vrot.slane %v5839_v45, 7  ;;  %v440_v45 = vrot.slane %v300_v43, 7  ;;  %v6079_v8 = vsel %vm414_vm0, %v441_v51, %v443_v47  ;;  %v6098_v27 = vsel %vm414_vm0, %v446_v11, %v448_v52  ;;  %v594_v43 = vld [vmem:[#allocation5 + $0x108] sm:$0xff]  ;;  %v316_v47 = vld [vmem:[#allocation2 + $0x120] sm:$0xff] }
  0xca   : > { %1227 = vmatprep.mubr.f32.mxu1 %v6019_v9  ;;  %1850 = vmatprep.subr.mxu1 %v7828_v0  ;;  %v320_v52 = vld [vmem:[#allocation2 + $0x140] sm:$0xff] }
  0xcb   : > { %788 = vmatmul.mubr.f32.gmra.mxu0 %v5857_v55  ;;  %1851 = vmatpush1.msra.mxu1 %v1814_v12  ;;  %v6061_v48 = vsel %vm414_vm0, %v436_v30, %v438_v39  ;;  %v6070_v59 = vsel %vm414_vm0, %v440_v45, %v441_v51  ;;  %v596_v12 = vld [vmem:[#allocation5 + $0x118] sm:$0xff]  ;;  %v450_v55 = vrot.slane %v308_v23, 7  ;;  %v1802_v39 = vld [vmem:[#allocation5 + $0x310] sm:$0xff]  ;;  %v1801_v45 = vld [vmem:[#allocation5 + $0x308] sm:$0xff] }
  0xcc   : > { %792 = vmatprep.mubr.f32.mxu0 %v5873_v1  ;;  %1852 = vmatprep.subr.mxu1 %v7828_v0  ;;  %v1803_v30 = vld [vmem:[#allocation5 + $0x318] sm:$0xff]  ;;  %v593_v51 = vld [vmem:[#allocation5 + $0x100] sm:$0xff] }
  0xcd   : > { %1228 = vmatmul.mubr.f32.gmra.mxu1 %v424_v20  ;;  %4903 = vmatprep.subr.mxu0 %v600_v16  ;;  %v598_v20 = vld [vmem:[#allocation5 + $0x128] sm:$0xff] }
  0xce   : > { %1232 = vmatprep.mubr.f32.mxu1 %v6029_v37  ;;  %1853 = vmatpush1.msra.mxu1 %v1813_v25  ;;  %v595_v25 = vld [vmem:[#allocation5 + $0x110] sm:$0xff] }
  0xcf   : > { %793 = vmatmul.mubr.f32.gmra.mxu0 %v5863_v58  ;;  %1854 = vmatprep.subr.mxu1 %v7828_v0 }
  0xd0   : > { %797 = vmatprep.mubr.f32.mxu0 %v5877_v4  ;;  %4904 = vmatpush3.msra.mxu0 %v600_v16  ;;  %v6089_v16 = vsel %vm414_vm0, %v445_v50, %v446_v11  ;;  %v1830_v50 = vld [vmem:[#allocation5 + $0x3f0] sm:$0xff]  ;;  %v6143_v11 = vld [vmem:[#allocation5 + $0x478] sm:$0xff] }
  0xd1   : > { %1233 = vmatmul.mubr.f32.gmra.mxu1 %v6011_v62  ;;  %4905 = vmatprep.subr.mxu0 %v599_v14 }
  0xd2   : > { %1237 = vmatprep.mubr.f32.mxu1 %v6037_v29  ;;  %1855 = vmatpush1.msra.mxu1 %v1812_v32 }
  0xd3   : > { %798 = vmatmul.mubr.f32.gmra.mxu0 %v5867_v61  ;;  %1856 = vmatprep.subr.mxu1 %v7828_v0 }
  0xd4   : > { %802 = vmatprep.mubr.f32.mxu0 %v5883_v7  ;;  %1857 = vmatpush1.msra.mxu1 %v1811_v13  ;;  %v312_v13 = vld [vmem:[#allocation2 + $0x100] sm:$0xff] }
  0xd5   : > { %1238 = vmatmul.mubr.f32.gmra.mxu1 %v6019_v9  ;;  %4906 = vmatpush3.msra.mxu0 %v599_v14  ;;  %v451_v14 = vrot.slane %v5863_v58, 7  ;;  %v453_v58 = vrot.slane %v5867_v61, 7  ;;  %v455_v61 = vrot.slane %v312_v13, 7  ;;  %v1824_v13 = vld [vmem:[#allocation5 + $0x3c0] sm:$0xff] }
  0xd6   : > { %1242 = vmatprep.mubr.f32.mxu1 %v6051_v42  ;;  %1858 = vmatprep.subr.mxu1 %v7828_v0 }
  0xd7   : > { %803 = vmatmul.mubr.f32.gmra.mxu0 %v5873_v1  ;;  %1859 = vmatpush1.msra.mxu1 %v1810_v44  ;;  %v6107_v32 = vsel %vm414_vm0, %v450_v55, %v451_v14  ;;  %v6117_v44 = vsel %vm414_vm0, %v451_v14, %v453_v58  ;;  %v1827_v55 = vld [vmem:[#allocation5 + $0x3d8] sm:$0xff]  ;;  %v1826_v14 = vld [vmem:[#allocation5 + $0x3d0] sm:$0xff]  ;;  %v324_v58 = vld [vmem:[#allocation2 + $0x160] sm:$0xff] }
  0xd8   : > { %807 = vmatprep.mubr.f32.mxu0 %v5887_v10  ;;  %1860 = vmatprep.subr.mxu1 %v7828_v0 }
  0xd9   : > { %1243 = vmatmul.mubr.f32.gmra.mxu1 %v6029_v37  ;;  %4907 = vmatprep.subr.mxu0 %v598_v20 }
  0xda   : > { %1247 = vmatprep.mubr.f32.mxu1 %v6061_v48  ;;  %1861 = vmatpush1.msra.mxu1 %v1809_v54 }
  0xdb   : > { %808 = vmatmul.mubr.f32.gmra.mxu0 %v5877_v4  ;;  %1862 = vmatprep.subr.mxu1 %v7828_v0 }
  0xdc   : > { %812 = vmatprep.mubr.f32.mxu0 %v5898_v15  ;;  %4908 = vmatpush3.msra.mxu0 %v598_v20  ;;  %v456_v20 = vrot.slane %v5873_v1, 7  ;;  %v458_v1 = vrot.slane %v5877_v4, 7  ;;  %v460_v4 = vrot.slane %v316_v47, 7 }
  0xdd   : > { %1248 = vmatmul.mubr.f32.gmra.mxu1 %v6037_v29  ;;  %4909 = vmatprep.subr.mxu0 %v597_v57 }
  0xde   : > { %1252 = vmatprep.mubr.f32.mxu1 %v6070_v59  ;;  %1863 = vmatpush1.msra.mxu1 %v1808_v2  ;;  %v6126_v54 = vsel %vm414_vm0, %v455_v61, %v456_v20  ;;  %v1831_v2 = vld [vmem:[#allocation5 + $0x3f8] sm:$0xff]  ;;  %v6135_v33 = vsel %vm414_vm0, %v456_v20, %v458_v1  ;;  %v1822_v20 = vld [vmem:[#allocation5 + $0x3b0] sm:$0xff]  ;;  %v328_v1 = vld [vmem:[#allocation2 + $0x180] sm:$0xff] }
  0xdf   : > { %813 = vmatmul.mubr.f32.gmra.mxu0 %v5883_v7  ;;  %1864 = vmatprep.subr.mxu1 %v7828_v0  ;;  %v1823_v61 = vld [vmem:[#allocation5 + $0x3b8] sm:$0xff] }
  0xe0   : > { %817 = vmatprep.mubr.f32.mxu0 %v5901_v18  ;;  %1865 = vmatpush1.msra.mxu1 %v1807_v5  ;;  %v461_v5 = vrot.slane %v5883_v7, 7  ;;  %v463_v7 = vrot.slane %v5887_v10, 7 }
  0xe1   : > { %1253 = vmatmul.mubr.f32.gmra.mxu1 %v6051_v42  ;;  %4910 = vmatpush3.msra.mxu0 %v597_v57  ;;  %v1800_v57 = vld [vmem:[#allocation5 + $0x300] sm:$0xff] }
  0xe2   : > { %1257 = vmatprep.mubr.f32.mxu1 %v6079_v8  ;;  %1866 = vmatprep.subr.mxu1 %v7828_v0  ;;  %v6157_v23 = vsel %vm414_vm0, %v461_v5, %v463_v7  ;;  %v1817_v7 = vld [vmem:[#allocation5 + $0x388] sm:$0xff] }
  0xe3   : > { %818 = vmatmul.mubr.f32.gmra.mxu0 %v5887_v10  ;;  %1867 = vmatpush1.msra.mxu1 %v1806_v35  ;;  %v6147_v35 = vsel %vm414_vm0, %v460_v4, %v461_v5  ;;  %v465_v10 = vrot.slane %v320_v52, 7  ;;  %v1819_v4 = vld [vmem:[#allocation5 + $0x398] sm:$0xff]  ;;  %v1818_v5 = vld [vmem:[#allocation5 + $0x390] sm:$0xff]  ;;  %v1816_v52 = vld [vmem:[#allocation5 + $0x380] sm:$0xff] }
  0xe4   : > { %822 = vmatprep.mubr.f32.mxu0 %v5912_v22  ;;  %1868 = vmatprep.subr.mxu1 %v7828_v0 }
  0xe5   : > { %1258 = vmatmul.mubr.f32.gmra.mxu1 %v6061_v48  ;;  %4911 = vmatprep.subr.mxu0 %v596_v12 }
  0xe6   : > { %1262 = vmatprep.mubr.f32.mxu1 %v6089_v16  ;;  %1869 = vmatpush1.msra.mxu1 %v1805_v17  ;;  %v1828_v17 = vld [vmem:[#allocation5 + $0x3e0] sm:$0xff] }
  0xe7   : > { %823 = vmatmul.mubr.f32.gmra.mxu0 %v5898_v15  ;;  %1870 = vmatprep.subr.mxu1 %v7828_v0 }
  0xe8   : > { %827 = vmatprep.mubr.f32.mxu0 %v5915_v24  ;;  %4912 = vmatpush3.msra.mxu0 %v596_v12  ;;  %v1829_v12 = vld [vmem:[#allocation5 + $0x3e8] sm:$0xff] }
  0xe9   : > { %1263 = vmatmul.mubr.f32.gmra.mxu1 %v6070_v59  ;;  %4913 = vmatprep.subr.mxu0 %v595_v25 }
  0xea   : > { %1267 = vmatprep.mubr.f32.mxu1 %v6098_v27  ;;  %1871 = vmatpush1.msra.mxu1 %v1804_v40 }
  0xeb   : > { %828 = vmatmul.mubr.f32.gmra.mxu0 %v5901_v18  ;;  %1872 = vmatprep.subr.mxu1 %v7828_v0 }
  0xec   : > { %832 = vmatprep.mubr.f32.mxu0 %v5922_v26  ;;  %1873 = vmatpush1.msra.mxu1 %v1803_v30  ;;  %v1825_v30 = vld [vmem:[#allocation5 + $0x3c8] sm:$0xff] }
  0xed   : > { %1268 = vmatmul.mubr.f32.gmra.mxu1 %v6079_v8  ;;  %4914 = vmatpush3.msra.mxu0 %v595_v25  ;;  %v466_v25 = vrot.slane %v5898_v15, 7  ;;  %v468_v15 = vrot.slane %v5901_v18, 7  ;;  %v470_v18 = vrot.slane %v324_v58, 7  ;;  %v488_v58 = vrot.slane %v5945_v41, 7 }
  0xee   : > { %1272 = vmatprep.mubr.f32.mxu1 %v6107_v32  ;;  %1874 = vmatprep.subr.mxu1 %v7828_v0 }
  0xef   : > { %833 = vmatmul.mubr.f32.gmra.mxu0 %v5912_v22  ;;  %1875 = vmatpush1.msra.mxu1 %v1802_v39  ;;  %v6167_v40 = vsel %vm414_vm0, %v465_v10, %v466_v25  ;;  %v6177_v39 = vsel %vm414_vm0, %v466_v25, %v468_v15  ;;  %v481_v10 = vrot.slane %v5932_v31, 7 }
  0xf0   : > { %837 = vmatprep.mubr.f32.mxu0 %v5925_v28  ;;  %1876 = vmatprep.subr.mxu1 %v7828_v0 }
  0xf1   : > { %1273 = vmatmul.mubr.f32.gmra.mxu1 %v6089_v16  ;;  %4915 = vmatprep.subr.mxu0 %v594_v43 }
  0xf2   : > { %1277 = vmatprep.mubr.f32.mxu1 %v6117_v44  ;;  %1877 = vmatpush1.msra.mxu1 %v1801_v45 }
  0xf3   : > { %838 = vmatmul.mubr.f32.gmra.mxu0 %v5915_v24  ;;  %1878 = vmatprep.subr.mxu1 %v7828_v0 }
  0xf4   : > { %842 = vmatprep.mubr.f32.mxu0 %v5932_v31  ;;  %4916 = vmatpush3.msra.mxu0 %v594_v43  ;;  %v471_v43 = vrot.slane %v5912_v22, 7  ;;  %v473_v22 = vrot.slane %v5915_v24, 7  ;;  %v475_v24 = vrot.slane %v328_v1, 7 }
  0xf5   : > { %1278 = vmatmul.mubr.f32.gmra.mxu1 %v6098_v27  ;;  %4917 = vmatprep.subr.mxu0 %v593_v51 }
  0xf6   : > { %1282 = vmatprep.mubr.f32.mxu1 %v6126_v54  ;;  %1879 = vmatpush1.msra.mxu1 %v1800_v57  ;;  %v6187_v45 = vsel %vm414_vm0, %v470_v18, %v471_v43  ;;  %v1820_v57 = vld [vmem:[#allocation5 + $0x3a0] sm:$0xff]  ;;  %v6197_v47 = vsel %vm414_vm0, %v471_v43, %v473_v22 }
  0xf7   : > { %843 = vmatmul.mubr.f32.gmra.mxu0 %v5922_v26  ;;  %1880 = vmatprep.subr.mxu1 %v7828_v0 }
  0xf8   : > { %847 = vmatprep.mubr.f32.mxu0 %v5935_v34  ;;  %1881 = vmatpush2.msra.mxu1 %v1831_v2  ;;  %v476_v2 = vrot.slane %v5922_v26, 7  ;;  %v478_v26 = vrot.slane %v5925_v28, 7 }
  0xf9   : > { %1283 = vmatmul.mubr.f32.gmra.mxu1 %v6107_v32  ;;  %4918 = vmatpush3.msra.mxu0 %v593_v51  ;;  %v1821_v51 = vld [vmem:[#allocation5 + $0x3a8] sm:$0xff] }
  0xfa   : > { %1287 = vmatprep.mubr.f32.mxu1 %v6135_v33  ;;  %1882 = vmatprep.subr.mxu1 %v7828_v0 }
  0xfb   : > { %848 = vmatmul.mubr.f32.gmra.mxu0 %v5925_v28  ;;  %1883 = vmatpush2.msra.mxu1 %v1830_v50  ;;  %v6207_v50 = vsel %vm414_vm0, %v475_v24, %v476_v2  ;;  %v348_v24 = vld [vmem:[#allocation2 + $0x220] sm:$0xff] }
  0xfc   : > { %852 = vmatprep.mubr.f32.mxu0 %v5942_v38  ;;  %1884 = vmatprep.subr.mxu1 %v7828_v0 }
  0xfd   : > { %1288 = vmatmul.mubr.f32.gmra.mxu1 %v6117_v44  ;;  %4973 = vmatprep.subr.mxu0 %v6143_v11 }
  0xfe   : > { %1292 = vmatprep.mubr.f32.mxu1 %v6147_v35  ;;  %1885 = vmatpush2.msra.mxu1 %v1829_v12  ;;  %v332_v12 = vld [vmem:[#allocation2 + $0x1a0] sm:$0xff] }
  0xff   : > { %853 = vmatmul.mubr.f32.gmra.mxu0 %v5932_v31  ;;  %1886 = vmatprep.subr.mxu1 %v7828_v0  ;;  %v480_v28 = vrot.slane %v332_v12, 7 }
 0x100   : > { %857 = vmatprep.mubr.f32.mxu0 %v5945_v41  ;;  %1887 = vmatpush2.msra.mxu1 %v1828_v17  ;;  %v6217_v17 = vsel %vm414_vm0, %v476_v2, %v478_v26  ;;  %v1839_v2 = vld [vmem:[#allocation5 + $0x438] sm:$0xff] }
 0x101   : > { %1293 = vmatmul.mubr.f32.gmra.mxu1 %v6126_v54  ;;  %1888 = vmatprep.subr.mxu1 %v7828_v0  ;;  %v6226_v25 = vsel %vm414_vm0, %v480_v28, %v481_v10  ;;  %v352_v28 = vld [vmem:[#allocation2 + $0x240] sm:$0xff] }
 0x102   : > { %1297 = vmatprep.mubr.f32.mxu1 %v6157_v23  ;;  %1889 = vmatpush2.msra.mxu1 %v1827_v55  ;;  %v483_v55 = vrot.slane %v5935_v34, 7 }
 0x103   : > { %858 = vmatmul.mubr.f32.gmra.mxu0 %v5935_v34  ;;  %1890 = vmatprep.subr.mxu1 %v7828_v0 }
 0x104   : > { %862 = vmatprep.mubr.f32.mxu0 %v5952_v46  ;;  %1891 = vmatpush2.msra.mxu1 %v1826_v14  ;;  %v336_v14 = vld [vmem:[#allocation2 + $0x1c0] sm:$0xff]  ;;  %v6234_v31 = vsel %vm414_vm0, %v481_v10, %v483_v55  ;;  %v1835_v10 = vld [vmem:[#allocation5 + $0x418] sm:$0xff] }
 0x105   : > { %1298 = vmatmul.mubr.f32.gmra.mxu1 %v6135_v33  ;;  %1892 = vmatprep.subr.mxu1 %v7828_v0  ;;  %v485_v15 = vrot.slane %v336_v14, 7  ;;  %v545_v14 = vrot.slane %v5982_v3, 7 }
 0x106   : > { %1302 = vmatprep.mubr.f32.mxu1 %v6167_v40  ;;  %1893 = vmatpush2.msra.mxu1 %v1825_v30  ;;  %v486_v30 = vrot.slane %v5942_v38, 7 }
 0x107   : > { %863 = vmatmul.mubr.f32.gmra.mxu0 %v5942_v38  ;;  %1894 = vmatprep.subr.mxu1 %v7828_v0  ;;  %v1846_v38 = vld [vmem:[#allocation5 + $0x470] sm:$0xff] }
 0x108   : > { %867 = vmatprep.mubr.f32.mxu0 %v5956_v49  ;;  %1895 = vmatpush2.msra.mxu1 %v1824_v13  ;;  %v6242_v34 = vsel %vm414_vm0, %v485_v15, %v486_v30  ;;  %v340_v13 = vld [vmem:[#allocation2 + $0x1e0] sm:$0xff]  ;;  %v6250_v18 = vsel %vm414_vm0, %v486_v30, %v488_v58  ;;  %v1833_v30 = vld [vmem:[#allocation5 + $0x408] sm:$0xff] }
 0x109   : > { %1303 = vmatmul.mubr.f32.gmra.mxu1 %v6147_v35  ;;  %1896 = vmatprep.subr.mxu1 %v7828_v0  ;;  %v490_v43 = vrot.slane %v340_v13, 7 }
 0x10a   : > { %1307 = vmatprep.mubr.f32.mxu1 %v6177_v39  ;;  %1897 = vmatpush2.msra.mxu1 %v1823_v61  ;;  %v491_v61 = vrot.slane %v5952_v46, 7 }
 0x10b   : > { %868 = vmatmul.mubr.f32.gmra.mxu0 %v5945_v41  ;;  %1898 = vmatprep.subr.mxu1 %v7828_v0  ;;  %v1845_v41 = vld [vmem:[#allocation5 + $0x468] sm:$0xff] }
 0x10c   : > { %872 = vmatprep.mubr.f32.mxu0 %v5960_v53  ;;  %1899 = vmatpush2.msra.mxu1 %v1822_v20  ;;  %v1842_v20 = vld [vmem:[#allocation5 + $0x450] sm:$0xff] }
 0x10d   : > { %1308 = vmatmul.mubr.f32.gmra.mxu1 %v6157_v23  ;;  %1900 = vmatprep.subr.mxu1 %v7828_v0 }
 0x10e   : > { %1312 = vmatprep.mubr.f32.mxu1 %v6187_v45  ;;  %1901 = vmatpush2.msra.mxu1 %v1821_v51  ;;  %v1841_v51 = vld [vmem:[#allocation5 + $0x448] sm:$0xff] }
 0x10f   : > { %873 = vmatmul.mubr.f32.gmra.mxu0 %v5952_v46  ;;  %1902 = vmatprep.subr.mxu1 %v7828_v0  ;;  %v493_v46 = vrot.slane %v5956_v49, 7 }
 0x110   : > { %877 = vmatprep.mubr.f32.mxu0 %v5965_v56  ;;  %1903 = vmatpush2.msra.mxu1 %v1820_v57 }
 0x111   : > { %1313 = vmatmul.mubr.f32.gmra.mxu1 %v6167_v40  ;;  %1904 = vmatprep.subr.mxu1 %v7828_v0 }
 0x112   : > { %1317 = vmatprep.mubr.f32.mxu1 %v6197_v47  ;;  %1905 = vmatpush2.msra.mxu1 %v1819_v4 }
 0x113   : > { %878 = vmatmul.mubr.f32.gmra.mxu0 %v5956_v49  ;;  %1906 = vmatprep.subr.mxu1 %v7828_v0  ;;  %v496_v49 = vrot.slane %v5960_v53, 7 }
 0x114   : > { %882 = vmatprep.mubr.f32.mxu0 %v5972_v60  ;;  %1907 = vmatpush2.msra.mxu1 %v1818_v5  ;;  %v501_v5 = vrot.slane %v5972_v60, 7 }
 0x115   : > { %1318 = vmatmul.mubr.f32.gmra.mxu1 %v6177_v39  ;;  %1908 = vmatprep.subr.mxu1 %v7828_v0 }
 0x116   : > { %1322 = vmatprep.mubr.f32.mxu1 %v6207_v50  ;;  %1909 = vmatpush2.msra.mxu1 %v1817_v7  ;;  %v1837_v7 = vld [vmem:[#allocation5 + $0x428] sm:$0xff] }
 0x117   : > { %883 = vmatmul.mubr.f32.gmra.mxu0 %v5960_v53  ;;  %1910 = vmatprep.subr.mxu1 %v7828_v0 }
 0x118   : > { %887 = vmatprep.mubr.f32.mxu0 %v5976_v63  ;;  %1911 = vmatpush2.msra.mxu1 %v1816_v52 }
 0x119   : > { %1323 = vmatmul.mubr.f32.gmra.mxu1 %v6187_v45 }
 0x11a   : > { %1327 = vmatprep.mubr.f32.mxu1 %v6217_v17 }
 0x11b   : > { %888 = vmatmul.mubr.f32.gmra.mxu0 %v5965_v56 }
 0x11c   : > { %892 = vmatprep.mubr.f32.mxu0 %v5982_v3 }
 0x11d   : > { %1328 = vmatmul.mubr.f32.gmra.mxu1 %v6197_v47 }
 0x11e   : > { %1332 = vmatprep.mubr.f32.mxu1 %v6226_v25 }
 0x11f   : > { %893 = vmatmul.mubr.f32.gmra.mxu0 %v5972_v60 }
 0x120   : > { %897 = vmatprep.mubr.f32.mxu0 %v5985_v6 }
 0x121   : > { %1333 = vmatmul.mubr.f32.gmra.mxu1 %v6207_v50 }
 0x122   : > { %1337 = vmatprep.mubr.f32.mxu1 %v6234_v31 }
 0x123   : > { %898 = vmatmul.mubr.f32.gmra.mxu0 %v5976_v63 }
 0x124   : > { %4919 = vmatprep.mubr.f32.mxu0 %v6011_v62  ;;  %v1844_v62 = vld [vmem:[#allocation5 + $0x460] sm:$0xff] }
 0x125   : > { %1338 = vmatmul.mubr.f32.gmra.mxu1 %v6217_v17 }
 0x126   : > { %1342 = vmatprep.mubr.f32.mxu1 %v6242_v34 }
 0x127   : > { %4920 = vmatmul.mubr.f32.vlgmr.msra.gmra.mxu0 %v6019_v9  ;;  %v6259_v9 = vsel %vm414_vm0, %v490_v43, %v491_v61 }
 0x128   : > { %4974 = vmatpush3.msra.mxu0 %v6143_v11  ;;  %4922 = vmatprep.mubr.f32.mxu0 %v6029_v37  ;;  %v344_v37 = vld [vmem:[#allocation2 + $0x200] sm:$0xff]  ;;  %v1843_v11 = vld [vmem:[#allocation5 + $0x458] sm:$0xff] }
 0x129   : > { %1343 = vmatmul.mubr.f32.gmra.mxu1 %v6226_v25  ;;  %4975 = vmatprep.subr.mxu0 %v1846_v38  ;;  %v495_v22 = vrot.slane %v344_v37, 7  ;;  %v283_v37 = vld [vmem:[#allocation2 + $0x18] sm:$0xff] }
 0x12a   : > { %1347 = vmatprep.mubr.f32.mxu1 %v6250_v18  ;;  %4976 = vmatpush3.msra.mxu0 %v1846_v38 }
 0x12b   : > { %4923 = vmatmul.mubr.f32.gmra.mxu0 %v6037_v29  ;;  %4977 = vmatprep.subr.mxu0 %v1845_v41  ;;  %v6267_v29 = vsel %vm414_vm0, %v491_v61, %v493_v46  ;;  %v6279_v53 = vsel %vm414_vm0, %v495_v22, %v496_v49  ;;  %v5382_v61 = vld [vmem:[#allocation2 + $0x30] sm:$0xff] }
 0x12c   : > { %4925 = vmatprep.mubr.f32.mxu0 %v6051_v42  ;;  %4978 = vmatpush3.msra.mxu0 %v1845_v41  ;;  %v287_v41 = vld [vmem:[#allocation2 + $0x38] sm:$0xff] }
 0x12d   : > { %1348 = vmatmul.mubr.f32.gmra.mxu1 %v6234_v31  ;;  %4979 = vmatprep.subr.mxu0 %v1844_v62  ;;  %v1665_v46 = vrot.slane %v287_v41, 1  ;;  %v6408_v41 = vld [vmem:[#allocation2 + $0x268] sm:$0xff] }
 0x12e   : > { %1352 = vmatprep.mubr.f32.mxu1 %v6259_v9  ;;  %4980 = vmatpush3.msra.mxu0 %v1844_v62 }
 0x12f   : > { %4926 = vmatmul.mubr.f32.gmra.mxu0 %v6061_v48  ;;  %4981 = vmatprep.subr.mxu0 %v1843_v11  ;;  %v1840_v48 = vld [vmem:[#allocation5 + $0x440] sm:$0xff] }
 0x130   : > { %4928 = vmatprep.mubr.f32.mxu0 %v6070_v59  ;;  %v6271_v42 = vpop.f32.mrf.mxu1  ;;  %4982 = vmatpush3.msra.mxu0 %v1843_v11  ;;  %v498_v59 = vrot.slane %v5965_v56, 7 }
 0x131   : > { %1353 = vmatmul.mubr.f32.gmra.mxu1 %v6242_v34  ;;  %4983 = vmatprep.subr.mxu0 %v1842_v20 }
 0x132   : > { %1357 = vmatprep.mubr.f32.mxu1 %v6267_v29  ;;  %v6275_v1 = vpop.f32.mrf.mxu1  ;;  %4984 = vmatpush3.msra.mxu0 %v1842_v20  ;;  %v6291_v56 = vsel %vm414_vm0, %v496_v49, %v498_v59  ;;  %v5383_v49 = vld [vmem:[#allocation2 + $0x48] sm:$0xff]  ;;  %v291_v59 = vld [vmem:[#allocation2 + $0x58] sm:$0xff] }
 0x133   : > { %4929 = vmatmul.mubr.f32.gmra.mxu0 %v6079_v8  ;;  %4985 = vmatprep.subr.mxu0 %v1841_v51  ;;  %v1838_v8 = vld [vmem:[#allocation5 + $0x430] sm:$0xff] }
 0x134   : > { %4931 = vmatprep.mubr.f32.mxu0 %v6089_v16  ;;  %v6283_v57 = vpop.f32.mrf.mxu1  ;;  %4986 = vmatpush3.msra.mxu0 %v1841_v51  ;;  %v500_v16 = vrot.slane %v348_v24, 7  ;;  %v5384_v51 = vld [vmem:[#allocation2 + $0x50] sm:$0xff] }
 0x135   : > { %1358 = vmatmul.mubr.f32.gmra.mxu1 %v6250_v18  ;;  %4987 = vmatprep.subr.mxu0 %v1840_v48 }
 0x136   : > { %1362 = vmatprep.mubr.f32.mxu1 %v6279_v53  ;;  %v6287_v4 = vpop.f32.mrf.mxu1  ;;  %4988 = vmatpush3.msra.mxu0 %v1840_v48  ;;  %v6303_v60 = vsel %vm414_vm0, %v500_v16, %v501_v5  ;;  %v1668_v48 = vrot.slane %v5384_v51, 1 }
 0x137   : > { %4932 = vmatmul.mubr.f32.gmra.mxu0 %v6098_v27  ;;  %4989 = vmatprep.subr.mxu0 %v1839_v2  ;;  %v1836_v27 = vld [vmem:[#allocation5 + $0x420] sm:$0xff] }
 0x138   : > { %4934 = vmatprep.mubr.f32.mxu0 %v6107_v32  ;;  %v6295_v26 = vpop.f32.mrf.mxu1  ;;  %4990 = vmatpush3.msra.mxu0 %v1839_v2  ;;  %v503_v32 = vrot.slane %v5976_v63, 7 }
 0x139   : > { %1363 = vmatmul.mubr.f32.gmra.mxu1 %v6259_v9  ;;  %4991 = vmatprep.subr.mxu0 %v1838_v8 }
 0x13a   : > { %1367 = vmatprep.mubr.f32.mxu1 %v6291_v56  ;;  %v6299_v12 = vpop.f32.mrf.mxu1  ;;  %4992 = vmatpush3.msra.mxu0 %v1838_v8  ;;  %v6315_v63 = vsel %vm414_vm0, %v501_v5, %v503_v32  ;;  %v295_v32 = vld [vmem:[#allocation2 + $0x78] sm:$0xff] }
 0x13b   : > { %4935 = vmatmul.mubr.f32.gmra.mxu0 %v6117_v44  ;;  %4993 = vmatprep.subr.mxu0 %v1837_v7  ;;  %v1834_v44 = vld [vmem:[#allocation5 + $0x410] sm:$0xff] }
 0x13c   : > { %4937 = vmatprep.mubr.f32.mxu0 %v6126_v54  ;;  %v6307_v52 = vpop.f32.mrf.mxu1  ;;  %4994 = vmatpush3.msra.mxu0 %v1837_v7  ;;  %v544_v54 = vrot.slane %v352_v28, 7  ;;  %v5386_v7 = vld [vmem:[#allocation2 + $0x70] sm:$0xff] }
 0x13d   : > { %1368 = vmatmul.mubr.f32.gmra.mxu1 %v6267_v29  ;;  %4995 = vmatprep.subr.mxu0 %v1836_v27 }
 0x13e   : > { %1372 = vmatprep.mubr.f32.mxu1 %v6303_v60  ;;  %v6311_v55 = vpop.f32.mrf.mxu1  ;;  %4996 = vmatpush3.msra.mxu0 %v1836_v27  ;;  %v6327_v3 = vsel %vm414_vm0, %v544_v54, %v545_v14  ;;  %v1673_v27 = vrot.slane %v5386_v7, 1 }
 0x13f   : > { %4938 = vmatmul.mubr.f32.gmra.mxu0 %v6135_v33  ;;  %4997 = vmatprep.subr.mxu0 %v1835_v10  ;;  %v1832_v33 = vld [vmem:[#allocation5 + $0x400] sm:$0xff] }
 0x140   : > { %4940 = vmatprep.mubr.f32.mxu0 %v6147_v35  ;;  %v6319_v15 = vpop.f32.mrf.mxu1  ;;  %4998 = vmatpush3.msra.mxu0 %v1835_v10  ;;  %v547_v35 = vrot.slane %v5985_v6, 7  ;;  %v5381_v6 = vld [vmem:[#allocation2 + $0x28] sm:$0xff] }
 0x141   : > { %1373 = vmatmul.mubr.f32.gmra.mxu1 %v6279_v53  ;;  %4999 = vmatprep.subr.mxu0 %v1834_v44  ;;  %v1662_v43 = vrot.slane %v5381_v6, 1  ;;  %v5387_v6 = vld [vmem:[#allocation2 + $0x88] sm:$0xff] }
 0x142   : > { %1377 = vmatprep.mubr.f32.mxu1 %v6315_v63  ;;  %v6323_v58 = vpop.f32.mrf.mxu1  ;;  %5000 = vmatpush3.msra.mxu0 %v1834_v44 }
 0x143   : > { %4941 = vmatmul.mubr.f32.gmra.mxu0 %v6157_v23  ;;  %5001 = vmatprep.subr.mxu0 %v1833_v30  ;;  %v6337_v23 = vsel %vm414_vm0, %v545_v14, %v547_v35  ;;  %v1675_v14 = vrot.slane %v295_v32, 1 }
 0x144   : > { %4943 = vmatprep.mubr.f32.mxu0 %v6167_v40  ;;  %5002 = vmatpush3.msra.mxu0 %v1833_v30  ;;  %v1663_v40 = vrot.slane %v5382_v61, 1 }
 0x145   : > { %1378 = vmatmul.mubr.f32.gmra.mxu1 %v6291_v56  ;;  %v6332_v13 = vpop.f32.mrf.mxu1  ;;  %5003 = vmatprep.subr.mxu0 %v1832_v33  ;;  %v6405_v35 = vsel %vm1656_vm1, %v1673_v27, %v1675_v14 }
 0x146   : > { %1382 = vmatprep.mubr.f32.mxu1 %v6327_v3  ;;  %5004 = vmatpush3.msra.mxu0 %v1832_v33  ;;  %v1666_v20 = vsel %vm1656_vm1, %v1663_v40, %v1665_v46  ;;  %v356_v33 = vld [vmem:[#allocation2 + $0x260] sm:$0xff] }
 0x147   : > { %4944 = vmatmul.mubr.f32.gmra.mxu0 %v6177_v39  ;;  %v6339_v38 = vpop.f32.mrf.mxu1  ;;  %2776 = vmatprep.subr.mxu0 %v7828_v0  ;;  %v1664_v39 = vsel %vm1656_vm1, %v1662_v43, %v1663_v40  ;;  %v1677_v43 = vrot.slane %v5387_v6, 1  ;;  %v299_v40 = vld [vmem:[#allocation2 + $0x98] sm:$0xff]  ;;  %v554_v46 = vrot.slane %v356_v33, 7 }
 0x148   : > { %4946 = vmatprep.mubr.f32.mxu0 %v6187_v45  ;;  %v1660_v45 = vrot.slane %v283_v37, 1 }
 0x149   : > { %1383 = vmatmul.mubr.f32.gmra.mxu1 %v6303_v60 }
 0x14a   : > { %1387 = vmatprep.mubr.f32.mxu1 %v6337_v23  ;;  %v6345_v62 = vpop.f32.mrf.mxu1 }
 0x14b   : > { %4947 = vmatmul.mubr.f32.gmra.mxu0 %v6197_v47  ;;  %v1667_v47 = vrot.slane %v5383_v49, 1  ;;  %v6420_v49 = vld [vmem:[#allocation2 + $0x270] sm:$0xff] }
 0x14c   : > { %4949 = vmatprep.mubr.f32.mxu0 %v6207_v50  ;;  %v6350_v11 = vpop.f32.mrf.mxu1 }
 0x14d   : > { %1388 = vmatmul.mubr.f32.gmra.mxu1 %v6315_v63  ;;  %v6369_v8 = vsel %vm1656_vm1, %v1667_v47, %v1668_v48  ;;  %v557_v47 = vrot.slane %v6420_v49, 7 }
 0x14e   : > { %1912 = vmatprep.mubr.f32.mxu1 %v1664_v39 }
 0x14f   : > { %4950 = vmatmul.mubr.f32.gmra.mxu0 %v6217_v17  ;;  %v6355_v22 = vpop.f32.mrf.mxu1  ;;  %v1661_v17 = vsel %vm1656_vm1, %v1658_v19, %v1660_v45 }
 0x150   : > { %4952 = vmatprep.mubr.f32.mxu0 %v6226_v25  ;;  %v1670_v25 = vrot.slane %v291_v59, 1 }
 0x151   : > { %1913 = vmatmul.mubr.f32.vlgmr.msra.gmra.mxu1 %v6044_v36  ;;  %v6359_v50 = vpop.f32.mrf.mxu1 }
 0x152   : > { %1917 = vmatprep.mubr.f32.mxu1 %v1666_v20  ;;  %v724_v24 = vpop.f32.mrf.mxu0 }
 0x153   : > { %4953 = vmatmul.mubr.f32.gmra.mxu0 %v6234_v31  ;;  %v6366_v2 = vadd.f32 %v6275_v1, %v724_v24  ;;  %v6379_v31 = vsel %vm1656_vm1, %v1668_v48, %v1670_v25  ;;  %v5385_v1 = vld [vmem:[#allocation2 + $0x68] sm:$0xff] }
 0x154   : > { %4955 = vmatprep.mubr.f32.mxu0 %v6242_v34  ;;  %v6372_v36 = vpop.f32.mrf.mxu1  ;;  %v726_v16 = vpop.f32.mrf.mxu0  ;;  %v1672_v5 = vrot.slane %v5385_v1, 1  ;;  %v5391_v25 = vld [vmem:[#allocation2 + $0xa8] sm:$0xff] }
 0x155   : > { %1918 = vmatmul.mubr.f32.gmra.mxu1 %v1661_v17  ;;  %v1682_v16 = vrot.slane %v5391_v25, 1  ;;  %v5396_v25 = vld [vmem:[#allocation2 + $0xf0] sm:$0xff] }
 0x156   : > { %1922 = vmatprep.mubr.f32.mxu1 %v6369_v8  ;;  %v6375_v21 = vpop.f32.mrf.mxu1  ;;  %v6392_v54 = vsel %vm1656_vm1, %v1672_v5, %v1673_v27  ;;  %v303_v5 = vld [vmem:[#allocation2 + $0xb8] sm:$0xff] }
 0x157   : > { %4956 = vmatmul.mubr.f32.gmra.mxu0 %v6250_v18  ;;  %v729_v19 = vpop.f32.mrf.mxu0 }
 0x158   : > { %4958 = vmatprep.mubr.f32.mxu0 %v6259_v9  ;;  %v6383_v34 = vadd.f32 %v6271_v42, %v729_v19  ;;  %v5392_v19 = vld [vmem:[#allocation2 + $0xb0] sm:$0xff] }
 0x159   : > { %1923 = vmatmul.mubr.f32.gmra.mxu1 %v1664_v39  ;;  %v6385_v28 = vpop.f32.mrf.mxu1  ;;  %v731_v10 = vpop.f32.mrf.mxu0  ;;  %v555_v39 = vrot.slane %v6408_v41, 7 }
 0x15a   : > { %1927 = vmatprep.mubr.f32.mxu1 %v6379_v31  ;;  %v1685_v10 = vrot.slane %v303_v5, 1 }
 0x15b   : > { %4959 = vmatmul.mubr.f32.gmra.mxu0 %v6267_v29  ;;  %v6389_v18 = vpop.f32.mrf.mxu1  ;;  %v734_v44 = vpop.f32.mrf.mxu0  ;;  %v556_v59 = vsel %vm414_vm0, %v554_v46, %v555_v39 }
 0x15c   : > { %4961 = vmatprep.mubr.f32.mxu0 %v6279_v53  ;;  %v6396_v9 = vadd.f32 %v6287_v4, %v734_v44  ;;  %v5388_v53 = vld [vmem:[#allocation2 + $0x90] sm:$0xff] }
 0x15d   : > { %1928 = vmatmul.mubr.f32.gmra.mxu1 %v1666_v20  ;;  %v6398_v42 = vpop.f32.mrf.mxu1  ;;  %v736_v30 = vpop.f32.mrf.mxu0  ;;  %v1678_v61 = vrot.slane %v5388_v53, 1  ;;  %v1680_v20 = vrot.slane %v299_v40, 1  ;;  %v307_v40 = vld [vmem:[#allocation2 + $0xd8] sm:$0xff] }
 0x15e   : > { %1932 = vmatprep.mubr.f32.mxu1 %v6392_v54 }
 0x15f   : > { %4962 = vmatmul.mubr.f32.gmra.mxu0 %v6291_v56  ;;  %v6402_v29 = vpop.f32.mrf.mxu1  ;;  %v1681_v24 = vsel %vm1656_vm1, %v1678_v61, %v1680_v20 }
 0x160   : > { %4964 = vmatprep.mubr.f32.mxu0 %v6303_v60  ;;  %v739_v4 = vpop.f32.mrf.mxu0  ;;  %v1679_v60 = vsel %vm1656_vm1, %v1677_v43, %v1678_v61  ;;  %v5393_v43 = vld [vmem:[#allocation2 + $0xc8] sm:$0xff]  ;;  %v5394_v61 = vld [vmem:[#allocation2 + $0xd0] sm:$0xff] }
 0x161   : > { %1933 = vmatmul.mubr.f32.gmra.mxu1 %v6369_v8  ;;  %v6413_v56 = vadd.f32 %v6283_v57, %v739_v4  ;;  %v1687_v53 = vrot.slane %v5393_v43, 1  ;;  %v1688_v4 = vrot.slane %v5394_v61, 1  ;;  %v5397_v43 = vld [vmem:[#allocation2 + $0x108] sm:$0xff] }
 0x162   : > { %1937 = vmatprep.mubr.f32.mxu1 %v6405_v35  ;;  %v6416_v37 = vpop.f32.mrf.mxu1  ;;  %v741_v45 = vpop.f32.mrf.mxu0 }
 0x163   : > { %4965 = vmatmul.mubr.f32.gmra.mxu0 %v6315_v63  ;;  %v1690_v45 = vrot.slane %v307_v40, 1 }
 0x164   : > { %v6423_v51 = vpop.f32.mrf.mxu1  ;;  %4967 = vmatprep.mubr.f32.mxu0 %v6327_v3  ;;  %v744_v57 = vpop.f32.mrf.mxu0  ;;  %v1683_v3 = vrot.slane %v5392_v19, 1  ;;  %v2775_v19 = vld [vmem:[#allocation8 + $0x2f8] sm:$0xff] }
 0x165   : > { %1938 = vmatmul.mubr.f32.gmra.mxu1 %v6379_v31  ;;  %v6428_v48 = vadd.f32 %v6299_v12, %v744_v57  ;;  %v558_v12 = vsel %vm414_vm0, %v555_v39, %v557_v47  ;;  %5059 = vmatprep.subr.mxu1 %v2775_v19 }
 0x166   : > { %1942 = vmatprep.mubr.f32.mxu1 %v1679_v60  ;;  %v6431_v63 = vpop.f32.mrf.mxu1  ;;  %v746_v17 = vpop.f32.mrf.mxu0  ;;  %v1684_v32 = vsel %vm1656_vm1, %v1682_v16, %v1683_v3  ;;  %v1686_v6 = vsel %vm1656_vm1, %v1683_v3, %v1685_v10  ;;  %v1693_v16 = vrot.slane %v5396_v25, 1  ;;  %5060 = vmatpush3.msra.mxu1 %v2775_v19  ;;  %v5400_v19 = vld [vmem:[#allocation2 + $0x130] sm:$0xff] }
 0x167   : > { %4968 = vmatmul.mubr.f32.gmra.mxu0 %v6337_v23  ;;  %v5395_v17 = vld [vmem:[#allocation2 + $0xe8] sm:$0xff] }
 0x168   : > { %v6435_v1 = vpop.f32.mrf.mxu1  ;;  %4970 = vmatprep.mubr.f32.mxu0 %v556_v59 }
 0x169   : > { %1943 = vmatmul.mubr.f32.gmra.mxu1 %v6392_v54 }
 0x16a   : > { %v749_v7 = vpop.f32.mrf.mxu0  ;;  %1947 = vmatprep.mubr.f32.mxu1 %v1681_v24 }
 0x16b   : > { %v6440_v27 = vadd.f32 %v6295_v26, %v749_v7  ;;  %4971 = vmatmul.mubr.f32.gmra.mxu0 %v558_v12  ;;  %v6442_v23 = vpop.f32.mrf.mxu1 }
 0x16c   : > { %v751_v44 = vpop.f32.mrf.mxu0  ;;  %5005 = vmatprep.mubr.f32.mxu0 %v6369_v8 }
 0x16d   : > { %1948 = vmatmul.mubr.f32.gmra.mxu1 %v6405_v35  ;;  %v6447_v14 = vpop.f32.mrf.mxu1 }
 0x16e   : > { %v754_v30 = vpop.f32.mrf.mxu0  ;;  %1952 = vmatprep.mubr.f32.mxu1 %v1684_v32 }
 0x16f   : > { %v6450_v33 = vadd.f32 %v6311_v55, %v754_v30  ;;  %5006 = vmatmul.mubr.f32.vlgmr.msra.gmra.mxu0 %v6379_v31  ;;  %v6453_v26 = vpop.f32.mrf.mxu1  ;;  %v1689_v31 = vsel %vm1656_vm1, %v1687_v53, %v1688_v4  ;;  %v5398_v53 = vld [vmem:[#allocation2 + $0x110] sm:$0xff] }
 0x170   : > { %v756_v8 = vpop.f32.mrf.mxu0  ;;  %5008 = vmatprep.mubr.f32.mxu0 %v6392_v54  ;;  %v1698_v61 = vrot.slane %v5398_v53, 1 }
 0x171   : > { %1953 = vmatmul.mubr.f32.gmra.mxu1 %v1679_v60  ;;  %v6457_v39 = vpop.f32.mrf.mxu1 }
 0x172   : > { %v759_v46 = vpop.f32.mrf.mxu0  ;;  %1957 = vmatprep.mubr.f32.mxu1 %v1686_v6 }
 0x173   : > { %v6460_v55 = vadd.f32 %v6307_v52, %v759_v46  ;;  %5009 = vmatmul.mubr.f32.gmra.mxu0 %v6405_v35  ;;  %v1691_v52 = vsel %vm1656_vm1, %v1688_v4, %v1690_v45  ;;  %v1692_v35 = vrot.slane %v5395_v17, 1  ;;  %v315_v4 = vld [vmem:[#allocation2 + $0x118] sm:$0xff]  ;;  %v2774_v45 = vld [vmem:[#allocation8 + $0x2f0] sm:$0xff] }
 0x174   : > { %v6464_v20 = vpop.f32.mrf.mxu1  ;;  %v761_v47 = vpop.f32.mrf.mxu0  ;;  %5011 = vmatprep.mubr.f32.mxu0 %v1679_v60  ;;  %v311_v60 = vld [vmem:[#allocation2 + $0xf8] sm:$0xff]  ;;  %5061 = vmatprep.subr.mxu1 %v2774_v45 }
 0x175   : > { %1958 = vmatmul.mubr.f32.gmra.mxu1 %v1681_v24  ;;  %v1695_v10 = vrot.slane %v311_v60, 1  ;;  %v319_v60 = vld [vmem:[#allocation2 + $0x138] sm:$0xff] }
 0x176   : > { %v6466_v54 = vpop.f32.mrf.mxu1  ;;  %v764_v57 = vpop.f32.mrf.mxu0  ;;  %1962 = vmatprep.mubr.f32.mxu1 %v1689_v31  ;;  %5062 = vmatpush3.msra.mxu1 %v2774_v45  ;;  %v5402_v45 = vld [vmem:[#allocation2 + $0x150] sm:$0xff] }
 0x177   : > { %v6469_v59 = vadd.f32 %v6323_v58, %v764_v57  ;;  %5012 = vmatmul.mubr.f32.gmra.mxu0 %v1681_v24  ;;  %v6480_v24 = vsel %vm1656_vm1, %v1692_v35, %v1693_v16  ;;  %v6488_v40 = vsel %vm1656_vm1, %v1693_v16, %v1695_v10  ;;  %v5399_v35 = vld [vmem:[#allocation2 + $0x128] sm:$0xff] }
 0x178   : > { %v6472_v3 = vpop.f32.mrf.mxu1  ;;  %v766_v12 = vpop.f32.mrf.mxu0  ;;  %5014 = vmatprep.mubr.f32.mxu0 %v1684_v32  ;;  %v1702_v25 = vrot.slane %v5399_v35, 1 }
 0x179   : > { %7835 = vst [vmem:[#allocation21_spill] sm:$0xff] %v6472_v3  ;;  %1963 = vmatmul.mubr.f32.gmra.mxu1 %v1684_v32  ;;  %v1697_v32 = vrot.slane %v5397_v43, 1  ;;  %v1703_v12 = vrot.slane %v5400_v19, 1  ;;  %v1705_v43 = vrot.slane %v319_v60, 1  ;;  %v2731_v3 = vld [vmem:[#allocation8 + $0x198] sm:$0xff] }
 0x17a   : > { %v6474_v5 = vpop.f32.mrf.mxu1  ;;  %v769_v7 = vpop.f32.mrf.mxu0  ;;  %1967 = vmatprep.mubr.f32.mxu1 %v1691_v52 }
 0x17b   : > { %7836 = vst [vmem:[#allocation22_spill] sm:$0xff] %v6474_v5  ;;  %v6477_v58 = vadd.f32 %v6319_v15, %v769_v7  ;;  %5015 = vmatmul.mubr.f32.gmra.mxu0 %v1686_v6  ;;  %v6495_v17 = vsel %vm1656_vm1, %v1697_v32, %v1698_v61  ;;  %v6510_v53 = vsel %vm1656_vm1, %v1702_v25, %v1703_v12 }
 0x17c   : > { %v6482_v44 = vpop.f32.mrf.mxu1  ;;  %v771_v30 = vpop.f32.mrf.mxu0  ;;  %5017 = vmatprep.mubr.f32.mxu0 %v1689_v31  ;;  %v6523_v19 = vsel %vm1656_vm1, %v1703_v12, %v1705_v43  ;;  %v2740_v12 = vld [vmem:[#allocation8 + $0x1e0] sm:$0xff]  ;;  %v2773_v43 = vld [vmem:[#allocation8 + $0x2e8] sm:$0xff] }
 0x17d   : > { %7837 = vst [vmem:[#allocation23_spill] sm:$0xff] %v6482_v44  ;;  %1968 = vmatmul.mubr.f32.gmra.mxu1 %v1686_v6  ;;  %v1700_v6 = vrot.slane %v315_v4, 1  ;;  %v5401_v4 = vld [vmem:[#allocation2 + $0x148] sm:$0xff]  ;;  %5063 = vmatprep.subr.mxu1 %v2773_v43  ;;  %v2732_v44 = vld [vmem:[#allocation8 + $0x1a0] sm:$0xff] }
 0x17e   : > { %v6484_v8 = vpop.f32.mrf.mxu1  ;;  %1972 = vmatprep.mubr.f32.mxu1 %v6480_v24  ;;  %5064 = vmatpush3.msra.mxu1 %v2773_v43 }
 0x17f   : > { %7838 = vst [vmem:[#allocation24_spill] sm:$0xff] %v6484_v8  ;;  %v774_v15 = vpop.f32.mrf.mxu0  ;;  %5018 = vmatmul.mubr.f32.gmra.mxu0 %v1691_v52  ;;  %v6507_v30 = vsel %vm1656_vm1, %v1698_v61, %v1700_v6  ;;  %v2742_v61 = vld [vmem:[#allocation8 + $0x1f0] sm:$0xff]  ;;  %v351_v8 = vld [vmem:[#allocation2 + $0x238] sm:$0xff] }
 0x180   : > { %v6491_v46 = vadd.f32 %v6339_v38, %v774_v15  ;;  %5020 = vmatprep.mubr.f32.mxu0 %v6480_v24  ;;  %v2743_v38 = vld [vmem:[#allocation8 + $0x1f8] sm:$0xff]  ;;  %v1707_v15 = vrot.slane %v5401_v4, 1 }
 0x181   : > { %v1214_v47 = vpop.f32.mrf.mxu1  ;;  %1973 = vmatmul.mubr.f32.gmra.mxu1 %v1689_v31  ;;  %v776_v57 = vpop.f32.mrf.mxu0  ;;  %2777 = vmatpush1.msra.mxu0 %v2743_v38 }
 0x182   : > { %v6498_v16 = vadd.f32 %v1214_v47, %v6366_v2  ;;  %1977 = vmatprep.mubr.f32.mxu1 %v6488_v40  ;;  %v1708_v47 = vrot.slane %v5402_v45, 1  ;;  %v323_v57 = vld [vmem:[#allocation2 + $0x158] sm:$0xff]  ;;  %2778 = vmatprep.subr.mxu0 %v7828_v0 }
 0x183   : > { %v1216_v7 = vpop.f32.mrf.mxu1  ;;  %v779_v10 = vpop.f32.mrf.mxu0  ;;  %5021 = vmatmul.mubr.f32.gmra.mxu0 %v6488_v40  ;;  %v1710_v60 = vrot.slane %v323_v57, 1 }
 0x184   : > { %7839 = vst [vmem:[#allocation25_spill] sm:$0xff] %v6498_v16  ;;  %v6503_v31 = vadd.f32 %v6332_v13, %v779_v10  ;;  %5023 = vmatprep.mubr.f32.mxu0 %v6495_v17  ;;  %2779 = vmatpush1.msra.mxu0 %v2742_v61  ;;  %v6527_v7 = vsel %vm1656_vm1, %v1707_v15, %v1708_v47  ;;  %v5403_v10 = vld [vmem:[#allocation2 + $0x168] sm:$0xff]  ;;  %v2734_v16 = vld [vmem:[#allocation8 + $0x1b0] sm:$0xff] }
 0x185   : > { %v1219_v2 = vpop.f32.mrf.mxu1  ;;  %1978 = vmatmul.mubr.f32.gmra.mxu1 %v1691_v52  ;;  %v781_v32 = vpop.f32.mrf.mxu0  ;;  %v2741_v52 = vld [vmem:[#allocation8 + $0x1e8] sm:$0xff]  ;;  %2780 = vmatprep.subr.mxu0 %v7828_v0  ;;  %v6541_v61 = vsel %vm1656_vm1, %v1708_v47, %v1710_v60  ;;  %v2738_v60 = vld [vmem:[#allocation8 + $0x1d0] sm:$0xff] }
 0x186   : > { %v6514_v13 = vadd.f32 %v1219_v2, %v6383_v34  ;;  %1982 = vmatprep.mubr.f32.mxu1 %v6495_v17  ;;  %v1712_v2 = vrot.slane %v5403_v10, 1  ;;  %v5404_v32 = vld [vmem:[#allocation2 + $0x170] sm:$0xff]  ;;  %2781 = vmatpush1.msra.mxu0 %v2741_v52 }
 0x187   : > { %v1221_v6 = vpop.f32.mrf.mxu1  ;;  %v784_v35 = vpop.f32.mrf.mxu0  ;;  %5024 = vmatmul.mubr.f32.gmra.mxu0 %v6507_v30  ;;  %v1713_v4 = vrot.slane %v5404_v32, 1  ;;  %2782 = vmatprep.subr.mxu0 %v7828_v0  ;;  %v5406_v10 = vld [vmem:[#allocation2 + $0x190] sm:$0xff] }
 0x188   : > { %v6519_v25 = vadd.f32 %v6350_v11, %v784_v35  ;;  %5026 = vmatprep.mubr.f32.mxu0 %v6510_v53  ;;  %v327_v11 = vld [vmem:[#allocation2 + $0x178] sm:$0xff]  ;;  %2783 = vmatpush1.msra.mxu0 %v2740_v12  ;;  %v1718_v32 = vrot.slane %v5406_v10, 1  ;;  %v5408_v10 = vld [vmem:[#allocation2 + $0x1b0] sm:$0xff] }
 0x189   : > { %v1224_v34 = vpop.f32.mrf.mxu1  ;;  %1983 = vmatmul.mubr.f32.gmra.mxu1 %v6480_v24  ;;  %v786_v38 = vpop.f32.mrf.mxu0  ;;  %v6545_v52 = vsel %vm1656_vm1, %v1712_v2, %v1713_v4  ;;  %2784 = vmatprep.subr.mxu0 %v7828_v0 }
 0x18a   : > { %v6531_v45 = vadd.f32 %v1224_v34, %v6396_v9  ;;  %1987 = vmatprep.mubr.f32.mxu1 %v6507_v30  ;;  %v1715_v9 = vrot.slane %v327_v11, 1  ;;  %v5405_v34 = vld [vmem:[#allocation2 + $0x188] sm:$0xff] }
 0x18b   : > { %v1226_v24 = vpop.f32.mrf.mxu1  ;;  %v789_v57 = vpop.f32.mrf.mxu0  ;;  %5027 = vmatmul.mubr.f32.gmra.mxu0 %v6523_v19  ;;  %v1717_v38 = vrot.slane %v5405_v34, 1  ;;  %v5407_v34 = vld [vmem:[#allocation2 + $0x1a8] sm:$0xff] }
 0x18c   : > { %7840 = vst [vmem:[#allocation26_spill] sm:$0xff] %v6531_v45  ;;  %v6537_v15 = vadd.f32 %v6345_v62, %v789_v57  ;;  %5029 = vmatprep.mubr.f32.mxu0 %v6527_v7  ;;  %v331_v62 = vld [vmem:[#allocation2 + $0x198] sm:$0xff]  ;;  %v6558_v11 = vsel %vm1656_vm1, %v1713_v4, %v1715_v9  ;;  %v1722_v43 = vrot.slane %v5407_v34, 1  ;;  %v5409_v34 = vld [vmem:[#allocation2 + $0x1c8] sm:$0xff]  ;;  %v7842_v45 = vmov 0.0  }
 0x18d   : > { %v1229_v6 = vpop.f32.mrf.mxu1  ;;  %1988 = vmatmul.mubr.f32.gmra.mxu1 %v6488_v40  ;;  %v791_v35 = vpop.f32.mrf.mxu0  ;;  %v2739_v24 = vld [vmem:[#allocation8 + $0x1d8] sm:$0xff] }
 0x18e   : > { %v6548_v57 = vadd.f32 %v1229_v6, %v6413_v56  ;;  %1992 = vmatprep.mubr.f32.mxu1 %v6510_v53  ;;  %v1720_v56 = vrot.slane %v331_v62, 1  ;;  %2785 = vmatpush1.msra.mxu0 %v2739_v24  ;;  %v6562_v35 = vsel %vm1656_vm1, %v1717_v38, %v1718_v32  ;;  %v2736_v38 = vld [vmem:[#allocation8 + $0x1c0] sm:$0xff] }
 0x18f   : > { %v1231_v47 = vpop.f32.mrf.mxu1  ;;  %v794_v40 = vpop.f32.mrf.mxu0  ;;  %5030 = vmatmul.mubr.f32.gmra.mxu0 %v6541_v61  ;;  %2786 = vmatprep.subr.mxu0 %v7828_v0 }
 0x190   : > { %v6554_v2 = vadd.f32 %v6359_v50, %v794_v40  ;;  %5032 = vmatprep.mubr.f32.mxu0 %v6545_v52  ;;  %v1723_v47 = vrot.slane %v5408_v10, 1  ;;  %v335_v50 = vld [vmem:[#allocation2 + $0x1b8] sm:$0xff]  ;;  %v2737_v40 = vld [vmem:[#allocation8 + $0x1c8] sm:$0xff]  ;;  %2787 = vmatpush1.msra.mxu0 %v2738_v60  ;;  %v6575_v62 = vsel %vm1656_vm1, %v1718_v32, %v1720_v56  ;;  %v1727_v10 = vrot.slane %v5409_v34, 1 }
 0x191   : > { %v1234_v12 = vpop.f32.mrf.mxu1  ;;  %1993 = vmatmul.mubr.f32.gmra.mxu1 %v6495_v17  ;;  %v796_v6 = vpop.f32.mrf.mxu0  ;;  %2788 = vmatprep.subr.mxu0 %v7828_v0  ;;  %v1725_v24 = vrot.slane %v335_v50, 1  ;;  %v2735_v56 = vld [vmem:[#allocation8 + $0x1b8] sm:$0xff]  ;;  %v5411_v34 = vld [vmem:[#allocation2 + $0x1e8] sm:$0xff] }
 0x192   : > { %v6566_v4 = vadd.f32 %v1234_v12, %v6428_v48  ;;  %1997 = vmatprep.mubr.f32.mxu1 %v6523_v19  ;;  %2789 = vmatpush1.msra.mxu0 %v2737_v40  ;;  %v2772_v48 = vld [vmem:[#allocation8 + $0x2e0] sm:$0xff]  ;;  %v6579_v6 = vsel %vm1656_vm1, %v1722_v43, %v1723_v47 }
 0x193   : > { %v1236_v9 = vpop.f32.mrf.mxu1  ;;  %v6569_v17 = vpop.f32.mrf.mxu0  ;;  %5033 = vmatmul.mubr.f32.gmra.mxu0 %v6558_v11  ;;  %2790 = vmatprep.subr.mxu0 %v7842_v45  ;;  %v6592_v40 = vsel %vm1656_vm1, %v1723_v47, %v1725_v24 }
 0x194   : > { %7841 = vst [vmem:[#allocation27_spill] sm:$0xff] %v6566_v4  ;;  %5035 = vmatprep.mubr.f32.mxu0 %v6562_v35  ;;  %v5410_v9 = vld [vmem:[#allocation2 + $0x1d0] sm:$0xff]  ;;  %v339_v4 = vld [vmem:[#allocation2 + $0x1d8] sm:$0xff]  ;;  %2791 = vmatpush1.msra.mxu0 %v2736_v38 }
 0x195   : > { %v1239_v12 = vpop.f32.mrf.mxu1  ;;  %1998 = vmatmul.mubr.f32.gmra.mxu1 %v6507_v30  ;;  %v801_v60 = vpop.f32.mrf.mxu0  ;;  %v1728_v0 = vrot.slane %v5410_v9, 1  ;;  %5065 = vmatprep.subr.mxu1 %v2772_v48  ;;  %v1732_v9 = vrot.slane %v5411_v34, 1 }
 0x196   : > { %v6583_v32 = vadd.f32 %v1239_v12, %v6440_v27  ;;  %2002 = vmatprep.mubr.f32.mxu1 %v6527_v7  ;;  %v1730_v60 = vrot.slane %v339_v4, 1  ;;  %2792 = vmatprep.subr.mxu0 %v7842_v45 }
 0x197   : > { %v1241_v50 = vpop.f32.mrf.mxu1  ;;  %v804_v30 = vpop.f32.mrf.mxu0  ;;  %5036 = vmatmul.mubr.f32.gmra.mxu0 %v6575_v62  ;;  %v6597_v12 = vsel %vm1656_vm1, %v1727_v10, %v1728_v0  ;;  %5066 = vmatpush3.msra.mxu1 %v2772_v48 }
 0x198   : > { %v6588_v43 = vadd.f32 %v6375_v21, %v804_v30  ;;  %5038 = vmatprep.mubr.f32.mxu0 %v6579_v6  ;;  %v5412_v50 = vld [vmem:[#allocation2 + $0x1f0] sm:$0xff]  ;;  %v343_v30 = vld [vmem:[#allocation2 + $0x1f8] sm:$0xff]  ;;  %2793 = vmatpush1.msra.mxu0 %v2735_v56  ;;  %v6609_v10 = vsel %vm1656_vm1, %v1728_v0, %v1730_v60 }
 0x199   : > { %v1244_v27 = vpop.f32.mrf.mxu1  ;;  %2003 = vmatmul.mubr.f32.gmra.mxu1 %v6510_v53  ;;  %v806_v38 = vpop.f32.mrf.mxu0  ;;  %v1733_v21 = vrot.slane %v5412_v50, 1  ;;  %2794 = vmatprep.subr.mxu0 %v7842_v45  ;;  %v2733_v53 = vld [vmem:[#allocation8 + $0x1a8] sm:$0xff]  ;;  %v1735_v56 = vrot.slane %v343_v30, 1  ;;  %v5414_v50 = vld [vmem:[#allocation2 + $0x210] sm:$0xff] }
 0x19a   : > { %v6600_v47 = vadd.f32 %v1244_v27, %v6450_v33  ;;  %2007 = vmatprep.mubr.f32.mxu1 %v6541_v61  ;;  %2795 = vmatpush1.msra.mxu0 %v2734_v16  ;;  %v5413_v38 = vld [vmem:[#allocation2 + $0x208] sm:$0xff]  ;;  %v2771_v16 = vld [vmem:[#allocation8 + $0x2d8] sm:$0xff] }
 0x19b   : > { %v1246_v4 = vpop.f32.mrf.mxu1  ;;  %v6603_v24 = vpop.f32.mrf.mxu0  ;;  %5039 = vmatmul.mubr.f32.gmra.mxu0 %v6592_v40  ;;  %v6613_v48 = vsel %vm1656_vm1, %v1732_v9, %v1733_v21  ;;  %v1737_v34 = vrot.slane %v5413_v38, 1  ;;  %2796 = vmatprep.subr.mxu0 %v7842_v45  ;;  %v6626_v9 = vsel %vm1656_vm1, %v1733_v21, %v1735_v56  ;;  %v2730_v21 = vld [vmem:[#allocation8 + $0x190] sm:$0xff]  ;;  %v1745_v56 = vrot.slane %v351_v8, 1 }
 0x19c   : > { %7843 = vst [vmem:[#allocation28_spill] sm:$0xff] %v6600_v47  ;;  %5041 = vmatprep.mubr.f32.mxu0 %v6597_v12  ;;  %v1738_v4 = vrot.slane %v5414_v50, 1  ;;  %v347_v47 = vld [vmem:[#allocation2 + $0x218] sm:$0xff]  ;;  %2797 = vmatpush1.msra.mxu0 %v2733_v53  ;;  %v5416_v50 = vld [vmem:[#allocation2 + $0x230] sm:$0xff] }
 0x19d   : > { %v1249_v33 = vpop.f32.mrf.mxu1  ;;  %2008 = vmatmul.mubr.f32.gmra.mxu1 %v6523_v19  ;;  %v811_v27 = vpop.f32.mrf.mxu0  ;;  %2798 = vmatprep.subr.mxu0 %v7842_v45  ;;  %v1740_v30 = vrot.slane %v347_v47, 1 }
 0x19e   : > { %v6617_v0 = vadd.f32 %v1249_v33, %v6460_v55  ;;  %2012 = vmatprep.mubr.f32.mxu1 %v6545_v52  ;;  %2799 = vmatpush1.msra.mxu0 %v2732_v44  ;;  %v6630_v53 = vsel %vm1656_vm1, %v1737_v34, %v1738_v4  ;;  %v5415_v27 = vld [vmem:[#allocation2 + $0x228] sm:$0xff] }
 0x19f   : > { %v1251_v19 = vpop.f32.mrf.mxu1  ;;  %v6620_v60 = vpop.f32.mrf.mxu0  ;;  %5042 = vmatmul.mubr.f32.gmra.mxu0 %v6609_v10  ;;  %v1742_v38 = vrot.slane %v5415_v27, 1  ;;  %5067 = vmatprep.subr.mxu1 %v2771_v16  ;;  %v6642_v47 = vsel %vm1656_vm1, %v1738_v4, %v1740_v30 }
 0x1a0   : > { %5044 = vmatprep.mubr.f32.mxu0 %v6613_v48  ;;  %v1743_v19 = vrot.slane %v5416_v50, 1  ;;  %2800 = vmatprep.subr.mxu0 %v7842_v45  ;;  %v5418_v50 = vld [vmem:[#allocation2 + $0x250] sm:$0xff] }
 0x1a1   : > { %v1254_v55 = vpop.f32.mrf.mxu1  ;;  %2013 = vmatmul.mubr.f32.gmra.mxu1 %v6527_v7  ;;  %v816_v33 = vpop.f32.mrf.mxu0  ;;  %2801 = vmatpush1.msra.mxu0 %v2731_v3 }
 0x1a2   : > { %v6633_v5 = vadd.f32 %v1254_v55, %v6469_v59  ;;  %2017 = vmatprep.mubr.f32.mxu1 %v6558_v11  ;;  %5068 = vmatpush3.msra.mxu1 %v2771_v16  ;;  %v6646_v55 = vsel %vm1656_vm1, %v1742_v38, %v1743_v19  ;;  %v5417_v33 = vld [vmem:[#allocation2 + $0x248] sm:$0xff]  ;;  %v355_v16 = vld [vmem:[#allocation2 + $0x258] sm:$0xff]  ;;  %v6659_v30 = vsel %vm1656_vm1, %v1743_v19, %v1745_v56 }
 0x1a3   : > { %v1256_v44 = vpop.f32.mrf.mxu1  ;;  %v6637_v7 = vpop.f32.mrf.mxu0  ;;  %5045 = vmatmul.mubr.f32.gmra.mxu0 %v6626_v9  ;;  %v1784_v27 = vrot.slane %v5417_v33, 1  ;;  %2802 = vmatprep.subr.mxu0 %v7842_v45  ;;  %v1787_v38 = vrot.slane %v355_v16, 1 }
 0x1a4   : > { %7844 = vst [vmem:[#allocation29_spill] sm:$0xff] %v6633_v5  ;;  %5047 = vmatprep.mubr.f32.mxu0 %v6630_v53  ;;  %v1785_v44 = vrot.slane %v5418_v50, 1  ;;  %v2729_v5 = vld [vmem:[#allocation8 + $0x188] sm:$0xff]  ;;  %2803 = vmatpush1.msra.mxu0 %v2730_v21  ;;  %v1793_v21 = vrot.slane %v6420_v49, 1 }
 0x1a5   : > { %v1259_v59 = vpop.f32.mrf.mxu1  ;;  %2018 = vmatmul.mubr.f32.gmra.mxu1 %v6541_v61  ;;  %v821_v34 = vpop.f32.mrf.mxu0  ;;  %2804 = vmatprep.subr.mxu0 %v7842_v45  ;;  %v2728_v61 = vld [vmem:[#allocation8 + $0x180] sm:$0xff] }
 0x1a6   : > { %v6650_v4 = vadd.f32 %v1259_v59, %v6477_v58  ;;  %2022 = vmatprep.mubr.f32.mxu1 %v6562_v35  ;;  %2805 = vmatpush1.msra.mxu0 %v2729_v5  ;;  %v2770_v58 = vld [vmem:[#allocation8 + $0x2d0] sm:$0xff]  ;;  %v1792_v59 = vrot.slane %v6408_v41, 1  ;;  %v6665_v50 = vsel %vm1656_vm1, %v1784_v27, %v1785_v44  ;;  %v2759_v5 = vld [vmem:[#allocation8 + $0x278] sm:$0xff]  ;;  %v6677_v49 = vsel %vm1656_vm1, %v1785_v44, %v1787_v38  ;;  %v2757_v38 = vld [vmem:[#allocation8 + $0x268] sm:$0xff] }
 0x1a7   : > { %v1261_v3 = vpop.f32.mrf.mxu1  ;;  %v6653_v8 = vpop.f32.mrf.mxu0  ;;  %5048 = vmatmul.mubr.f32.gmra.mxu0 %v6642_v47  ;;  %2806 = vmatprep.subr.mxu0 %v7842_v45 }
 0x1a8   : > { %5050 = vmatprep.mubr.f32.mxu0 %v6646_v55  ;;  %v359_v3 = vld [vmem:[#allocation2 + $0x278] sm:$0xff]  ;;  %2807 = vmatpush1.msra.mxu0 %v2728_v61  ;;  %v1794_v16 = vsel %vm1656_vm1, %v1792_v59, %v1793_v21  ;;  %v2758_v61 = vld [vmem:[#allocation8 + $0x270] sm:$0xff] }
 0x1a9   : > { %v1264_v34 = vpop.f32.mrf.mxu1  ;;  %2023 = vmatmul.mubr.f32.gmra.mxu1 %v6545_v52  ;;  %v826_v33 = vpop.f32.mrf.mxu0  ;;  %5069 = vmatprep.subr.mxu1 %v2770_v58  ;;  %v1795_v52 = vrot.slane %v359_v3, 1  ;;  %v2756_v3 = vld [vmem:[#allocation8 + $0x260] sm:$0xff] }
 0x1aa   : > { %v6669_v19 = vadd.f32 %v1264_v34, %v6491_v46  ;;  %2027 = vmatprep.mubr.f32.mxu1 %v6575_v62  ;;  %2808 = vmatprep.subr.mxu0 %v7842_v45 }
 0x1ab   : > { %v1266_v41 = vpop.f32.mrf.mxu1  ;;  %v6672_v56 = vpop.f32.mrf.mxu0  ;;  %5051 = vmatmul.mubr.f32.gmra.mxu0 %v6659_v30  ;;  %5070 = vmatpush3.msra.mxu1 %v2770_v58  ;;  %v2769_v58 = vld [vmem:[#allocation8 + $0x2c8] sm:$0xff] }
 0x1ac   : > { %5053 = vmatprep.mubr.f32.mxu0 %v6665_v50  ;;  %2809 = vmatpush2.msra.mxu0 %v2759_v5 }
 0x1ad   : > { %v1269_v46 = vpop.f32.mrf.mxu1  ;;  %2028 = vmatmul.mubr.f32.gmra.mxu1 %v6558_v11  ;;  %v831_v27 = vpop.f32.mrf.mxu0  ;;  %2810 = vmatprep.subr.mxu0 %v7842_v45  ;;  %v1796_v11 = vsel %vm1656_vm1, %v1793_v21, %v1795_v52  ;;  %v2768_v21 = vld [vmem:[#allocation8 + $0x2c0] sm:$0xff] }
 0x1ae   : > { %v6683_v34 = vadd.f32 %v1269_v46, %v6503_v31  ;;  %2032 = vmatprep.mubr.f32.mxu1 %v6579_v6  ;;  %2811 = vmatpush2.msra.mxu0 %v2758_v61 }
 0x1af   : > { %v1271_v33 = vpop.f32.mrf.mxu1  ;;  %v6686_v44 = vpop.f32.mrf.mxu0  ;;  %5054 = vmatmul.mubr.f32.gmra.mxu0 %v6677_v49  ;;  %2812 = vmatprep.subr.mxu0 %v7842_v45 }
 0x1b0   : > { %5056 = vmatprep.mubr.f32.mxu0 %v1794_v16  ;;  %2813 = vmatpush2.msra.mxu0 %v2757_v38  ;;  %v2754_v16 = vld [vmem:[#allocation8 + $0x250] sm:$0xff]  ;;  %v2753_v38 = vld [vmem:[#allocation8 + $0x248] sm:$0xff] }
 0x1b1   : > { %v1274_v59 = vpop.f32.mrf.mxu1  ;;  %2033 = vmatmul.mubr.f32.gmra.mxu1 %v6562_v35  ;;  %v836_v31 = vpop.f32.mrf.mxu0  ;;  %2814 = vmatprep.subr.mxu0 %v7842_v45  ;;  %v2755_v35 = vld [vmem:[#allocation8 + $0x258] sm:$0xff] }
 0x1b2   : > { %v6694_v5 = vadd.f32 %v1274_v59, %v6519_v25  ;;  %2037 = vmatprep.mubr.f32.mxu1 %v6592_v40  ;;  %2815 = vmatpush2.msra.mxu0 %v2756_v3  ;;  %v2752_v31 = vld [vmem:[#allocation8 + $0x240] sm:$0xff] }
 0x1b3   : > { %v1276_v41 = vpop.f32.mrf.mxu1  ;;  %v6697_v46 = vpop.f32.mrf.mxu0  ;;  %5057 = vmatmul.mubr.f32.gmra.mxu0 %v1796_v11  ;;  %5071 = vmatprep.subr.mxu1 %v2769_v58 }
 0x1b4   : > { %2816 = vmatprep.subr.mxu0 %v7842_v45  ;;  %5072 = vmatpush3.msra.mxu1 %v2769_v58  ;;  %v1045_v41 = vadd.f32 %v6355_v22, %v6569_v17  ;;  %v2749_v22 = vld [vmem:[#allocation8 + $0x228] sm:$0xff] }
 0x1b5   : > { %v1279_v52 = vpop.f32.mrf.mxu1  ;;  %2038 = vmatmul.mubr.f32.gmra.mxu1 %v6575_v62  ;;  %v841_v27 = vpop.f32.mrf.mxu0  ;;  %2817 = vmatpush2.msra.mxu0 %v2755_v35  ;;  %v2767_v62 = vld [vmem:[#allocation8 + $0x2b8] sm:$0xff]  ;;  %v2766_v35 = vld [vmem:[#allocation8 + $0x2b0] sm:$0xff]  ;;  %v2765_v17 = vld [vmem:[#allocation8 + $0x2a8] sm:$0xff] }
 0x1b6   : > { %v6703_v25 = vadd.f32 %v1279_v52, %v6537_v15  ;;  %2042 = vmatprep.mubr.f32.mxu1 %v6597_v12  ;;  %5073 = vmatprep.subr.mxu1 %v2768_v21  ;;  %v2750_v27 = vld [vmem:[#allocation8 + $0x230] sm:$0xff] }
 0x1b7   : > { %v1281_v61 = vpop.f32.mrf.mxu1  ;;  %v6706_v33 = vpop.f32.mrf.mxu0  ;;  %2818 = vmatprep.subr.mxu0 %v7842_v45  ;;  %5074 = vmatpush3.msra.mxu1 %v2768_v21 }
 0x1b8   : > { %2819 = vmatpush2.msra.mxu0 %v2754_v16  ;;  %5075 = vmatprep.subr.mxu1 %v2767_v62 }
 0x1b9   : > { %v1284_v11 = vpop.f32.mrf.mxu1  ;;  %2043 = vmatmul.mubr.f32.gmra.mxu1 %v6579_v6  ;;  %v846_v59 = vpop.f32.mrf.mxu0  ;;  %2820 = vmatprep.subr.mxu0 %v7842_v45  ;;  %v2751_v6 = vld [vmem:[#allocation8 + $0x238] sm:$0xff] }
 0x1ba   : > { %v6711_v15 = vadd.f32 %v1284_v11, %v6554_v2  ;;  %2047 = vmatprep.mubr.f32.mxu1 %v6609_v10  ;;  %2821 = vmatpush2.msra.mxu0 %v2753_v38  ;;  %v2748_v11 = vld [vmem:[#allocation8 + $0x220] sm:$0xff] }
 0x1bb   : > { %v1286_v3 = vpop.f32.mrf.mxu1  ;;  %v6715_v58 = vpop.f32.mrf.mxu0  ;;  %2822 = vmatprep.subr.mxu0 %v7842_v45  ;;  %5076 = vmatpush3.msra.mxu1 %v2767_v62 }
 0x1bc   : > { %2823 = vmatpush2.msra.mxu0 %v2752_v31  ;;  %5077 = vmatprep.subr.mxu1 %v2766_v35  ;;  %v1055_v3 = vadd.f32 %v6372_v36, %v6603_v24  ;;  %v1060_v36 = vadd.f32 %v6389_v18, %v6620_v60  ;;  %v2763_v24 = vld [vmem:[#allocation8 + $0x298] sm:$0xff]  ;;  %v2744_v18 = vld [vmem:[#allocation8 + $0x200] sm:$0xff]  ;;  %v1065_v60 = vadd.f32 %v6385_v28, %v6637_v7 }
 0x1bd   : > { %v1289_v2 = vpop.f32.mrf.mxu1  ;;  %2048 = vmatmul.mubr.f32.gmra.mxu1 %v6592_v40  ;;  %v851_v21 = vpop.f32.mrf.mxu0  ;;  %2824 = vmatprep.subr.mxu0 %v7842_v45  ;;  %v1070_v28 = vadd.f32 %v6402_v29, %v6653_v8  ;;  %v1075_v29 = vadd.f32 %v6398_v42, %v6672_v56 }
 0x1be   : > { %v6721_v52 = vadd.f32 %v1289_v2, %v1045_v41  ;;  %2052 = vmatprep.mubr.f32.mxu1 %v6613_v48  ;;  %2825 = vmatpush2.msra.mxu0 %v2751_v6  ;;  %v2764_v41 = vld [vmem:[#allocation8 + $0x2a0] sm:$0xff]  ;;  %v2746_v2 = vld [vmem:[#allocation8 + $0x210] sm:$0xff] }
 0x1bf   : > { %v1291_v16 = vpop.f32.mrf.mxu1  ;;  %v6725_v61 = vpop.f32.mrf.mxu0  ;;  %2826 = vmatprep.subr.mxu0 %v7842_v45  ;;  %5078 = vmatpush3.msra.mxu1 %v2766_v35 }
 0x1c0   : > { %2827 = vmatpush2.msra.mxu0 %v2750_v27  ;;  %5079 = vmatprep.subr.mxu1 %v2765_v17 }
 0x1c1   : > { %v1294_v40 = vpop.f32.mrf.mxu1  ;;  %2053 = vmatmul.mubr.f32.gmra.mxu1 %v6597_v12  ;;  %v856_v38 = vpop.f32.mrf.mxu0  ;;  %2828 = vmatprep.subr.mxu0 %v7842_v45  ;;  %v2747_v12 = vld [vmem:[#allocation8 + $0x218] sm:$0xff] }
 0x1c2   : > { %v6730_v62 = vadd.f32 %v1294_v40, %v6588_v43  ;;  %2057 = vmatprep.mubr.f32.mxu1 %v6626_v9  ;;  %2829 = vmatpush2.msra.mxu0 %v2749_v22  ;;  %v2762_v40 = vld [vmem:[#allocation8 + $0x290] sm:$0xff] }
 0x1c3   : > { %v1296_v59 = vpop.f32.mrf.mxu1  ;;  %v6734_v31 = vpop.f32.mrf.mxu0  ;;  %2830 = vmatprep.subr.mxu0 %v7842_v45  ;;  %5080 = vmatpush3.msra.mxu1 %v2765_v17 }
 0x1c4   : > { %2831 = vmatpush2.msra.mxu0 %v2748_v11  ;;  %5081 = vmatprep.subr.mxu1 %v2764_v41 }
 0x1c5   : > { %v1299_v43 = vpop.f32.mrf.mxu1  ;;  %2058 = vmatmul.mubr.f32.gmra.mxu1 %v6609_v10  ;;  %v861_v6 = vpop.f32.mrf.mxu0  ;;  %2832 = vmatprep.subr.mxu0 %v7842_v45  ;;  %v2745_v10 = vld [vmem:[#allocation8 + $0x208] sm:$0xff] }
 0x1c6   : > { %v6740_v35 = vadd.f32 %v1299_v43, %v1055_v3  ;;  %2062 = vmatprep.mubr.f32.mxu1 %v6630_v53  ;;  %2833 = vmatpush2.msra.mxu0 %v2747_v12  ;;  %v2761_v3 = vld [vmem:[#allocation8 + $0x288] sm:$0xff]  ;;  %v6768_v6 = vld [vmem:[#allocation8 + $0x178] sm:$0xff] }
 0x1c7   : > { %v1301_v21 = vpop.f32.mrf.mxu1  ;;  %v6744_v27 = vpop.f32.mrf.mxu0  ;;  %2834 = vmatprep.subr.mxu0 %v7842_v45  ;;  %5082 = vmatpush3.msra.mxu1 %v2764_v41 }
 0x1c8   : > { %2835 = vmatpush2.msra.mxu0 %v2746_v2  ;;  %5083 = vmatprep.subr.mxu1 %v2763_v24  ;;  %v2760_v2 = vld [vmem:[#allocation8 + $0x280] sm:$0xff] }
 0x1c9   : > { %v1304_v16 = vpop.f32.mrf.mxu1  ;;  %2063 = vmatmul.mubr.f32.gmra.mxu1 %v6613_v48  ;;  %v866_v22 = vpop.f32.mrf.mxu0  ;;  %2836 = vmatprep.subr.mxu0 %v7842_v45 }
 0x1ca   : > { %v6750_v17 = vadd.f32 %v1304_v16, %v1060_v36  ;;  %2067 = vmatprep.mubr.f32.mxu1 %v6642_v47  ;;  %2837 = vmatpush2.msra.mxu0 %v2745_v10 }
 0x1cb   : > { %v1306_v38 = vpop.f32.mrf.mxu1  ;;  %v6754_v11 = vpop.f32.mrf.mxu0  ;;  %5084 = vmatpush3.msra.mxu1 %v2763_v24  ;;  %2838 = vmatprep.subr.mxu0 %v7842_v45 }
 0x1cc   : > { %5085 = vmatprep.subr.mxu1 %v2762_v40  ;;  %2839 = vmatpush2.msra.mxu0 %v2744_v18 }
 0x1cd   : > { %v1309_v48 = vpop.f32.mrf.mxu1  ;;  %2068 = vmatmul.mubr.f32.gmra.mxu1 %v6626_v9  ;;  %v871_v59 = vpop.f32.mrf.mxu0  ;;  %5139 = vmatprep.subr.mxu0 %v6768_v6 }
 0x1ce   : > { %v6760_v12 = vadd.f32 %v1309_v48, %v1065_v60  ;;  %2072 = vmatprep.mubr.f32.mxu1 %v6646_v55  ;;  %5086 = vmatpush3.msra.mxu1 %v2762_v40  ;;  %v1080_v40 = vadd.f32 %v6423_v51, %v6686_v44 }
 0x1cf   : > { %v1311_v41 = vpop.f32.mrf.mxu1  ;;  %v6763_v43 = vpop.f32.mrf.mxu0  ;;  %5087 = vmatprep.subr.mxu1 %v2761_v3 }
 0x1d0   : > { %5088 = vmatpush3.msra.mxu1 %v2761_v3 }
 0x1d1   : > { %v1314_v7 = vpop.f32.mrf.mxu1  ;;  %2073 = vmatmul.mubr.f32.gmra.mxu1 %v6630_v53  ;;  %v876_v9 = vpop.f32.mrf.mxu0  ;;  %5089 = vmatprep.subr.mxu1 %v2760_v2 }
 0x1d2   : > { %v6770_v21 = vadd.f32 %v1314_v7, %v1070_v28  ;;  %2077 = vmatprep.mubr.f32.mxu1 %v6659_v30  ;;  %5090 = vmatpush3.msra.mxu1 %v2760_v2 }
 0x1d3   : > { %v1316_v36 = vpop.f32.mrf.mxu1  ;;  %v6774_v24 = vpop.f32.mrf.mxu0  ;;  %3226 = vmatprep.subr.mxu1 %v7842_v45 }
 0x1d5   : > { %v1319_v8 = vpop.f32.mrf.mxu1  ;;  %2078 = vmatmul.mubr.f32.gmra.mxu1 %v6642_v47  ;;  %v881_v53 = vpop.f32.mrf.mxu0 }
 0x1d6   : > { %v6779_v10 = vadd.f32 %v1319_v8, %v1075_v29  ;;  %2082 = vmatprep.mubr.f32.mxu1 %v6665_v50  ;;  %v1085_v50 = vadd.f32 %v6416_v37, %v6697_v46  ;;  %v1095_v37 = vadd.f32 %v6431_v63, %v6715_v58  ;;  %v1100_v29 = vadd.f32 %v6447_v14, %v6725_v61 }
 0x1d7   : > { %v1321_v16 = vpop.f32.mrf.mxu1  ;;  %v6782_v22 = vpop.f32.mrf.mxu0  ;;  %v1105_v63 = vadd.f32 %v6442_v23, %v6734_v31 }
 0x1d9   : > { %v1324_v38 = vpop.f32.mrf.mxu1  ;;  %2083 = vmatmul.mubr.f32.gmra.mxu1 %v6646_v55  ;;  %v886_v42 = vpop.f32.mrf.mxu0  ;;  %v1090_v55 = vadd.f32 %v6435_v1, %v6706_v33 }
 0x1da   : > { %v6788_v56 = vadd.f32 %v1324_v38, %v1080_v40  ;;  %2087 = vmatprep.mubr.f32.mxu1 %v6677_v49 }
 0x1db   : > { %v1326_v47 = vpop.f32.mrf.mxu1  ;;  %v6791_v18 = vpop.f32.mrf.mxu0 }
 0x1dc   : > { %v1110_v47 = vadd.f32 %v6457_v39, %v6744_v27 }
 0x1dd   : > { %v1329_v60 = vpop.f32.mrf.mxu1  ;;  %2088 = vmatmul.mubr.f32.gmra.mxu1 %v6659_v30  ;;  %v891_v48 = vpop.f32.mrf.mxu0 }
 0x1de   : > { %v6796_v59 = vadd.f32 %v1329_v60, %v1085_v50 }
 0x1df   : > { %v1331_v51 = vpop.f32.mrf.mxu1  ;;  %v6798_v44 = vpop.f32.mrf.mxu0 }
 0x1e0   : > { %v1115_v51 = vadd.f32 %v6453_v26, %v6754_v11 }
 0x1e1   : > { %v1334_v3 = vpop.f32.mrf.mxu1  ;;  %v896_v49 = vpop.f32.mrf.mxu0 }
 0x1e2   : > { %v6802_v41 = vadd.f32 %v1334_v3, %v1090_v55 }
 0x1e3   : > { %v1336_v28 = vpop.f32.mrf.mxu1  ;;  %v6804_v7 = vpop.f32.mrf.mxu0 }
 0x1e4   : > { %v1120_v28 = vadd.f32 %v6466_v54, %v6763_v43 }
 0x1e5   : > { %v1339_v30 = vpop.f32.mrf.mxu1  ;;  %v901_v46 = vpop.f32.mrf.mxu0 }
 0x1e6   : > { %v6808_v9 = vadd.f32 %v1339_v30, %v1095_v37 }
 0x1e7   : > { %v1341_v2 = vpop.f32.mrf.mxu1  ;;  %v4921_v36 = vpop.f32.mrf.mxu0 }
 0x1e8   : > { %v6813_v1 = vadd.f32 %v4921_v36, %v6514_v13  ;;  %v1125_v2 = vadd.f32 %v6464_v20, %v6774_v24  ;;  %v7849_v24 = vld [vmem:[#allocation21_spill] sm:$0xff] }
 0x1e9   : > { %v1344_v33 = vpop.f32.mrf.mxu1  ;;  %v6815_v8 = vpop.f32.mrf.mxu0 }
 0x1ea   : > { %v6817_v53 = vadd.f32 %v1344_v33, %v1100_v29 }
 0x1eb   : > { %v1346_v16 = vpop.f32.mrf.mxu1  ;;  %v4924_v40 = vpop.f32.mrf.mxu0 }
 0x1ec   : > { %v6822_v58 = vadd.f32 %v4924_v40, %v6548_v57  ;;  %v7847_v16 = vld [vmem:[#allocation22_spill] sm:$0xff] }
 0x1ed   : > { %v1349_v38 = vpop.f32.mrf.mxu1  ;;  %v6824_v42 = vpop.f32.mrf.mxu0  ;;  %v1130_v40 = vadd.f32 %v7847_v16, %v6782_v22 }
 0x1ee   : > { %v6826_v14 = vadd.f32 %v1349_v38, %v1105_v63 }
 0x1ef   : > { %v1351_v13 = vpop.f32.mrf.mxu1  ;;  %v4927_v61 = vpop.f32.mrf.mxu0 }
 0x1f0   : > { %v6831_v50 = vadd.f32 %v4927_v61, %v6583_v32 }
 0x1f1   : > { %v1354_v60 = vpop.f32.mrf.mxu1  ;;  %v6833_v48 = vpop.f32.mrf.mxu0 }
 0x1f2   : > { %v6835_v23 = vadd.f32 %v1354_v60, %v1110_v47  ;;  %v1135_v47 = vadd.f32 %v7849_v24, %v6791_v18 }
 0x1f3   : > { %v1356_v57 = vpop.f32.mrf.mxu1  ;;  %v4930_v31 = vpop.f32.mrf.mxu0 }
 0x1f4   : > { %7845 = vst [vmem:[#allocation30_spill] sm:$0xff] %v6835_v23  ;;  %v6840_v55 = vadd.f32 %v4930_v31, %v6617_v0 }
 0x1f5   : > { %v1359_v3 = vpop.f32.mrf.mxu1  ;;  %v6842_v49 = vpop.f32.mrf.mxu0 }
 0x1f6   : > { %v6844_v39 = vadd.f32 %v1359_v3, %v1115_v51  ;;  %v7850_v3 = vld [vmem:[#allocation24_spill] sm:$0xff] }
 0x1f7   : > { %v1361_v32 = vpop.f32.mrf.mxu1  ;;  %v4933_v27 = vpop.f32.mrf.mxu0 }
 0x1f8   : > { %v6849_v37 = vadd.f32 %v4933_v27, %v6650_v4  ;;  %v1140_v32 = vadd.f32 %v7850_v3, %v6798_v44 }
 0x1f9   : > { %v1364_v30 = vpop.f32.mrf.mxu1  ;;  %v6851_v46 = vpop.f32.mrf.mxu0 }
 0x1fa   : > { %v6853_v26 = vadd.f32 %v1364_v30, %v1120_v28 }
 0x1fb   : > { %v1366_v0 = vpop.f32.mrf.mxu1  ;;  %v4936_v11 = vpop.f32.mrf.mxu0 }
 0x1fc   : > { %7846 = vst [vmem:[#allocation31_spill] sm:$0xff] %v6853_v26  ;;  %v6858_v36 = vadd.f32 %v4936_v11, %v6683_v34  ;;  %v7852_v11 = vld [vmem:[#allocation23_spill] sm:$0xff] }
 0x1fd   : > { %v1369_v29 = vpop.f32.mrf.mxu1  ;;  %v6860_v33 = vpop.f32.mrf.mxu0 }
 0x1fe   : > { %v1370_v54 = vadd.f32 %v1369_v29, %v1125_v2  ;;  %v1145_v2 = vadd.f32 %v7852_v11, %v6804_v7 }
 0x1ff   : > { %v1371_v43 = vpop.f32.mrf.mxu1  ;;  %v4939_v4 = vpop.f32.mrf.mxu0 }
 0x200   : > { %v6865_v63 = vadd.f32 %v4939_v4, %v6703_v25 }
 0x201   : > { %v1374_v38 = vpop.f32.mrf.mxu1  ;;  %v6867_v13 = vpop.f32.mrf.mxu0 }
 0x202   : > { %v6869_v61 = vadd.f32 %v1374_v38, %v1130_v40 }
 0x203   : > { %v1376_v20 = vpop.f32.mrf.mxu1  ;;  %v4942_v34 = vpop.f32.mrf.mxu0 }
 0x204   : > { %7848 = vst [vmem:[#allocation22_spill] sm:$0xff] %v6869_v61  ;;  %v6874_v60 = vadd.f32 %v4942_v34, %v6721_v52 }
 0x205   : > { %v1379_v57 = vpop.f32.mrf.mxu1  ;;  %v6876_v31 = vpop.f32.mrf.mxu0 }
 0x206   : > { %v1380_v22 = vadd.f32 %v1379_v57, %v1135_v47 }
 0x207   : > { %v1381_v51 = vpop.f32.mrf.mxu1  ;;  %v4945_v25 = vpop.f32.mrf.mxu0 }
 0x208   : > { %v6881_v27 = vadd.f32 %v4945_v25, %v6740_v35 }
 0x209   : > { %v1384_v28 = vpop.f32.mrf.mxu1  ;;  %v6883_v30 = vpop.f32.mrf.mxu0 }
 0x20a   : > { %v6885_v0 = vadd.f32 %v1384_v28, %v1140_v32 }
 0x20b   : > { %v1386_v18 = vpop.f32.mrf.mxu1  ;;  %v4948_v52 = vpop.f32.mrf.mxu0 }
 0x20c   : > { %7851 = vst [vmem:[#allocation21_spill] sm:$0xff] %v6885_v0  ;;  %v6890_v29 = vadd.f32 %v4948_v52, %v6760_v12 }
 0x20d   : > { %v1389_v43 = vpop.f32.mrf.mxu1  ;;  %v6892_v4 = vpop.f32.mrf.mxu0 }
 0x20e   : > { %v1390_v44 = vadd.f32 %v1389_v43, %v1145_v2 }
 0x20f   : > { %v1391_v16 = vpop.f32.mrf.mxu1  ;;  %v4951_v35 = vpop.f32.mrf.mxu0 }
 0x210   : > { %v6895_v40 = vadd.f32 %v4951_v35, %v6779_v10 }
 0x211   : > { %v1914_v38 = vpop.f32.mrf.mxu1  ;;  %v6897_v20 = vpop.f32.mrf.mxu0 }
 0x213   : > { %v1916_v34 = vpop.f32.mrf.mxu1  ;;  %v4954_v24 = vpop.f32.mrf.mxu0 }
 0x214   : > { %v6900_v47 = vadd.f32 %v4954_v24, %v6796_v59 }
 0x215   : > { %v1919_v7 = vpop.f32.mrf.mxu1  ;;  %v6902_v12 = vpop.f32.mrf.mxu0 }
 0x217   : > { %v1921_v57 = vpop.f32.mrf.mxu1  ;;  %v4957_v51 = vpop.f32.mrf.mxu0 }
 0x218   : > { %v6905_v25 = vadd.f32 %v4957_v51, %v6808_v9 }
 0x219   : > { %v1924_v3 = vpop.f32.mrf.mxu1  ;;  %v6907_v32 = vpop.f32.mrf.mxu0 }
 0x21b   : > { %v1926_v10 = vpop.f32.mrf.mxu1  ;;  %v4960_v28 = vpop.f32.mrf.mxu0 }
 0x21c   : > { %v6910_v18 = vadd.f32 %v4960_v28, %v6826_v14 }
 0x21d   : > { %v1929_v52 = vpop.f32.mrf.mxu1  ;;  %v6912_v11 = vpop.f32.mrf.mxu0 }
 0x21e   : > { %7853 = vst [vmem:[#allocation24_spill] sm:$0xff] %v6910_v18  ;;  %v7863_v18 = vld [vmem:[#allocation26_spill] sm:$0xff] }
 0x21f   : > { %v1931_v59 = vpop.f32.mrf.mxu1  ;;  %v4963_v2 = vpop.f32.mrf.mxu0 }
 0x220   : > { %v6915_v43 = vadd.f32 %v4963_v2, %v6844_v39 }
 0x221   : > { %v1934_v16 = vpop.f32.mrf.mxu1  ;;  %v6917_v35 = vpop.f32.mrf.mxu0 }
 0x222   : > { %7854 = vst [vmem:[#allocation23_spill] sm:$0xff] %v6915_v43  ;;  %7855 = vst [vmem:[#allocation32_spill] sm:$0xff] %v6917_v35 }
 0x223   : > { %v1936_v9 = vpop.f32.mrf.mxu1  ;;  %v4966_v34 = vpop.f32.mrf.mxu0 }
 0x224   : > { %v6919_v24 = vadd.f32 %v4966_v34, %v1370_v54 }
 0x225   : > { %v1939_v57 = vpop.f32.mrf.mxu1  ;;  %v6921_v51 = vpop.f32.mrf.mxu0 }
 0x226   : > { %7856 = vst [vmem:[#allocation33_spill] sm:$0xff] %v6919_v24  ;;  %7857 = vst [vmem:[#allocation34_spill] sm:$0xff] %v6921_v51 }
 0x227   : > { %v1941_v14 = vpop.f32.mrf.mxu1  ;;  %v4969_v10 = vpop.f32.mrf.mxu0 }
 0x228   : > { %v6923_v28 = vadd.f32 %v4969_v10, %v1380_v22  ;;  %v6936_v14 = vld [vmem:[%s7823_s2] ss:$0 sm:$0xff] }
 0x229   : > { %v6925_v0 = vpop.f32.mrf.mxu1  ;;  %v6927_v59 = vpop.f32.mrf.mxu0 }
 0x22a   : > { %7858 = vst [vmem:[#allocation35_spill] sm:$0xff] %v6923_v28  ;;  %7859 = vst [vmem:[#allocation36_spill] sm:$0xff] %v6927_v59  ;;  %v7862_v28 = vld [vmem:[#allocation25_spill] sm:$0xff] }
 0x22b   : > { %v1946_v39 = vpop.f32.mrf.mxu1  ;;  %v4972_v2 = vpop.f32.mrf.mxu0 }
 0x22c   : > { %v6929_v61 = vadd.f32 %v4972_v2, %v1390_v44  ;;  %v1460_v39 = vadd.f32 %v6815_v8, %v7862_v28  ;;  %v1470_v8 = vadd.f32 %v6824_v42, %v7863_v18 }
 0x22d   : > { %v1949_v26 = vpop.f32.mrf.mxu1  ;;  %v6931_v9 = vpop.f32.mrf.mxu0 }
 0x22e   : > { %7860 = vst [vmem:[#allocation37_spill] sm:$0xff] %v6929_v61  ;;  %7861 = vst [vmem:[#allocation38_spill] sm:$0xff] %v6931_v9 }
 0x22f   : > { %v1951_v54 = vpop.f32.mrf.mxu1  ;;  %v5007_v34 = vpop.f32.mrf.mxu0 }
 0x230   : > { %v2165_v24 = vadd.f32 %v5007_v34, %v1919_v7 }
 0x231   : > { %v6938_v22 = vpop.f32.mrf.mxu1  ;;  %v2159_v10 = vpop.f32.mrf.mxu0 }
 0x232   : > { %v2339_v44 = vadd.f32 %v2165_v24, %v6813_v1  ;;  %v2160_v2 = vadd.f32 %v2159_v10, %v1914_v38 }
 0x233   : > { %v1956_v61 = vpop.f32.mrf.mxu1  ;;  %v5010_v59 = vpop.f32.mrf.mxu0 }
 0x234   : > { %v2382_v54 = vadd.f32 %v6936_v14, %v2339_v44  ;;  %v2338_v9 = vadd.f32 %v2160_v2, %v1460_v39  ;;  %v2175_v7 = vadd.f32 %v5010_v59, %v1929_v52  ;;  %v7864_v52 = vld [vmem:[#allocation27_spill] sm:$0xff] }
 0x235   : > { %v1959_v34 = vpop.f32.mrf.mxu1  ;;  %v2169_v51 = vpop.f32.mrf.mxu0  ;;  %v1480_v59 = vadd.f32 %v6833_v48, %v7864_v52 }
 0x236   : > { %vm2418_vm2 = vcmp.ge.f32.partialorder %v2382_v54, 0.0  ;;  %v2454_v43 = vmul.f32 0.05, %v2382_v54  ;;  %v2381_v35 = vadd.f32 %v6936_v14, %v2338_v9  ;;  %v2341_v23 = vadd.f32 %v2175_v7, %v6822_v58 }
 0x237   : > { %v2170_v28 = vadd.f32 %v2169_v51, %v1924_v3  ;;  %v1961_v1 = vpop.f32.mrf.mxu1  ;;  %v5013_v38 = vpop.f32.mrf.mxu0 }
 0x238   : > { %v2490_v61 = vsel %vm2418_vm2, %v2382_v54, %v2454_v43  ;;  %vm2417_vm3 = vcmp.ge.f32.partialorder %v2381_v35, 0.0  ;;  %v2453_v24 = vmul.f32 0.05, %v2381_v35  ;;  %v2384_v10 = vadd.f32 %v6936_v14, %v2341_v23 }
 0x239   : > { %2526 = vst [vmem:[#allocation4 + $0x10] sm:$0xff] %v2490_v61  ;;  %v2340_v39 = vadd.f32 %v2170_v28, %v1470_v8  ;;  %v2185_v44 = vadd.f32 %v5013_v38, %v1939_v57  ;;  %v6951_v9 = vpop.f32.mrf.mxu1  ;;  %v2179_v58 = vpop.f32.mrf.mxu0  ;;  %v7865_v28 = vld [vmem:[#allocation28_spill] sm:$0xff] }
 0x23a   : > { %2602 = vst [vmem:[#allocation4 + $0x17] sm:$0x3] %v7842_v45  ;;  %v2489_v42 = vsel %vm2417_vm3, %v2381_v35, %v2453_v24  ;;  %vm2420_vm4 = vcmp.ge.f32.partialorder %v2384_v10, 0.0  ;;  %v2456_v3 = vmul.f32 0.05, %v2384_v10  ;;  %v2180_v18 = vadd.f32 %v2179_v58, %v1934_v16 }
 0x23b   : > { %2525 = vst [vmem:[#allocation4 + $0x8] sm:$0xff] %v2489_v42  ;;  %v2383_v43 = vadd.f32 %v6936_v14, %v2340_v39  ;;  %v2343_v23 = vadd.f32 %v2185_v44, %v6831_v50  ;;  %v1966_v51 = vpop.f32.mrf.mxu1  ;;  %v5016_v2 = vpop.f32.mrf.mxu0  ;;  %v1490_v50 = vadd.f32 %v6842_v49, %v7865_v28 }
 0x23c   : > { %2600 = vst [vmem:[#allocation4 + $0x7] sm:$0xff] %v7842_v45  ;;  %2601 = vst [vmem:[#allocation4 + $0xf] sm:$0xff] %v7842_v45  ;;  %v6958_v48 = vsel %vm2420_vm4, %v2384_v10, %v2456_v3  ;;  %v2342_v57 = vadd.f32 %v2180_v18, %v1480_v59  ;;  %v2195_v54 = vadd.f32 %v5016_v2, %v1949_v26 }
 0x23d   : > { %2528 = vst [vmem:[#allocation4 + $0x30] sm:$0xff] %v6958_v48  ;;  %vm2419_vm5 = vcmp.ge.f32.partialorder %v2383_v43, 0.0  ;;  %v2455_v35 = vmul.f32 0.05, %v2383_v43  ;;  %v2386_v16 = vadd.f32 %v6936_v14, %v2343_v23  ;;  %v1969_v7 = vpop.f32.mrf.mxu1  ;;  %v2189_v8 = vpop.f32.mrf.mxu0 }
 0x23e   : > { %v2385_v1 = vadd.f32 %v6936_v14, %v2342_v57  ;;  %v2345_v38 = vadd.f32 %v2195_v54, %v6840_v55  ;;  %v2190_v61 = vadd.f32 %v2189_v8, %v6925_v0 }
 0x23f   : > { %v6967_v24 = vsel %vm2419_vm5, %v2383_v43, %v2455_v35  ;;  %vm2422_vm6 = vcmp.ge.f32.partialorder %v2386_v16, 0.0  ;;  %v2458_v26 = vmul.f32 0.05, %v2386_v16  ;;  %v1971_v10 = vpop.f32.mrf.mxu1  ;;  %v5019_v52 = vpop.f32.mrf.mxu0  ;;  %v7866_v43 = vld [vmem:[#allocation29_spill] sm:$0xff]  ;;  %v2689_v35 = vld [vmem:[#allocation8 + $0x170] sm:$0xff] }
 0x240   : > { %2527 = vst [vmem:[#allocation4 + $0x28] sm:$0xff] %v6967_v24  ;;  %vm2421_vm7 = vcmp.ge.f32.partialorder %v2385_v1, 0.0  ;;  %v2457_v59 = vmul.f32 0.05, %v2385_v1  ;;  %v2388_v39 = vadd.f32 %v6936_v14, %v2345_v38  ;;  %v2344_v44 = vadd.f32 %v2190_v61, %v1490_v50  ;;  %2840 = vmatprep.mubr.f32.mxu0 %v6967_v24 }
 0x241   : > { %v6972_v49 = vsel %vm2422_vm6, %v2386_v16, %v2458_v26  ;;  %v2205_v55 = vadd.f32 %v5019_v52, %v1959_v34  ;;  %v6974_v58 = vpop.f32.mrf.mxu1  ;;  %v2199_v0 = vpop.f32.mrf.mxu0  ;;  %v1500_v23 = vadd.f32 %v6851_v46, %v7866_v43  ;;  %v2658_v16 = vld [vmem:[#allocation8 + $0x78] sm:$0xff] }
 0x242   : > { %2530 = vst [vmem:[#allocation4 + $0x50] sm:$0xff] %v6972_v49  ;;  %v6977_v42 = vsel %vm2421_vm7, %v2385_v1, %v2457_v59  ;;  %vm2424_vm8 = vcmp.ge.f32.partialorder %v2388_v39, 0.0  ;;  %v2460_v3 = vmul.f32 0.05, %v2388_v39  ;;  %v2387_v18 = vadd.f32 %v6936_v14, %v2344_v44 }
 0x243   : > { %2529 = vst [vmem:[#allocation4 + $0x48] sm:$0xff] %v6977_v42  ;;  %v2347_v51 = vadd.f32 %v2205_v55, %v6849_v37  ;;  %v2200_v34 = vadd.f32 %v2199_v0, %v6938_v22  ;;  %v1976_v2 = vpop.f32.mrf.mxu1  ;;  %v5022_v57 = vpop.f32.mrf.mxu0  ;;  %v2691_v54 = vld [vmem:[#allocation4 + $0x8] sm:$0xff]  ;;  %5091 = vmatprep.mubr.f32.mxu1 %v6977_v42  ;;  %v1510_v37 = vadd.f32 %v6860_v33, %v6669_v19  ;;  %v2692_v61 = vld [vmem:[#allocation4 + $0x10] sm:$0xff] }
 0x244   : > { %v6986_v8 = vsel %vm2424_vm8, %v2388_v39, %v2460_v3  ;;  %vm2423_vm9 = vcmp.ge.f32.partialorder %v2387_v18, 0.0  ;;  %v2459_v28 = vmul.f32 0.05, %v2387_v18  ;;  %v2215_v50 = vadd.f32 %v5022_v57, %v1969_v7  ;;  %2841 = vmatmul.mubr.f32.vlgmr.msra.gmra.mxu0 %v2691_v54  ;;  %5092 = vmatmul.mubr.f32.vlgmr.msra.gmra.mxu1 %v6972_v49  ;;  %v2688_v19 = vld [vmem:[#allocation8 + $0x168] sm:$0xff]  ;;  %v2657_v55 = vld [vmem:[#allocation8 + $0x70] sm:$0xff] }
 0x245   : > { %2532 = vst [vmem:[#allocation4 + $0x70] sm:$0xff] %v6986_v8  ;;  %v2390_v46 = vadd.f32 %v6936_v14, %v2347_v51  ;;  %v2346_v22 = vadd.f32 %v2200_v34, %v1500_v23  ;;  %v1979_v1 = vpop.f32.mrf.mxu1  ;;  %v2209_v38 = vpop.f32.mrf.mxu0  ;;  %2845 = vmatprep.mubr.f32.mxu0 %v6958_v48  ;;  %5140 = vmatpush3.msra.mxu0 %v6768_v6 }
 0x246   : > { %v6995_v26 = vsel %vm2423_vm9, %v2387_v18, %v2459_v28  ;;  %v2349_v7 = vadd.f32 %v2215_v50, %v6858_v36  ;;  %v2210_v10 = vadd.f32 %v2209_v38, %v6951_v9  ;;  %5141 = vmatprep.subr.mxu0 %v2689_v35  ;;  %3227 = vmatpush1.msra.mxu1 %v2658_v16  ;;  %v2687_v9 = vld [vmem:[#allocation8 + $0x160] sm:$0xff] }
 0x247   : > { %2531 = vst [vmem:[#allocation4 + $0x68] sm:$0xff] %v6995_v26  ;;  %vm2426_vm10 = vcmp.ge.f32.partialorder %v2390_v46, 0.0  ;;  %v2462_v33 = vmul.f32 0.05, %v2390_v46  ;;  %v2389_v52 = vadd.f32 %v6936_v14, %v2346_v22  ;;  %v1981_v59 = vpop.f32.mrf.mxu1  ;;  %v5025_v39 = vpop.f32.mrf.mxu0  ;;  %5094 = vmatprep.mubr.f32.mxu1 %v6995_v26  ;;  %5142 = vmatpush3.msra.mxu0 %v2689_v35  ;;  %v1520_v2 = vadd.f32 %v6867_v13, %v6694_v5  ;;  %v2686_v5 = vld [vmem:[#allocation8 + $0x158] sm:$0xff] }
 0x248   : > { %v2392_v6 = vadd.f32 %v6936_v14, %v2349_v7  ;;  %v2348_v44 = vadd.f32 %v2210_v10, %v1510_v37  ;;  %v2225_v36 = vadd.f32 %v5025_v39, %v1979_v1  ;;  %2846 = vmatmul.mubr.f32.gmra.mxu0 %v2692_v61  ;;  %5095 = vmatmul.mubr.f32.gmra.mxu1 %v6986_v8  ;;  %v2685_v59 = vld [vmem:[#allocation8 + $0x150] sm:$0xff]  ;;  %v2655_v39 = vld [vmem:[#allocation8 + $0x60] sm:$0xff] }
 0x249   : > { %v7004_v0 = vsel %vm2426_vm10, %v2390_v46, %v2462_v33  ;;  %vm2425_vm11 = vcmp.ge.f32.partialorder %v2389_v52, 0.0  ;;  %v2461_v3 = vmul.f32 0.05, %v2389_v52  ;;  %v1984_v18 = vpop.f32.mrf.mxu1  ;;  %v2219_v43 = vpop.f32.mrf.mxu0  ;;  %2850 = vmatprep.mubr.f32.mxu0 %v6977_v42  ;;  %5143 = vmatprep.subr.mxu0 %v2688_v19  ;;  %v2656_v46 = vld [vmem:[#allocation8 + $0x68] sm:$0xff] }
 0x24a   : > { %2534 = vst [vmem:[#allocation4 + $0x90] sm:$0xff] %v7004_v0  ;;  %vm2428_vm12 = vcmp.ge.f32.partialorder %v2392_v6, 0.0  ;;  %v2464_v23 = vmul.f32 0.05, %v2392_v6  ;;  %v2391_v51 = vadd.f32 %v6936_v14, %v2348_v44  ;;  %v2351_v34 = vadd.f32 %v2225_v36, %v6865_v63  ;;  %5144 = vmatpush3.msra.mxu0 %v2688_v19  ;;  %3228 = vmatprep.subr.mxu1 %v7842_v45 }
 0x24b   : > { %v7013_v57 = vsel %vm2425_vm11, %v2389_v52, %v2461_v3  ;;  %v2220_v54 = vadd.f32 %v2219_v43, %v6974_v58  ;;  %v1986_v35 = vpop.f32.mrf.mxu1  ;;  %v5028_v16 = vpop.f32.mrf.mxu0  ;;  %5145 = vmatprep.subr.mxu0 %v2687_v9  ;;  %3229 = vmatpush1.msra.mxu1 %v2657_v55  ;;  %v1540_v36 = vadd.f32 %v6883_v30, %v6730_v62  ;;  %v2684_v62 = vld [vmem:[#allocation8 + $0x148] sm:$0xff]  ;;  %v2654_v30 = vld [vmem:[#allocation8 + $0x58] sm:$0xff] }
 0x24c   : > { %2533 = vst [vmem:[#allocation4 + $0x88] sm:$0xff] %v7013_v57  ;;  %v7017_v28 = vsel %vm2428_vm12, %v2392_v6, %v2464_v23  ;;  %vm2427_vm13 = vcmp.ge.f32.partialorder %v2391_v51, 0.0  ;;  %v2463_v63 = vmul.f32 0.05, %v2391_v51  ;;  %v2394_v50 = vadd.f32 %v6936_v14, %v2351_v34  ;;  %2851 = vmatmul.mubr.f32.gmra.mxu0 %v6967_v24  ;;  %5097 = vmatprep.mubr.f32.mxu1 %v7013_v57 }
 0x24d   : > { %2536 = vst [vmem:[#allocation4 + $0xb0] sm:$0xff] %v7017_v28  ;;  %v2350_v13 = vadd.f32 %v2220_v54, %v1520_v2  ;;  %v1989_v58 = vpop.f32.mrf.mxu1  ;;  %v2229_v37 = vpop.f32.mrf.mxu0  ;;  %2855 = vmatprep.mubr.f32.mxu0 %v6972_v49  ;;  %5098 = vmatmul.mubr.f32.gmra.mxu1 %v7004_v0  ;;  %v1530_v24 = vadd.f32 %v6876_v31, %v6711_v15 }
 0x24e   : > { %v7025_v22 = vsel %vm2427_vm13, %v2391_v51, %v2463_v63  ;;  %vm2430_vm14 = vcmp.ge.f32.partialorder %v2394_v50, 0.0  ;;  %v2466_v1 = vmul.f32 0.05, %v2394_v50  ;;  %v2235_v38 = vadd.f32 %v5028_v16, %v1989_v58  ;;  %5146 = vmatpush3.msra.mxu0 %v2687_v9  ;;  %3230 = vmatprep.subr.mxu1 %v7842_v45 }
 0x24f   : > { %2535 = vst [vmem:[#allocation4 + $0xa8] sm:$0xff] %v7025_v22  ;;  %v2393_v61 = vadd.f32 %v6936_v14, %v2350_v13  ;;  %v2230_v7 = vadd.f32 %v2229_v37, %v1984_v18  ;;  %v1991_v10 = vpop.f32.mrf.mxu1  ;;  %v5031_v19 = vpop.f32.mrf.mxu0  ;;  %5100 = vmatprep.mubr.f32.mxu1 %v7025_v22  ;;  %5147 = vmatprep.subr.mxu0 %v2686_v5  ;;  %v2653_v13 = vld [vmem:[#allocation8 + $0x50] sm:$0xff] }
 0x250   : > { %v7033_v33 = vsel %vm2430_vm14, %v2394_v50, %v2466_v1  ;;  %v2353_v52 = vadd.f32 %v2235_v38, %v6874_v60  ;;  %2856 = vmatmul.mubr.f32.gmra.mxu0 %v6958_v48  ;;  %3231 = vmatpush1.msra.mxu1 %v2656_v46  ;;  %v1550_v58 = vadd.f32 %v6892_v4, %v6750_v17  ;;  %v2652_v17 = vld [vmem:[#allocation8 + $0x48] sm:$0xff]  ;;  %v2651_v10 = vld [vmem:[#allocation8 + $0x40] sm:$0xff] }
 0x251   : > { %2538 = vst [vmem:[#allocation4 + $0xd0] sm:$0xff] %v7033_v33  ;;  %vm2429_vm15 = vcmp.ge.f32.partialorder %v2393_v61, 0.0  ;;  %v2465_v15 = vmul.f32 0.05, %v2393_v61  ;;  %v2352_v31 = vadd.f32 %v2230_v7, %v1530_v24  ;;  %v1994_v6 = vpop.f32.mrf.mxu1  ;;  %v2239_v44 = vpop.f32.mrf.mxu0  ;;  %2860 = vmatprep.mubr.f32.mxu0 %v6995_v26  ;;  %5101 = vmatmul.mubr.f32.gmra.mxu1 %v7017_v28 }
 0x252   : > { %v2396_v60 = vadd.f32 %v6936_v14, %v2353_v52  ;;  %v2240_v48 = vadd.f32 %v2239_v44, %v1994_v6  ;;  %5148 = vmatpush3.msra.mxu0 %v2686_v5  ;;  %3232 = vmatprep.subr.mxu1 %v7842_v45 }
 0x253   : > { %v7044_v9 = vsel %vm2429_vm15, %v2393_v61, %v2465_v15  ;;  %v2395_v55 = vadd.f32 %v6936_v14, %v2352_v31  ;;  %v1996_v3 = vpop.f32.mrf.mxu1  ;;  %v5034_v18 = vpop.f32.mrf.mxu0  ;;  %5149 = vmatprep.subr.mxu0 %v2685_v59  ;;  %3233 = vmatpush1.msra.mxu1 %v2655_v39  ;;  %v2682_v31 = vld [vmem:[#allocation8 + $0x138] sm:$0xff] }
 0x254   : > { %2537 = vst [vmem:[#allocation4 + $0xc8] sm:$0xff] %v7044_v9  ;;  %vm2432_vm0 = vcmp.ge.f32.partialorder %v2396_v60, 0.0  ;;  %v2468_v43 = vmul.f32 0.05, %v2396_v60  ;;  %v2354_v23 = vadd.f32 %v2240_v48, %v1540_v36  ;;  %2861 = vmatmul.mubr.f32.gmra.mxu0 %v6977_v42  ;;  %5103 = vmatprep.mubr.f32.mxu1 %v7044_v9  ;;  %v1560_v36 = vadd.f32 %v6897_v20, %v6770_v21  ;;  %v2649_v48 = vld [vmem:[#allocation8 + $0x30] sm:$0xff]  ;;  %v2648_v21 = vld [vmem:[#allocation8 + $0x28] sm:$0xff] }
 0x255   : > { %vm2431_vm1 = vcmp.ge.f32.partialorder %v2395_v55, 0.0  ;;  %v2467_v51 = vmul.f32 0.05, %v2395_v55  ;;  %v1999_v34 = vpop.f32.mrf.mxu1  ;;  %2865 = vmatprep.mubr.f32.mxu0 %v6986_v8  ;;  %5104 = vmatmul.mubr.f32.gmra.mxu1 %v7033_v33  ;;  %v2249_v63 = vpop.f32.mrf.mxu0 }
 0x256   : > { %v7052_v2 = vsel %vm2432_vm0, %v2396_v60, %v2468_v43  ;;  %v2397_v54 = vadd.f32 %v6936_v14, %v2354_v23  ;;  %v2245_v35 = vadd.f32 %v5031_v19, %v1999_v34  ;;  %5150 = vmatpush3.msra.mxu0 %v2685_v59  ;;  %3234 = vmatprep.subr.mxu1 %v7842_v45 }
 0x257   : > { %2540 = vst [vmem:[#allocation4 + $0xf0] sm:$0xff] %v7052_v2  ;;  %v7057_v42 = vsel %vm2431_vm1, %v2395_v55, %v2467_v51  ;;  %v2001_v16 = vpop.f32.mrf.mxu1  ;;  %5151 = vmatprep.subr.mxu0 %v2684_v62  ;;  %3235 = vmatpush1.msra.mxu1 %v2654_v30  ;;  %v5037_v24 = vpop.f32.mrf.mxu0 }
 0x258   : > { %2539 = vst [vmem:[#allocation4 + $0xe8] sm:$0xff] %v7057_v42  ;;  %vm2433_vm2 = vcmp.ge.f32.partialorder %v2397_v54, 0.0  ;;  %v2469_v50 = vmul.f32 0.05, %v2397_v54  ;;  %v2355_v5 = vadd.f32 %v2245_v35, %v6881_v27  ;;  %2866 = vmatmul.mubr.f32.gmra.mxu0 %v6972_v49  ;;  %5106 = vmatprep.mubr.f32.mxu1 %v7057_v42  ;;  %v2683_v27 = vld [vmem:[#allocation8 + $0x140] sm:$0xff]  ;;  %v2681_v16 = vld [vmem:[#allocation8 + $0x130] sm:$0xff] }
 0x259   : > { %v2004_v37 = vpop.f32.mrf.mxu1  ;;  %2870 = vmatprep.mubr.f32.mxu0 %v7013_v57  ;;  %5107 = vmatmul.mubr.f32.gmra.mxu1 %v7052_v2  ;;  %v2259_v15 = vpop.f32.mrf.mxu0 }
 0x25a   : > { %v7067_v46 = vsel %vm2433_vm2, %v2397_v54, %v2469_v50  ;;  %v2398_v1 = vadd.f32 %v6936_v14, %v2355_v5  ;;  %v2250_v38 = vadd.f32 %v2249_v63, %v2004_v37  ;;  %5152 = vmatpush3.msra.mxu0 %v2684_v62  ;;  %3236 = vmatprep.subr.mxu1 %v7842_v45  ;;  %v2647_v62 = vld [vmem:[#allocation8 + $0x20] sm:$0xff] }
 0x25b   : > { %2541 = vst [vmem:[#allocation4 + $0x108] sm:$0xff] %v7067_v46  ;;  %v2006_v49 = vpop.f32.mrf.mxu1  ;;  %5109 = vmatprep.mubr.f32.mxu1 %v7067_v46  ;;  %3237 = vmatpush1.msra.mxu1 %v2653_v13  ;;  %v1570_v5 = vadd.f32 %v6902_v12, %v6788_v56  ;;  %v2644_v56 = vld [vmem:[#allocation8 + $0x8] sm:$0xff] }
 0x25c   : > { %vm2434_vm3 = vcmp.ge.f32.partialorder %v2398_v1, 0.0  ;;  %v2470_v4 = vmul.f32 0.05, %v2398_v1  ;;  %v2356_v61 = vadd.f32 %v2250_v38, %v1550_v58  ;;  %2871 = vmatmul.mubr.f32.gmra.mxu0 %v6995_v26  ;;  %3238 = vmatprep.subr.mxu1 %v7842_v45  ;;  %v2650_v26 = vld [vmem:[#allocation8 + $0x38] sm:$0xff]  ;;  %v2645_v58 = vld [vmem:[#allocation8 + $0x10] sm:$0xff] }
 0x25d   : > { %v2009_v7 = vpop.f32.mrf.mxu1  ;;  %2875 = vmatprep.mubr.f32.mxu0 %v7004_v0  ;;  %5153 = vmatprep.subr.mxu0 %v2683_v27 }
 0x25e   : > { %v7076_v19 = vsel %vm2434_vm3, %v2398_v1, %v2470_v4  ;;  %v2399_v52 = vadd.f32 %v6936_v14, %v2356_v61  ;;  %v2255_v59 = vadd.f32 %v5034_v18, %v2009_v7  ;;  %3239 = vmatpush1.msra.mxu1 %v2652_v17  ;;  %5154 = vmatpush3.msra.mxu0 %v2683_v27 }
 0x25f   : > { %2542 = vst [vmem:[#allocation4 + $0x110] sm:$0xff] %v7076_v19  ;;  %v2011_v39 = vpop.f32.mrf.mxu1  ;;  %5110 = vmatmul.mubr.f32.gmra.mxu1 %v7076_v19  ;;  %3240 = vmatprep.subr.mxu1 %v7842_v45 }
 0x260   : > { %vm2435_vm4 = vcmp.ge.f32.partialorder %v2399_v52, 0.0  ;;  %v2471_v6 = vmul.f32 0.05, %v2399_v52  ;;  %v2357_v44 = vadd.f32 %v2255_v59, %v6890_v29  ;;  %2876 = vmatmul.mubr.f32.gmra.mxu0 %v6986_v8  ;;  %3241 = vmatpush1.msra.mxu1 %v2651_v10  ;;  %v5040_v8 = vpop.f32.mrf.mxu0 }
 0x261   : > { %v2014_v60 = vpop.f32.mrf.mxu1  ;;  %2880 = vmatprep.mubr.f32.mxu0 %v7025_v22  ;;  %3242 = vmatprep.subr.mxu1 %v7842_v45 }
 0x262   : > { %v7088_v55 = vsel %vm2435_vm4, %v2399_v52, %v2471_v6  ;;  %v2400_v3 = vadd.f32 %v6936_v14, %v2357_v44  ;;  %v2260_v18 = vadd.f32 %v2259_v15, %v2014_v60  ;;  %3243 = vmatpush1.msra.mxu1 %v2650_v26  ;;  %5155 = vmatprep.subr.mxu0 %v2682_v31  ;;  %v2269_v35 = vpop.f32.mrf.mxu0  ;;  %v2680_v52 = vld [vmem:[#allocation8 + $0x128] sm:$0xff] }
 0x263   : > { %2543 = vst [vmem:[#allocation4 + $0x128] sm:$0xff] %v7088_v55  ;;  %v2016_v29 = vpop.f32.mrf.mxu1  ;;  %5112 = vmatprep.mubr.f32.mxu1 %v7088_v55  ;;  %3244 = vmatprep.subr.mxu1 %v7842_v45  ;;  %v1580_v15 = vadd.f32 %v6907_v32, %v6802_v41  ;;  %v2672_v41 = vld [vmem:[#allocation8 + $0xe8] sm:$0xff] }
 0x264   : > { %vm2436_vm5 = vcmp.ge.f32.partialorder %v2400_v3, 0.0  ;;  %v2472_v20 = vmul.f32 0.05, %v2400_v3  ;;  %v2358_v43 = vadd.f32 %v2260_v18, %v1560_v36  ;;  %2881 = vmatmul.mubr.f32.gmra.mxu0 %v7013_v57  ;;  %3245 = vmatpush1.msra.mxu1 %v2649_v48  ;;  %v2646_v57 = vld [vmem:[#allocation8 + $0x18] sm:$0xff] }
 0x265   : > { %v2019_v23 = vpop.f32.mrf.mxu1  ;;  %2885 = vmatprep.mubr.f32.mxu0 %v7017_v28  ;;  %3246 = vmatprep.subr.mxu1 %v7842_v45 }
 0x266   : > { %v7097_v30 = vsel %vm2436_vm5, %v2400_v3, %v2472_v20  ;;  %v2401_v51 = vadd.f32 %v6936_v14, %v2358_v43  ;;  %v2265_v34 = vadd.f32 %v5037_v24, %v2019_v23  ;;  %3247 = vmatpush1.msra.mxu1 %v2648_v21  ;;  %5156 = vmatpush3.msra.mxu0 %v2682_v31  ;;  %v2643_v24 = vld [vmem:[#allocation8] sm:$0xff]  ;;  %v2673_v31 = vld [vmem:[#allocation8 + $0xf0] sm:$0xff] }
 0x267   : > { %2544 = vst [vmem:[#allocation4 + $0x130] sm:$0xff] %v7097_v30  ;;  %v2021_v54 = vpop.f32.mrf.mxu1  ;;  %5113 = vmatmul.mubr.f32.gmra.mxu1 %v7097_v30  ;;  %3248 = vmatprep.subr.mxu1 %v7842_v45  ;;  %v2671_v3 = vld [vmem:[#allocation8 + $0xe0] sm:$0xff] }
 0x268   : > { %vm2437_vm6 = vcmp.ge.f32.partialorder %v2401_v51, 0.0  ;;  %v2473_v63 = vmul.f32 0.05, %v2401_v51  ;;  %v2359_v50 = vadd.f32 %v2265_v34, %v6895_v40  ;;  %2886 = vmatmul.mubr.f32.gmra.mxu0 %v7004_v0  ;;  %3249 = vmatpush1.msra.mxu1 %v2647_v62  ;;  %v5043_v0 = vpop.f32.mrf.mxu0  ;;  %v2679_v43 = vld [vmem:[#allocation8 + $0x120] sm:$0xff]  ;;  %v2669_v54 = vld [vmem:[#allocation8 + $0xd0] sm:$0xff] }
 0x269   : > { %v2024_v13 = vpop.f32.mrf.mxu1  ;;  %2890 = vmatprep.mubr.f32.mxu0 %v7044_v9  ;;  %3250 = vmatprep.subr.mxu1 %v7842_v45 }
 0x26a   : > { %v7109_v37 = vsel %vm2437_vm6, %v2401_v51, %v2473_v63  ;;  %v2402_v1 = vadd.f32 %v6936_v14, %v2359_v50  ;;  %v2270_v38 = vadd.f32 %v2269_v35, %v2024_v13  ;;  %3251 = vmatpush1.msra.mxu1 %v2646_v57  ;;  %5157 = vmatprep.subr.mxu0 %v2681_v16  ;;  %v2279_v10 = vpop.f32.mrf.mxu0 }
 0x26b   : > { %2545 = vst [vmem:[#allocation4 + $0x148] sm:$0xff] %v7109_v37  ;;  %v2026_v40 = vpop.f32.mrf.mxu1  ;;  %5115 = vmatprep.mubr.f32.mxu1 %v7109_v37  ;;  %3252 = vmatprep.subr.mxu1 %v7842_v45  ;;  %v1590_v51 = vadd.f32 %v6912_v11, %v6817_v53  ;;  %v2668_v53 = vld [vmem:[#allocation8 + $0xc8] sm:$0xff] }
 0x26c   : > { %vm2438_vm7 = vcmp.ge.f32.partialorder %v2402_v1, 0.0  ;;  %v2474_v12 = vmul.f32 0.05, %v2402_v1  ;;  %v2360_v27 = vadd.f32 %v2270_v38, %v1570_v5  ;;  %2891 = vmatmul.mubr.f32.gmra.mxu0 %v7025_v22  ;;  %3253 = vmatpush1.msra.mxu1 %v2645_v58  ;;  %v2674_v22 = vld [vmem:[#allocation8 + $0xf8] sm:$0xff]  ;;  %v2667_v5 = vld [vmem:[#allocation8 + $0xc0] sm:$0xff] }
 0x26d   : > { %v2029_v49 = vpop.f32.mrf.mxu1  ;;  %2895 = vmatprep.mubr.f32.mxu0 %v7033_v33  ;;  %3254 = vmatprep.subr.mxu1 %v7842_v45 }
 0x26e   : > { %v7118_v17 = vsel %vm2438_vm7, %v2402_v1, %v2474_v12  ;;  %v2403_v4 = vadd.f32 %v6936_v14, %v2360_v27  ;;  %v2275_v61 = vadd.f32 %v5040_v8, %v2029_v49  ;;  %3255 = vmatpush1.msra.mxu1 %v2644_v56  ;;  %5158 = vmatpush3.msra.mxu0 %v2681_v16  ;;  %v7867_v12 = vld [vmem:[#allocation24_spill] sm:$0xff]  ;;  %v7868_v49 = vld [vmem:[#allocation30_spill] sm:$0xff] }
 0x26f   : > { %2546 = vst [vmem:[#allocation4 + $0x150] sm:$0xff] %v7118_v17  ;;  %v2031_v7 = vpop.f32.mrf.mxu1  ;;  %5116 = vmatmul.mubr.f32.gmra.mxu1 %v7118_v17  ;;  %3256 = vmatprep.subr.mxu1 %v7842_v45 }
 0x270   : > { %vm2439_vm8 = vcmp.ge.f32.partialorder %v2403_v4, 0.0  ;;  %v2475_v59 = vmul.f32 0.05, %v2403_v4  ;;  %v2361_v39 = vadd.f32 %v2275_v61, %v6900_v47  ;;  %2896 = vmatmul.mubr.f32.gmra.mxu0 %v7017_v28  ;;  %3257 = vmatpush1.msra.mxu1 %v2643_v24  ;;  %v5046_v28 = vpop.f32.mrf.mxu0  ;;  %v7869_v24 = vld [vmem:[#allocation32_spill] sm:$0xff]  ;;  %v2665_v7 = vld [vmem:[#allocation8 + $0xb0] sm:$0xff] }
 0x271   : > { %v2034_v26 = vpop.f32.mrf.mxu1  ;;  %2900 = vmatprep.mubr.f32.mxu0 %v7057_v42  ;;  %3258 = vmatprep.subr.mxu1 %v7842_v45 }
 0x272   : > { %v7130_v6 = vsel %vm2439_vm8, %v2403_v4, %v2475_v59  ;;  %v2404_v44 = vadd.f32 %v6936_v14, %v2361_v39  ;;  %v2280_v36 = vadd.f32 %v2279_v10, %v2034_v26  ;;  %3259 = vmatpush2.msra.mxu1 %v2674_v22  ;;  %5159 = vmatprep.subr.mxu0 %v2680_v52  ;;  %v2289_v20 = vpop.f32.mrf.mxu0  ;;  %v2664_v39 = vld [vmem:[#allocation8 + $0xa8] sm:$0xff] }
 0x273   : > { %2547 = vst [vmem:[#allocation4 + $0x168] sm:$0xff] %v7130_v6  ;;  %v2036_v47 = vpop.f32.mrf.mxu1  ;;  %5118 = vmatprep.mubr.f32.mxu1 %v7130_v6  ;;  %3260 = vmatprep.subr.mxu1 %v7842_v45  ;;  %v1600_v4 = vadd.f32 %v7869_v24, %v7868_v49  ;;  %v5419_v49 = vld [vmem:[%s7823_s2] ss:$0 sm:$0xff] }
 0x274   : > { %vm2440_vm9 = vcmp.ge.f32.partialorder %v2404_v44, 0.0  ;;  %v2476_v32 = vmul.f32 0.05, %v2404_v44  ;;  %v2362_v60 = vadd.f32 %v2280_v36, %v1580_v15  ;;  %2901 = vmatmul.mubr.f32.gmra.mxu0 %v7044_v9  ;;  %3261 = vmatpush2.msra.mxu1 %v2673_v31  ;;  %v2670_v9 = vld [vmem:[#allocation8 + $0xd8] sm:$0xff] }
 0x275   : > { %v2039_v48 = vpop.f32.mrf.mxu1  ;;  %2905 = vmatprep.mubr.f32.mxu0 %v7052_v2  ;;  %3262 = vmatprep.subr.mxu1 %v7842_v45 }
 0x276   : > { %v7139_v18 = vsel %vm2440_vm9, %v2404_v44, %v2476_v32  ;;  %v2405_v29 = vadd.f32 %v6936_v14, %v2362_v60  ;;  %v2285_v8 = vadd.f32 %v5043_v0, %v2039_v48  ;;  %3263 = vmatpush2.msra.mxu1 %v2672_v41  ;;  %5160 = vmatpush3.msra.mxu0 %v2680_v52  ;;  %v2678_v0 = vld [vmem:[#allocation8 + $0x118] sm:$0xff]  ;;  %v2663_v44 = vld [vmem:[#allocation8 + $0xa0] sm:$0xff]  ;;  %v2677_v60 = vld [vmem:[#allocation8 + $0x110] sm:$0xff] }
 0x277   : > { %2548 = vst [vmem:[#allocation4 + $0x170] sm:$0xff] %v7139_v18  ;;  %v2041_v21 = vpop.f32.mrf.mxu1  ;;  %5119 = vmatmul.mubr.f32.gmra.mxu1 %v7139_v18  ;;  %3264 = vmatprep.subr.mxu1 %v7842_v45 }
 0x278   : > { %vm2441_vm10 = vcmp.ge.f32.partialorder %v2405_v29, 0.0  ;;  %v2477_v23 = vmul.f32 0.05, %v2405_v29  ;;  %v2363_v62 = vadd.f32 %v2285_v8, %v6905_v25  ;;  %2906 = vmatmul.mubr.f32.gmra.mxu0 %v7033_v33  ;;  %3265 = vmatpush2.msra.mxu1 %v2671_v3  ;;  %v5049_v33 = vpop.f32.mrf.mxu0  ;;  %v7870_v3 = vld [vmem:[#allocation23_spill] sm:$0xff]  ;;  %v7872_v21 = vld [vmem:[#allocation34_spill] sm:$0xff] }
 0x279   : > { %v2044_v34 = vpop.f32.mrf.mxu1  ;;  %2910 = vmatprep.mubr.f32.mxu0 %v7067_v46  ;;  %3266 = vmatprep.subr.mxu1 %v7842_v45  ;;  %v7871_v8 = vld [vmem:[#allocation31_spill] sm:$0xff] }
 0x27a   : > { %v7151_v35 = vsel %vm2441_vm10, %v2405_v29, %v2477_v23  ;;  %v2406_v57 = vadd.f32 %v6936_v14, %v2363_v62  ;;  %v2290_v16 = vadd.f32 %v2289_v20, %v2044_v34  ;;  %3267 = vmatpush2.msra.mxu1 %v2670_v9  ;;  %5161 = vmatprep.subr.mxu0 %v2679_v43  ;;  %v2299_v40 = vpop.f32.mrf.mxu0 }
 0x27b   : > { %2549 = vst [vmem:[#allocation4 + $0x188] sm:$0xff] %v7151_v35  ;;  %v2046_v25 = vpop.f32.mrf.mxu1  ;;  %5121 = vmatprep.mubr.f32.mxu1 %v7151_v35  ;;  %3268 = vmatprep.subr.mxu1 %v7842_v45  ;;  %v1610_v20 = vadd.f32 %v7872_v21, %v7871_v8 }
 0x27c   : > { %vm2442_vm11 = vcmp.ge.f32.partialorder %v2406_v57, 0.0  ;;  %v2478_v11 = vmul.f32 0.05, %v2406_v57  ;;  %v2364_v63 = vadd.f32 %v2290_v16, %v1590_v51  ;;  %2911 = vmatmul.mubr.f32.gmra.mxu0 %v7057_v42  ;;  %3269 = vmatpush2.msra.mxu1 %v2669_v54  ;;  %v2666_v42 = vld [vmem:[#allocation8 + $0xb8] sm:$0xff]  ;;  %v5052_v59 = vpop.f32.mrf.mxu0  ;;  %v2660_v54 = vld [vmem:[#allocation8 + $0x88] sm:$0xff] }
 0x27d   : > { %v2049_v50 = vpop.f32.mrf.mxu1  ;;  %2915 = vmatprep.mubr.f32.mxu0 %v7076_v19  ;;  %3270 = vmatprep.subr.mxu1 %v7842_v45 }
 0x27e   : > { %v7160_v13 = vsel %vm2442_vm11, %v2406_v57, %v2478_v11  ;;  %v2407_v58 = vadd.f32 %v6936_v14, %v2364_v63  ;;  %v2295_v1 = vadd.f32 %v5046_v28, %v2049_v50  ;;  %3271 = vmatpush2.msra.mxu1 %v2668_v53  ;;  %5162 = vmatpush3.msra.mxu0 %v2679_v43  ;;  %v2309_v32 = vpop.f32.mrf.mxu0  ;;  %v2661_v43 = vld [vmem:[#allocation8 + $0x90] sm:$0xff]  ;;  %v2676_v50 = vld [vmem:[#allocation8 + $0x108] sm:$0xff] }
 0x27f   : > { %2550 = vst [vmem:[#allocation4 + $0x190] sm:$0xff] %v7160_v13  ;;  %v2051_v38 = vpop.f32.mrf.mxu1  ;;  %5122 = vmatmul.mubr.f32.gmra.mxu1 %v7160_v13  ;;  %3272 = vmatprep.subr.mxu1 %v7842_v45 }
 0x280   : > { %vm2443_vm12 = vcmp.ge.f32.partialorder %v2407_v58, 0.0  ;;  %v2479_v56 = vmul.f32 0.05, %v2407_v58  ;;  %v2365_v27 = vadd.f32 %v2295_v1, %v7867_v12  ;;  %2916 = vmatmul.mubr.f32.gmra.mxu0 %v7052_v2  ;;  %3273 = vmatpush2.msra.mxu1 %v2667_v5  ;;  %v5055_v34 = vpop.f32.mrf.mxu0  ;;  %v7873_v38 = vld [vmem:[#allocation33_spill] sm:$0xff] }
 0x281   : > { %v2054_v61 = vpop.f32.mrf.mxu1  ;;  %2920 = vmatprep.mubr.f32.mxu0 %v7088_v55  ;;  %3274 = vmatprep.subr.mxu1 %v7842_v45 }
 0x282   : > { %v7172_v10 = vsel %vm2443_vm12, %v2407_v58, %v2479_v56  ;;  %v2408_v22 = vadd.f32 %v6936_v14, %v2365_v27  ;;  %v2300_v52 = vadd.f32 %v2299_v40, %v2054_v61  ;;  %3275 = vmatpush2.msra.mxu1 %v2666_v42  ;;  %5163 = vmatprep.subr.mxu0 %v2678_v0  ;;  %v2319_v58 = vpop.f32.mrf.mxu0  ;;  %v7874_v42 = vld [vmem:[#allocation22_spill] sm:$0xff] }
 0x283   : > { %2551 = vst [vmem:[#allocation4 + $0x1a8] sm:$0xff] %v7172_v10  ;;  %v2056_v2 = vpop.f32.mrf.mxu1  ;;  %5124 = vmatprep.mubr.f32.mxu1 %v7172_v10  ;;  %3276 = vmatprep.subr.mxu1 %v7842_v45 }
 0x284   : > { %vm2444_vm13 = vcmp.ge.f32.partialorder %v2408_v22, 0.0  ;;  %v2480_v15 = vmul.f32 0.05, %v2408_v22  ;;  %v2366_v26 = vadd.f32 %v2300_v52, %v1600_v4  ;;  %2921 = vmatmul.mubr.f32.gmra.mxu0 %v7067_v46  ;;  %3277 = vmatpush2.msra.mxu1 %v2665_v7  ;;  %v2662_v46 = vld [vmem:[#allocation8 + $0x98] sm:$0xff]  ;;  %v5058_v61 = vpop.f32.mrf.mxu0 }
 0x285   : > { %v2059_v31 = vpop.f32.mrf.mxu1  ;;  %2925 = vmatprep.mubr.f32.mxu0 %v7097_v30  ;;  %3278 = vmatprep.subr.mxu1 %v7842_v45 }
 0x286   : > { %v7181_v36 = vsel %vm2444_vm13, %v2408_v22, %v2480_v15  ;;  %v2409_v47 = vadd.f32 %v6936_v14, %v2366_v26  ;;  %v2305_v28 = vadd.f32 %v5049_v33, %v2059_v31  ;;  %3279 = vmatpush2.msra.mxu1 %v2664_v39  ;;  %5164 = vmatpush3.msra.mxu0 %v2678_v0  ;;  %v2659_v33 = vld [vmem:[#allocation8 + $0x80] sm:$0xff]  ;;  %v7875_v0 = vld [vmem:[#allocation36_spill] sm:$0xff]  ;;  %v2329_v26 = vpop.f32.mrf.mxu0 }
 0x287   : > { %2552 = vst [vmem:[#allocation4 + $0x1b0] sm:$0xff] %v7181_v36  ;;  %v2061_v41 = vpop.f32.mrf.mxu1  ;;  %5125 = vmatmul.mubr.f32.gmra.mxu1 %v7181_v36  ;;  %3280 = vmatprep.subr.mxu1 %v7842_v45  ;;  %v1620_v56 = vadd.f32 %v7875_v0, %v7874_v42  ;;  %v2616_v42 = vld [vmem:[#allocation4 + $0x8f] sm:$0xff]  ;;  %v3724_v0 = vld [vmem:[#allocation8 + $0x358] sm:$0xff] }
 0x288   : > { %vm2445_vm14 = vcmp.ge.f32.partialorder %v2409_v47, 0.0  ;;  %v2481_v48 = vmul.f32 0.05, %v2409_v47  ;;  %v2367_v29 = vadd.f32 %v2305_v28, %v7870_v3  ;;  %2926 = vmatmul.mubr.f32.gmra.mxu0 %v7076_v19  ;;  %3281 = vmatpush2.msra.mxu1 %v2663_v44  ;;  %v7876_v44 = vld [vmem:[#allocation35_spill] sm:$0xff]  ;;  %v7877_v28 = vld [vmem:[#allocation21_spill] sm:$0xff]  ;;  %v7878_v41 = vld [vmem:[#allocation38_spill] sm:$0xff] }
 0x289   : > { %v2064_v9 = vpop.f32.mrf.mxu1  ;;  %2930 = vmatprep.mubr.f32.mxu0 %v7109_v37  ;;  %3282 = vmatprep.subr.mxu1 %v7842_v45 }
 0x28a   : > { %v7193_v23 = vsel %vm2445_vm14, %v2409_v47, %v2481_v48  ;;  %v2410_v62 = vadd.f32 %v6936_v14, %v2367_v29  ;;  %v2310_v51 = vadd.f32 %v2309_v32, %v2064_v9  ;;  %3283 = vmatpush2.msra.mxu1 %v2662_v46  ;;  %5165 = vmatprep.subr.mxu0 %v2677_v60 }
 0x28b   : > { %2553 = vst [vmem:[#allocation4 + $0x1c8] sm:$0xff] %v7193_v23  ;;  %v2066_v19 = vpop.f32.mrf.mxu1  ;;  %5127 = vmatprep.mubr.f32.mxu1 %v7193_v23  ;;  %3284 = vmatprep.subr.mxu1 %v7842_v45  ;;  %v1630_v32 = vadd.f32 %v7878_v41, %v7877_v28  ;;  %v7293_v28 = vld [vmem:[#allocation4 + $0x12f] sm:$0xff]  ;;  %v7297_v41 = vld [vmem:[#allocation4 + $0x147] sm:$0xff] }
 0x28c   : > { %vm2446_vm15 = vcmp.ge.f32.partialorder %v2410_v62, 0.0  ;;  %v2482_v57 = vmul.f32 0.05, %v2410_v62  ;;  %v2368_v16 = vadd.f32 %v2310_v51, %v1610_v20  ;;  %2931 = vmatmul.mubr.f32.gmra.mxu0 %v7088_v55  ;;  %3285 = vmatpush2.msra.mxu1 %v2661_v43  ;;  %v7208_v55 = vld [vmem:[#allocation8 + $0x478] sm:$0xff] }
 0x28d   : > { %v2069_v25 = vpop.f32.mrf.mxu1  ;;  %2935 = vmatprep.mubr.f32.mxu0 %v7118_v17  ;;  %3286 = vmatprep.subr.mxu1 %v7842_v45 }
 0x28e   : > { %v7202_v53 = vsel %vm2446_vm15, %v2410_v62, %v2482_v57  ;;  %v2411_v11 = vadd.f32 %v6936_v14, %v2368_v16  ;;  %v2315_v63 = vadd.f32 %v5052_v59, %v2069_v25  ;;  %3287 = vmatpush2.msra.mxu1 %v2660_v54  ;;  %5166 = vmatpush3.msra.mxu0 %v2677_v60  ;;  %v2675_v14 = vld [vmem:[#allocation8 + $0x100] sm:$0xff]  ;;  %v3759_v25 = vld [vmem:[#allocation8 + $0x470] sm:$0xff] }
 0x28f   : > { %2554 = vst [vmem:[#allocation4 + $0x1d0] sm:$0xff] %v7202_v53  ;;  %v2071_v5 = vpop.f32.mrf.mxu1  ;;  %5128 = vmatmul.mubr.f32.gmra.mxu1 %v7202_v53  ;;  %3288 = vmatprep.subr.mxu1 %v7842_v45  ;;  %v7879_v62 = vld [vmem:[#allocation37_spill] sm:$0xff] }
 0x290   : > { %vm2447_vm0 = vcmp.ge.f32.partialorder %v2411_v11, 0.0  ;;  %v2483_v1 = vmul.f32 0.05, %v2411_v11  ;;  %v2369_v40 = vadd.f32 %v2315_v63, %v7873_v38  ;;  %2936 = vmatmul.mubr.f32.gmra.mxu0 %v7097_v30  ;;  %3289 = vmatpush2.msra.mxu1 %v2659_v33  ;;  %v3757_v33 = vld [vmem:[#allocation8 + $0x460] sm:$0xff]  ;;  %v3728_v5 = vld [vmem:[#allocation8 + $0x378] sm:$0xff]  ;;  %v3726_v38 = vld [vmem:[#allocation8 + $0x368] sm:$0xff] }
 0x291   : > { %v2074_v12 = vpop.f32.mrf.mxu1  ;;  %2940 = vmatprep.mubr.f32.mxu0 %v7130_v6  ;;  %5167 = vmatprep.subr.mxu0 %v2676_v50  ;;  %v2613_v63 = vld [vmem:[#allocation4 + $0x67] sm:$0xff] }
 0x292   : > { %v7215_v27 = vsel %vm2447_vm0, %v2411_v11, %v2483_v1  ;;  %v2412_v24 = vadd.f32 %v5419_v49, %v2369_v40  ;;  %v2320_v4 = vadd.f32 %v2319_v58, %v2074_v12  ;;  %5168 = vmatpush3.msra.mxu0 %v2676_v50  ;;  %5219 = vmatprep.subr.mxu1 %v7208_v55  ;;  %v2612_v11 = vld [vmem:[#allocation4 + $0x4f] sm:$0xff]  ;;  %v3753_v1 = vld [vmem:[#allocation8 + $0x440] sm:$0xff] }
 0x293   : > { %2555 = vst [vmem:[#allocation4 + $0x1e8] sm:$0xff] %v7215_v27  ;;  %v2076_v30 = vpop.f32.mrf.mxu1  ;;  %5130 = vmatprep.mubr.f32.mxu1 %v7215_v27  ;;  %5169 = vmatprep.subr.mxu0 %v2675_v14  ;;  %v3754_v50 = vld [vmem:[#allocation8 + $0x448] sm:$0xff] }
 0x294   : > { %vm2448_vm1 = vcmp.ge.f32.partialorder %v2412_v24, 0.0  ;;  %v2484_v7 = vmul.f32 0.05, %v2412_v24  ;;  %v2370_v22 = vadd.f32 %v2320_v4, %v1620_v56  ;;  %2941 = vmatmul.mubr.f32.gmra.mxu0 %v7109_v37  ;;  %v2614_v58 = vld [vmem:[#allocation4 + $0x6f] sm:$0xff]  ;;  %v2615_v40 = vld [vmem:[#allocation4 + $0x87] sm:$0xff]  ;;  %v7264_v56 = vld [vmem:[#allocation8 + $0x438] sm:$0xff] }
 0x295   : > { %v2079_v52 = vpop.f32.mrf.mxu1  ;;  %2945 = vmatprep.mubr.f32.mxu0 %v7139_v18  ;;  %5170 = vmatpush3.msra.mxu0 %v2675_v14  ;;  %v3725_v14 = vld [vmem:[#allocation8 + $0x360] sm:$0xff] }
 0x296   : > { %v7225_v2 = vsel %vm2448_vm1, %v2412_v24, %v2484_v7  ;;  %v2413_v59 = vadd.f32 %v5419_v49, %v2370_v22  ;;  %v2325_v39 = vadd.f32 %v5055_v34, %v2079_v52  ;;  %3761 = vmatprep.subr.mxu0 %v7842_v45  ;;  %v2617_v12 = vld [vmem:[#allocation4 + $0xa7] sm:$0xff]  ;;  %v2618_v24 = vld [vmem:[#allocation4 + $0xaf] sm:$0xff] }
 0x297   : > { %2556 = vst [vmem:[#allocation4 + $0x1f0] sm:$0xff] %v7225_v2  ;;  %v2081_v15 = vpop.f32.mrf.mxu1  ;;  %5131 = vmatmul.mubr.f32.gmra.mxu1 %v7225_v2  ;;  %v2619_v4 = vld [vmem:[#allocation4 + $0xc7] sm:$0xff]  ;;  %v2620_v7 = vld [vmem:[#allocation4 + $0xcf] sm:$0xff] }
 0x298   : > { %vm2449_vm2 = vcmp.ge.f32.partialorder %v2413_v59, 0.0  ;;  %v2485_v31 = vmul.f32 0.05, %v2413_v59  ;;  %v2371_v37 = vadd.f32 %v2325_v39, %v7876_v44  ;;  %2946 = vmatmul.mubr.f32.gmra.mxu0 %v7118_v17  ;;  %v3721_v30 = vld [vmem:[#allocation8 + $0x340] sm:$0xff]  ;;  %v3719_v52 = vld [vmem:[#allocation8 + $0x330] sm:$0xff] }
 0x299   : > { %v2084_v47 = vpop.f32.mrf.mxu1  ;;  %2950 = vmatprep.mubr.f32.mxu0 %v7151_v35  ;;  %v7272_v22 = vld [vmem:[#allocation4 + $0xe7] sm:$0xff] }
 0x29a   : > { %v2521_v46 = vsel %vm2449_vm2, %v2413_v59, %v2485_v31  ;;  %v2414_v45 = vadd.f32 %v5419_v49, %v2371_v37  ;;  %v2330_v60 = vadd.f32 %v2329_v26, %v2084_v47  ;;  %v7276_v59 = vld [vmem:[#allocation4 + $0xef] sm:$0xff]  ;;  %v7280_v39 = vld [vmem:[#allocation4 + $0x107] sm:$0xff]  ;;  %v3716_v26 = vld [vmem:[#allocation8 + $0x318] sm:$0xff] }
 0x29b   : > { %2557 = vst [vmem:[#allocation4 + $0x208] sm:$0xff] %v2521_v46  ;;  %v2086_v48 = vpop.f32.mrf.mxu1  ;;  %5133 = vmatprep.mubr.f32.mxu1 %v2521_v46  ;;  %v3717_v15 = vld [vmem:[#allocation8 + $0x320] sm:$0xff]  ;;  %v7284_v31 = vld [vmem:[#allocation4 + $0x10f] sm:$0xff] }
 0x29c   : > { %vm2450_vm3 = vcmp.ge.f32.partialorder %v2414_v45, 0.0  ;;  %v2486_v3 = vmul.f32 0.05, %v2414_v45  ;;  %v2372_v29 = vadd.f32 %v2330_v60, %v1630_v32  ;;  %2951 = vmatmul.mubr.f32.gmra.mxu0 %v7130_v6  ;;  %v7240_v6 = vld [vmem:[#allocation4 + $0x7] sm:$0xff]  ;;  %v3715_v37 = vld [vmem:[#allocation8 + $0x310] sm:$0xff] }
 0x29d   : > { %v2089_v8 = vpop.f32.mrf.mxu1  ;;  %2955 = vmatprep.mubr.f32.mxu0 %v7160_v13  ;;  %v7288_v44 = vld [vmem:[#allocation4 + $0x127] sm:$0xff]  ;;  %v3743_v48 = vld [vmem:[#allocation8 + $0x3f0] sm:$0xff] }
 0x29e   : > { %v2522_v17 = vsel %vm2450_vm3, %v2414_v45, %v2486_v3  ;;  %v2415_v21 = vadd.f32 %v5419_v49, %v2372_v29  ;;  %v2335_v20 = vadd.f32 %v5058_v61, %v2089_v8  ;;  %v3720_v61 = vld [vmem:[#allocation8 + $0x338] sm:$0xff]  ;;  %v3714_v47 = vld [vmem:[#allocation8 + $0x308] sm:$0xff]  ;;  %v3713_v32 = vld [vmem:[#allocation8 + $0x300] sm:$0xff] }
 0x29f   : > { %2558 = vst [vmem:[#allocation4 + $0x210] sm:$0xff] %v2522_v17  ;;  %5134 = vmatmul.mubr.f32.gmra.mxu1 %v2522_v17  ;;  %v2091_v9 = vpop.f32.mrf.mxu1  ;;  %v7302_v45 = vld [vmem:[#allocation4 + $0x14f] sm:$0xff]  ;;  %v7306_v60 = vld [vmem:[#allocation4 + $0x167] sm:$0xff] }
 0x2a0   : > { %vm2451_vm4 = vcmp.ge.f32.partialorder %v2415_v21, 0.0  ;;  %v2487_v43 = vmul.f32 0.05, %v2415_v21  ;;  %v2373_v51 = vadd.f32 %v2335_v20, %v7879_v62  ;;  %2956 = vmatmul.mubr.f32.gmra.mxu0 %v7139_v18  ;;  %v3742_v3 = vld [vmem:[#allocation8 + $0x3e8] sm:$0xff] }
 0x2a1   : > { %2960 = vmatprep.mubr.f32.mxu0 %v7172_v10  ;;  %v7311_v29 = vld [vmem:[#allocation4 + $0x16f] sm:$0xff]  ;;  %v7315_v8 = vld [vmem:[#allocation4 + $0x187] sm:$0xff] }
 0x2a2   : > { %v2523_v19 = vsel %vm2451_vm4, %v2415_v21, %v2487_v43  ;;  %v2416_v34 = vadd.f32 %v5419_v49, %v2373_v51  ;;  %v3722_v49 = vld [vmem:[#allocation8 + $0x348] sm:$0xff]  ;;  %v3740_v21 = vld [vmem:[#allocation8 + $0x3d8] sm:$0xff]  ;;  %v3739_v43 = vld [vmem:[#allocation8 + $0x3d0] sm:$0xff] }
 0x2a3   : > { %2559 = vst [vmem:[#allocation4 + $0x228] sm:$0xff] %v2523_v19  ;;  %v7321_v20 = vld [vmem:[#allocation4 + $0x18f] sm:$0xff]  ;;  %v7325_v9 = vld [vmem:[#allocation4 + $0x1a7] sm:$0xff] }
 0x2a4   : > { %2604 = vst [vmem:[#allocation4 + $0x227] sm:$0xff] %v7240_v6  ;;  %vm2452_vm5 = vcmp.ge.f32.partialorder %v2416_v34, 0.0  ;;  %v2488_v54 = vmul.f32 0.05, %v2416_v34  ;;  %2961 = vmatmul.mubr.f32.gmra.mxu0 %v7151_v35  ;;  %v2609_v35 = vld [vmem:[#allocation4 + $0x27] sm:$0xff]  ;;  %v7331_v51 = vld [vmem:[#allocation4 + $0x1af] sm:$0xff] }
 0x2a5   : > { %2965 = vmatprep.mubr.f32.mxu0 %v7181_v36  ;;  %v3738_v62 = vld [vmem:[#allocation8 + $0x3c8] sm:$0xff] }
 0x2a6   : > { %v2524_v57 = vsel %vm2452_vm5, %v2416_v34, %v2488_v54  ;;  %v7335_v19 = vld [vmem:[#allocation4 + $0x1c7] sm:$0xff]  ;;  %v3736_v54 = vld [vmem:[#allocation8 + $0x3b8] sm:$0xff] }
 0x2a7   : > { %2560 = vst [vmem:[#allocation4 + $0x230] sm:$0xff] %v2524_v57  ;;  %v3737_v34 = vld [vmem:[#allocation8 + $0x3c0] sm:$0xff]  ;;  %v7341_v57 = vld [vmem:[#allocation4 + $0x1cf] sm:$0xff] }
 0x2a8   : > { %2605 = vst [vmem:[#allocation4 + $0x22f] sm:$0xff] %v7240_v6  ;;  %2606 = vst [vmem:[#allocation4 + $0x237] sm:$0x3] %v7240_v6  ;;  %2966 = vmatmul.mubr.f32.gmra.mxu0 %v7160_v13  ;;  %v2610_v13 = vld [vmem:[#allocation4 + $0x2f] sm:$0xff] }
 0x2a9   : > { %2970 = vmatprep.mubr.f32.mxu0 %v7193_v23 }
 0x2ac   : > { %2971 = vmatmul.mubr.f32.gmra.mxu0 %v7172_v10  ;;  %v3758_v10 = vld [vmem:[#allocation8 + $0x468] sm:$0xff] }
 0x2ad   : > { %2975 = vmatprep.mubr.f32.mxu0 %v7202_v53 }
 0x2af   : > { %v2725_v18 = vld [vmem:[#allocation4 + $0x228] sm:$0xff]  ;;  %v2726_v16 = vld [vmem:[#allocation4 + $0x230] sm:$0xff] }
 0x2b0   : > { %5136 = vmatprep.mubr.f32.mxu1 %v2725_v18  ;;  %2976 = vmatmul.mubr.f32.gmra.mxu0 %v7181_v36  ;;  %v2611_v36 = vld [vmem:[#allocation4 + $0x47] sm:$0xff] }
 0x2b1   : > { %5137 = vmatmul.mubr.f32.gmra.mxu1 %v2726_v16  ;;  %2980 = vmatprep.mubr.f32.mxu0 %v7215_v27  ;;  %v7345_v18 = vld [vmem:[#allocation4 + $0x1e7] sm:$0xff]  ;;  %v3735_v16 = vld [vmem:[#allocation8 + $0x3b0] sm:$0xff] }
 0x2b2   : > { %3290 = vmatprep.mubr.f32.mxu1 %v2609_v35 }
 0x2b4   : > { %2981 = vmatmul.mubr.f32.gmra.mxu0 %v7193_v23  ;;  %v3756_v23 = vld [vmem:[#allocation8 + $0x458] sm:$0xff] }
 0x2b5   : > { %3291 = vmatmul.mubr.f32.vlgmr.msra.gmra.mxu1 %v7240_v6  ;;  %2985 = vmatprep.mubr.f32.mxu0 %v7225_v2 }
 0x2b6   : > { %3295 = vmatprep.mubr.f32.mxu1 %v2610_v13  ;;  %5220 = vmatpush3.msra.mxu1 %v7208_v55  ;;  %v3727_v55 = vld [vmem:[#allocation8 + $0x370] sm:$0xff] }
 0x2b7   : > { %5221 = vmatprep.subr.mxu1 %v3759_v25 }
 0x2b8   : > { %2986 = vmatmul.mubr.f32.gmra.mxu0 %v7202_v53  ;;  %5222 = vmatpush3.msra.mxu1 %v3759_v25  ;;  %v3755_v53 = vld [vmem:[#allocation8 + $0x450] sm:$0xff] }
 0x2b9   : > { %3296 = vmatmul.mubr.f32.gmra.mxu1 %v7240_v6  ;;  %2990 = vmatprep.mubr.f32.mxu0 %v2521_v46  ;;  %v3744_v46 = vld [vmem:[#allocation8 + $0x3f8] sm:$0xff]  ;;  %v7351_v25 = vld [vmem:[#allocation4 + $0x1ef] sm:$0xff] }
 0x2ba   : > { %3300 = vmatprep.mubr.f32.mxu1 %v2611_v36  ;;  %5223 = vmatprep.subr.mxu1 %v3758_v10 }
 0x2bb   : > { %5224 = vmatpush3.msra.mxu1 %v3758_v10  ;;  %v3733_v10 = vld [vmem:[#allocation8 + $0x3a0] sm:$0xff] }
 0x2bc   : > { %2991 = vmatmul.mubr.f32.gmra.mxu0 %v7215_v27  ;;  %5225 = vmatprep.subr.mxu1 %v3757_v33  ;;  %v3723_v27 = vld [vmem:[#allocation8 + $0x350] sm:$0xff] }
 0x2bd   : > { %3301 = vmatmul.mubr.f32.gmra.mxu1 %v2609_v35  ;;  %2995 = vmatprep.mubr.f32.mxu0 %v2522_v17  ;;  %v3741_v17 = vld [vmem:[#allocation8 + $0x3e0] sm:$0xff]  ;;  %v3734_v35 = vld [vmem:[#allocation8 + $0x3a8] sm:$0xff] }
 0x2be   : > { %3305 = vmatprep.mubr.f32.mxu1 %v2612_v11  ;;  %5226 = vmatpush3.msra.mxu1 %v3757_v33  ;;  %v7361_v33 = vld [vmem:[#allocation4 + $0x20f] sm:$0xff] }
 0x2bf   : > { %5227 = vmatprep.subr.mxu1 %v3756_v23 }
 0x2c0   : > { %2996 = vmatmul.mubr.f32.gmra.mxu0 %v7225_v2  ;;  %5228 = vmatpush3.msra.mxu1 %v3756_v23  ;;  %v3718_v2 = vld [vmem:[#allocation8 + $0x328] sm:$0xff]  ;;  %v3731_v23 = vld [vmem:[#allocation8 + $0x390] sm:$0xff] }
 0x2c1   : > { %3306 = vmatmul.mubr.f32.gmra.mxu1 %v2610_v13  ;;  %5171 = vmatprep.mubr.f32.mxu0 %v2611_v36  ;;  %v7355_v13 = vld [vmem:[#allocation4 + $0x207] sm:$0xff] }
 0x2c2   : > { %3310 = vmatprep.mubr.f32.mxu1 %v2613_v63  ;;  %5229 = vmatprep.subr.mxu1 %v3755_v53 }
 0x2c3   : > { %5230 = vmatpush3.msra.mxu1 %v3755_v53  ;;  %v3678_v53 = vld [vmem:[#allocation4 + $0x29] sm:$0xff] }
 0x2c4   : > { %5172 = vmatmul.mubr.f32.vlgmr.msra.gmra.mxu0 %v2612_v11  ;;  %5231 = vmatprep.subr.mxu1 %v3754_v50 }
 0x2c5   : > { %3311 = vmatmul.mubr.f32.gmra.mxu1 %v2611_v36  ;;  %5174 = vmatprep.mubr.f32.mxu0 %v2613_v63  ;;  %v3732_v36 = vld [vmem:[#allocation8 + $0x398] sm:$0xff] }
 0x2c6   : > { %3315 = vmatprep.mubr.f32.mxu1 %v2614_v58  ;;  %3762 = vmatpush1.msra.mxu0 %v3728_v5  ;;  %v3676_v5 = vld [vmem:[#allocation4 + $0x9] sm:$0xff] }
 0x2c7   : > { %3763 = vmatprep.subr.mxu0 %v7240_v6  ;;  %5232 = vmatpush3.msra.mxu1 %v3754_v50 }
 0x2c8   : > { %3764 = vmatpush1.msra.mxu0 %v3727_v55  ;;  %5233 = vmatprep.subr.mxu1 %v3753_v1 }
 0x2c9   : > { %3316 = vmatmul.mubr.f32.gmra.mxu1 %v2612_v11  ;;  %5175 = vmatmul.mubr.f32.gmra.mxu0 %v2614_v58  ;;  %v3730_v11 = vld [vmem:[#allocation8 + $0x388] sm:$0xff] }
 0x2ca   : > { %3320 = vmatprep.mubr.f32.mxu1 %v2615_v40  ;;  %3765 = vmatprep.subr.mxu0 %v7240_v6 }
 0x2cb   : > { %5177 = vmatprep.mubr.f32.mxu0 %v2615_v40  ;;  %3766 = vmatpush1.msra.mxu0 %v3726_v38  ;;  %v3679_v38 = vld [vmem:[#allocation4 + $0x31] sm:$0xff] }
 0x2cc   : > { %3767 = vmatprep.subr.mxu0 %v7240_v6  ;;  %5234 = vmatpush3.msra.mxu1 %v3753_v1 }
 0x2cd   : > { %3321 = vmatmul.mubr.f32.gmra.mxu1 %v2613_v63  ;;  %3768 = vmatpush1.msra.mxu0 %v3725_v14  ;;  %v3729_v63 = vld [vmem:[#allocation8 + $0x380] sm:$0xff]  ;;  %v3677_v14 = vld [vmem:[#allocation4 + $0x11] sm:$0xff] }
 0x2ce   : > { %3325 = vmatprep.mubr.f32.mxu1 %v2616_v42  ;;  %5178 = vmatmul.mubr.f32.gmra.mxu0 %v2616_v42 }
 0x2cf   : > { %3769 = vmatprep.subr.mxu0 %v7240_v6  ;;  %5180 = vmatprep.mubr.f32.mxu0 %v2617_v12 }
 0x2d0   : > { %3770 = vmatpush1.msra.mxu0 %v3724_v0  ;;  %5235 = vmatprep.subr.mxu1 %v7264_v56 }
 0x2d1   : > { %3326 = vmatmul.mubr.f32.gmra.mxu1 %v2614_v58  ;;  %3771 = vmatprep.subr.mxu0 %v7240_v6  ;;  %v3751_v58 = vld [vmem:[#allocation8 + $0x430] sm:$0xff] }
 0x2d2   : > { %3330 = vmatprep.mubr.f32.mxu1 %v2617_v12  ;;  %3772 = vmatpush1.msra.mxu0 %v3723_v27  ;;  %v3749_v27 = vld [vmem:[#allocation8 + $0x420] sm:$0xff] }
 0x2d3   : > { %5181 = vmatmul.mubr.f32.gmra.mxu0 %v2618_v24  ;;  %3773 = vmatprep.subr.mxu0 %v7240_v6 }
 0x2d4   : > { %5183 = vmatprep.mubr.f32.mxu0 %v2619_v4  ;;  %3774 = vmatpush1.msra.mxu0 %v3722_v49 }
 0x2d5   : > { %3331 = vmatmul.mubr.f32.gmra.mxu1 %v2615_v40  ;;  %3775 = vmatprep.subr.mxu0 %v7240_v6 }
 0x2d6   : > { %3335 = vmatprep.mubr.f32.mxu1 %v2618_v24  ;;  %3776 = vmatpush1.msra.mxu0 %v3721_v30 }
 0x2d7   : > { %5184 = vmatmul.mubr.f32.gmra.mxu0 %v2620_v7  ;;  %3777 = vmatprep.subr.mxu0 %v7240_v6 }
 0x2d8   : > { %5186 = vmatprep.mubr.f32.mxu0 %v7272_v22  ;;  %3778 = vmatpush1.msra.mxu0 %v3720_v61  ;;  %v3747_v61 = vld [vmem:[#allocation8 + $0x410] sm:$0xff] }
 0x2d9   : > { %3336 = vmatmul.mubr.f32.gmra.mxu1 %v2616_v42  ;;  %3779 = vmatprep.subr.mxu0 %v7240_v6  ;;  %v3750_v42 = vld [vmem:[#allocation8 + $0x428] sm:$0xff] }
 0x2da   : > { %3340 = vmatprep.mubr.f32.mxu1 %v2619_v4  ;;  %3780 = vmatpush1.msra.mxu0 %v3719_v52  ;;  %v3746_v52 = vld [vmem:[#allocation8 + $0x408] sm:$0xff] }
 0x2db   : > { %5187 = vmatmul.mubr.f32.gmra.mxu0 %v7276_v59  ;;  %3781 = vmatprep.subr.mxu0 %v7240_v6 }
 0x2dc   : > { %5189 = vmatprep.mubr.f32.mxu0 %v7280_v39  ;;  %3782 = vmatpush1.msra.mxu0 %v3718_v2 }
 0x2dd   : > { %3341 = vmatmul.mubr.f32.gmra.mxu1 %v2617_v12  ;;  %3783 = vmatprep.subr.mxu0 %v7240_v6 }
 0x2de   : > { %3345 = vmatprep.mubr.f32.mxu1 %v2620_v7  ;;  %3784 = vmatpush1.msra.mxu0 %v3717_v15  ;;  %v3745_v15 = vld [vmem:[#allocation8 + $0x400] sm:$0xff] }
 0x2df   : > { %5190 = vmatmul.mubr.f32.gmra.mxu0 %v7284_v31  ;;  %3785 = vmatprep.subr.mxu0 %v7240_v6 }
 0x2e0   : > { %5192 = vmatprep.mubr.f32.mxu0 %v7288_v44  ;;  %3786 = vmatpush1.msra.mxu0 %v3716_v26  ;;  %v7399_v26 = vld [vmem:[#allocation4 + $0x69] sm:$0xff] }
 0x2e1   : > { %3346 = vmatmul.mubr.f32.gmra.mxu1 %v2618_v24  ;;  %3787 = vmatprep.subr.mxu0 %v7240_v6  ;;  %v3748_v24 = vld [vmem:[#allocation8 + $0x418] sm:$0xff] }
 0x2e2   : > { %3350 = vmatprep.mubr.f32.mxu1 %v7272_v22  ;;  %3788 = vmatpush1.msra.mxu0 %v3715_v37 }
 0x2e3   : > { %5193 = vmatmul.mubr.f32.gmra.mxu0 %v7293_v28  ;;  %3789 = vmatprep.subr.mxu0 %v7240_v6 }
 0x2e4   : > { %5195 = vmatprep.mubr.f32.mxu0 %v7297_v41  ;;  %3790 = vmatpush1.msra.mxu0 %v3714_v47  ;;  %v7407_v47 = vld [vmem:[#allocation4 + $0x71] sm:$0xff] }
 0x2e5   : > { %3351 = vmatmul.mubr.f32.gmra.mxu1 %v2619_v4  ;;  %3791 = vmatprep.subr.mxu0 %v7240_v6 }
 0x2e6   : > { %3355 = vmatprep.mubr.f32.mxu1 %v7276_v59  ;;  %3792 = vmatpush1.msra.mxu0 %v3713_v32 }
 0x2e7   : > { %5196 = vmatmul.mubr.f32.gmra.mxu0 %v7302_v45  ;;  %3793 = vmatprep.subr.mxu0 %v7240_v6 }
 0x2e8   : > { %5198 = vmatprep.mubr.f32.mxu0 %v7306_v60  ;;  %3794 = vmatpush2.msra.mxu0 %v3744_v46 }
 0x2e9   : > { %3356 = vmatmul.mubr.f32.gmra.mxu1 %v2620_v7  ;;  %3795 = vmatprep.subr.mxu0 %v7240_v6  ;;  %v7390_v7 = vld [vmem:[#allocation4 + $0x51] sm:$0xff] }
 0x2ea   : > { %3360 = vmatprep.mubr.f32.mxu1 %v7280_v39  ;;  %3796 = vmatpush2.msra.mxu0 %v3743_v48 }
 0x2eb   : > { %5199 = vmatmul.mubr.f32.gmra.mxu0 %v7311_v29  ;;  %3797 = vmatprep.subr.mxu0 %v7240_v6 }
 0x2ec   : > { %5201 = vmatprep.mubr.f32.mxu0 %v7315_v8  ;;  %3798 = vmatpush2.msra.mxu0 %v3742_v3 }
 0x2ed   : > { %3361 = vmatmul.mubr.f32.gmra.mxu1 %v7272_v22  ;;  %3799 = vmatprep.subr.mxu0 %v7240_v6 }
 0x2ee   : > { %3365 = vmatprep.mubr.f32.mxu1 %v7284_v31  ;;  %3800 = vmatpush2.msra.mxu0 %v3741_v17 }
 0x2ef   : > { %5202 = vmatmul.mubr.f32.gmra.mxu0 %v7321_v20  ;;  %3801 = vmatprep.subr.mxu0 %v7240_v6 }
 0x2f0   : > { %5204 = vmatprep.mubr.f32.mxu0 %v7325_v9  ;;  %3802 = vmatpush2.msra.mxu0 %v3740_v21 }
 0x2f1   : > { %3366 = vmatmul.mubr.f32.gmra.mxu1 %v7276_v59  ;;  %3803 = vmatprep.subr.mxu0 %v7240_v6 }
 0x2f2   : > { %3370 = vmatprep.mubr.f32.mxu1 %v7288_v44  ;;  %3804 = vmatpush2.msra.mxu0 %v3739_v43 }
 0x2f3   : > { %5205 = vmatmul.mubr.f32.gmra.mxu0 %v7331_v51  ;;  %3805 = vmatprep.subr.mxu0 %v7240_v6 }
 0x2f4   : > { %5207 = vmatprep.mubr.f32.mxu0 %v7335_v19  ;;  %3806 = vmatpush2.msra.mxu0 %v3738_v62 }
 0x2f5   : > { %3371 = vmatmul.mubr.f32.gmra.mxu1 %v7280_v39  ;;  %3807 = vmatprep.subr.mxu0 %v7240_v6 }
 0x2f6   : > { %3375 = vmatprep.mubr.f32.mxu1 %v7293_v28  ;;  %3808 = vmatpush2.msra.mxu0 %v3737_v34 }
 0x2f7   : > { %5208 = vmatmul.mubr.f32.gmra.mxu0 %v7341_v57  ;;  %3809 = vmatprep.subr.mxu0 %v7240_v6 }
 0x2f8   : > { %5210 = vmatprep.mubr.f32.mxu0 %v7345_v18  ;;  %3810 = vmatpush2.msra.mxu0 %v3736_v54 }
 0x2f9   : > { %3376 = vmatmul.mubr.f32.gmra.mxu1 %v7284_v31  ;;  %3811 = vmatprep.subr.mxu0 %v7240_v6 }
 0x2fa   : > { %3380 = vmatprep.mubr.f32.mxu1 %v7297_v41  ;;  %3812 = vmatpush2.msra.mxu0 %v3735_v16 }
 0x2fb   : > { %5211 = vmatmul.mubr.f32.gmra.mxu0 %v7351_v25  ;;  %3813 = vmatprep.subr.mxu0 %v7240_v6 }
 0x2fc   : > { %5213 = vmatprep.mubr.f32.mxu0 %v7355_v13  ;;  %3814 = vmatpush2.msra.mxu0 %v3734_v35 }
 0x2fd   : > { %3381 = vmatmul.mubr.f32.gmra.mxu1 %v7288_v44  ;;  %3815 = vmatprep.subr.mxu0 %v7240_v6 }
 0x2fe   : > { %3385 = vmatprep.mubr.f32.mxu1 %v7302_v45  ;;  %3816 = vmatpush2.msra.mxu0 %v3733_v10 }
 0x2ff   : > { %5214 = vmatmul.mubr.f32.gmra.mxu0 %v7361_v33  ;;  %3817 = vmatprep.subr.mxu0 %v7240_v6 }
 0x300   : > { %3818 = vmatpush2.msra.mxu0 %v3732_v36  ;;  %5216 = vmatprep.mubr.f32.mxu0 %v7240_v6 }
 0x301   : > { %3386 = vmatmul.mubr.f32.gmra.mxu1 %v7293_v28  ;;  %3819 = vmatprep.subr.mxu0 %v7240_v6 }
 0x302   : > { %3390 = vmatprep.mubr.f32.mxu1 %v7306_v60  ;;  %3820 = vmatpush2.msra.mxu0 %v3731_v23 }
 0x303   : > { %5217 = vmatmul.mubr.f32.gmra.mxu0 %v7240_v6  ;;  %3821 = vmatprep.subr.mxu0 %v7240_v6 }
 0x304   : > { %3822 = vmatpush2.msra.mxu0 %v3730_v11  ;;  %3825 = vmatprep.mubr.f32.mxu0 %v3678_v53  ;;  %v7371_v50 = vpop.f32.mrf.mxu0  ;;  %v5093_v1 = vpop.f32.mrf.mxu1 }
 0x305   : > { %3391 = vmatmul.mubr.f32.gmra.mxu1 %v7297_v41  ;;  %3823 = vmatprep.subr.mxu0 %v7240_v6 }
 0x306   : > { %3395 = vmatprep.mubr.f32.mxu1 %v7311_v29  ;;  %3824 = vmatpush2.msra.mxu0 %v3729_v63  ;;  %v2844_v55 = vpop.f32.mrf.mxu0  ;;  %v7381_v12 = vpop.f32.mrf.mxu1 }
 0x307   : > { %5236 = vmatpush3.msra.mxu1 %v7264_v56  ;;  %3826 = vmatmul.mubr.f32.vlgmr.msra.gmra.mxu0 %v3676_v5  ;;  %v7383_v56 = vld [vmem:[#allocation4 + $0x49] sm:$0xff] }
 0x308   : > { %3830 = vmatprep.mubr.f32.mxu0 %v3679_v38  ;;  %v2847_v40 = vpop.f32.mrf.mxu0  ;;  %5237 = vmatprep.subr.mxu1 %v3751_v58  ;;  %v5096_v4 = vpop.f32.mrf.mxu1 }
 0x309   : > { %3396 = vmatmul.mubr.f32.gmra.mxu1 %v7302_v45  ;;  %v7378_v0 = vadd.f32 %v5093_v1, %v2847_v40  ;;  %v7417_v45 = vld [vmem:[#allocation4 + $0x89] sm:$0xff] }
 0x30a   : > { %3400 = vmatprep.mubr.f32.mxu1 %v7315_v8  ;;  %v2849_v6 = vpop.f32.mrf.mxu0  ;;  %5238 = vmatpush3.msra.mxu1 %v3751_v58  ;;  %v7397_v59 = vpop.f32.mrf.mxu1  ;;  %v3690_v58 = vld [vmem:[#allocation4 + $0xe9] sm:$0xff] }
 0x30b   : > { %3831 = vmatmul.mubr.f32.gmra.mxu0 %v3677_v14  ;;  %5239 = vmatprep.subr.mxu1 %v3750_v42  ;;  %v3692_v6 = vld [vmem:[#allocation4 + $0x109] sm:$0xff] }
 0x30c   : > { %3835 = vmatprep.mubr.f32.mxu0 %v7383_v56  ;;  %v7386_v49 = vpop.f32.mrf.mxu0  ;;  %5240 = vmatpush3.msra.mxu1 %v3750_v42 }
 0x30d   : > { %3401 = vmatmul.mubr.f32.gmra.mxu1 %v7306_v60  ;;  %5241 = vmatprep.subr.mxu1 %v3749_v27  ;;  %v5099_v44 = vpop.f32.mrf.mxu1 }
 0x30e   : > { %3405 = vmatprep.mubr.f32.mxu1 %v7321_v20  ;;  %v2854_v30 = vpop.f32.mrf.mxu0  ;;  %5242 = vmatpush3.msra.mxu1 %v3749_v27 }
 0x30f   : > { %3836 = vmatmul.mubr.f32.gmra.mxu0 %v3678_v53  ;;  %5243 = vmatprep.subr.mxu1 %v3748_v24  ;;  %v7413_v32 = vpop.f32.mrf.mxu1 }
 0x310   : > { %3840 = vmatprep.mubr.f32.mxu0 %v7390_v7  ;;  %v2857_v22 = vpop.f32.mrf.mxu0  ;;  %5244 = vmatpush3.msra.mxu1 %v3748_v24 }
 0x311   : > { %3406 = vmatmul.mubr.f32.gmra.mxu1 %v7311_v29  ;;  %v7394_v2 = vadd.f32 %v5096_v4, %v2857_v22  ;;  %5245 = vmatprep.subr.mxu1 %v3747_v61  ;;  %v5102_v48 = vpop.f32.mrf.mxu1  ;;  %v7425_v29 = vld [vmem:[#allocation4 + $0x91] sm:$0xff] }
 0x312   : > { %3410 = vmatprep.mubr.f32.mxu1 %v7325_v9  ;;  %v2859_v39 = vpop.f32.mrf.mxu0  ;;  %5246 = vmatpush3.msra.mxu1 %v3747_v61  ;;  %v3693_v4 = vld [vmem:[#allocation4 + $0x111] sm:$0xff] }
 0x313   : > { %3841 = vmatmul.mubr.f32.gmra.mxu0 %v3679_v38  ;;  %5247 = vmatprep.subr.mxu1 %v3746_v52  ;;  %v7431_v21 = vpop.f32.mrf.mxu1 }
 0x314   : > { %3845 = vmatprep.mubr.f32.mxu0 %v7399_v26  ;;  %v7402_v31 = vpop.f32.mrf.mxu0  ;;  %5248 = vmatpush3.msra.mxu1 %v3746_v52  ;;  %v3694_v52 = vld [vmem:[#allocation4 + $0x129] sm:$0xff] }
 0x315   : > { %3411 = vmatmul.mubr.f32.gmra.mxu1 %v7315_v8  ;;  %5249 = vmatprep.subr.mxu1 %v3745_v15  ;;  %v5105_v62 = vpop.f32.mrf.mxu1 }
 0x316   : > { %3415 = vmatprep.mubr.f32.mxu1 %v7331_v51  ;;  %v2864_v37 = vpop.f32.mrf.mxu0  ;;  %5250 = vmatpush3.msra.mxu1 %v3745_v15 }
 0x317   : > { %3846 = vmatmul.mubr.f32.gmra.mxu0 %v7383_v56  ;;  %v7443_v35 = vpop.f32.mrf.mxu1  ;;  %v3695_v37 = vld [vmem:[#allocation4 + $0x131] sm:$0xff] }
 0x318   : > { %3850 = vmatprep.mubr.f32.mxu0 %v7407_v47  ;;  %v2867_v28 = vpop.f32.mrf.mxu0 }
 0x319   : > { %3416 = vmatmul.mubr.f32.gmra.mxu1 %v7321_v20  ;;  %v7411_v41 = vadd.f32 %v5099_v44, %v2867_v28  ;;  %v5108_v23 = vpop.f32.mrf.mxu1 }
 0x31a   : > { %3420 = vmatprep.mubr.f32.mxu1 %v7335_v19  ;;  %v2869_v46 = vpop.f32.mrf.mxu0 }
 0x31b   : > { %3851 = vmatmul.mubr.f32.gmra.mxu0 %v7390_v7  ;;  %v7454_v63 = vpop.f32.mrf.mxu1 }
 0x31c   : > { %3855 = vmatprep.mubr.f32.mxu0 %v7417_v45  ;;  %v7420_v60 = vpop.f32.mrf.mxu0 }
 0x31d   : > { %3421 = vmatmul.mubr.f32.gmra.mxu1 %v7325_v9  ;;  %v3686_v9 = vld [vmem:[#allocation4 + $0xa9] sm:$0xff] }
 0x31e   : > { %3425 = vmatprep.mubr.f32.mxu1 %v7341_v57  ;;  %v2874_v3 = vpop.f32.mrf.mxu0 }
 0x31f   : > { %3856 = vmatmul.mubr.f32.gmra.mxu0 %v7399_v26 }
 0x320   : > { %3860 = vmatprep.mubr.f32.mxu0 %v7425_v29  ;;  %v2877_v8 = vpop.f32.mrf.mxu0 }
 0x321   : > { %3426 = vmatmul.mubr.f32.gmra.mxu1 %v7331_v51  ;;  %v7429_v17 = vadd.f32 %v5102_v48, %v2877_v8  ;;  %v3687_v51 = vld [vmem:[#allocation4 + $0xb1] sm:$0xff]  ;;  %v3696_v48 = vld [vmem:[#allocation4 + $0x149] sm:$0xff] }
 0x322   : > { %3430 = vmatprep.mubr.f32.mxu1 %v7345_v18  ;;  %v2879_v20 = vpop.f32.mrf.mxu0 }
 0x323   : > { %3861 = vmatmul.mubr.f32.gmra.mxu0 %v7407_v47 }
 0x324   : > { %3865 = vmatprep.mubr.f32.mxu0 %v3686_v9  ;;  %v7435_v43 = vpop.f32.mrf.mxu0 }
 0x325   : > { %3431 = vmatmul.mubr.f32.gmra.mxu1 %v7335_v19  ;;  %v3688_v19 = vld [vmem:[#allocation4 + $0xc9] sm:$0xff] }
 0x326   : > { %3435 = vmatprep.mubr.f32.mxu1 %v7351_v25  ;;  %v2884_v34 = vpop.f32.mrf.mxu0 }
 0x327   : > { %3866 = vmatmul.mubr.f32.gmra.mxu0 %v7417_v45 }
 0x328   : > { %3870 = vmatprep.mubr.f32.mxu0 %v3687_v51  ;;  %v2887_v54 = vpop.f32.mrf.mxu0 }
 0x329   : > { %3436 = vmatmul.mubr.f32.gmra.mxu1 %v7341_v57  ;;  %v7441_v16 = vadd.f32 %v5105_v62, %v2887_v54  ;;  %v3689_v57 = vld [vmem:[#allocation4 + $0xd1] sm:$0xff] }
 0x32a   : > { %3440 = vmatprep.mubr.f32.mxu1 %v7355_v13  ;;  %v2889_v10 = vpop.f32.mrf.mxu0 }
 0x32b   : > { %3871 = vmatmul.mubr.f32.gmra.mxu0 %v7425_v29  ;;  %v3698_v10 = vld [vmem:[#allocation4 + $0x169] sm:$0xff] }
 0x32c   : > { %3875 = vmatprep.mubr.f32.mxu0 %v3688_v19  ;;  %v7447_v36 = vpop.f32.mrf.mxu0 }
 0x32d   : > { %3441 = vmatmul.mubr.f32.gmra.mxu1 %v7345_v18  ;;  %v5111_v18 = vpop.f32.mrf.mxu1 }
 0x32e   : > { %3445 = vmatprep.mubr.f32.mxu1 %v7361_v33  ;;  %v2894_v11 = vpop.f32.mrf.mxu0 }
 0x32f   : > { %3876 = vmatmul.mubr.f32.gmra.mxu0 %v3686_v9  ;;  %v7461_v1 = vpop.f32.mrf.mxu1 }
 0x330   : > { %3880 = vmatprep.mubr.f32.mxu0 %v3689_v57  ;;  %v2897_v53 = vpop.f32.mrf.mxu0 }
 0x331   : > { %3446 = vmatmul.mubr.f32.gmra.mxu1 %v7351_v25  ;;  %v7452_v13 = vadd.f32 %v5108_v23, %v2897_v53  ;;  %v3691_v25 = vld [vmem:[#allocation4 + $0xf1] sm:$0xff]  ;;  %v5114_v14 = vpop.f32.mrf.mxu1 }
 0x332   : > { %5251 = vmatprep.mubr.f32.mxu1 %v7383_v56  ;;  %v2899_v5 = vpop.f32.mrf.mxu0  ;;  %v3699_v53 = vld [vmem:[#allocation4 + $0x171] sm:$0xff] }
 0x333   : > { %3881 = vmatmul.mubr.f32.gmra.mxu0 %v3687_v51  ;;  %v7470_v56 = vpop.f32.mrf.mxu1 }
 0x334   : > { %3885 = vmatprep.mubr.f32.mxu0 %v3690_v58  ;;  %v7457_v55 = vpop.f32.mrf.mxu0 }
 0x335   : > { %5252 = vmatmul.mubr.f32.vlgmr.msra.gmra.mxu1 %v7390_v7  ;;  %v5117_v30 = vpop.f32.mrf.mxu1 }
 0x336   : > { %5254 = vmatprep.mubr.f32.mxu1 %v7399_v26  ;;  %v2904_v33 = vpop.f32.mrf.mxu0 }
 0x337   : > { %3886 = vmatmul.mubr.f32.gmra.mxu0 %v3688_v19  ;;  %v3147_v39 = vpop.f32.mrf.mxu1 }
 0x338   : > { %3890 = vmatprep.mubr.f32.mxu0 %v3691_v25  ;;  %v2907_v38 = vpop.f32.mrf.mxu0 }
 0x339   : > { %5255 = vmatmul.mubr.f32.gmra.mxu1 %v7407_v47  ;;  %v7464_v40 = vadd.f32 %v5111_v18, %v2907_v38  ;;  %v5120_v47 = vpop.f32.mrf.mxu1  ;;  %v3700_v18 = vld [vmem:[#allocation4 + $0x189] sm:$0xff] }
 0x33a   : > { %5257 = vmatprep.mubr.f32.mxu1 %v7417_v45  ;;  %v2909_v42 = vpop.f32.mrf.mxu0 }
 0x33b   : > { %3891 = vmatmul.mubr.f32.gmra.mxu0 %v3689_v57  ;;  %v3157_v3 = vpop.f32.mrf.mxu1 }
 0x33c   : > { %3895 = vmatprep.mubr.f32.mxu0 %v3692_v6  ;;  %v7467_v27 = vpop.f32.mrf.mxu0 }
 0x33d   : > { %5258 = vmatmul.mubr.f32.gmra.mxu1 %v7425_v29 }
 0x33e   : > { %5260 = vmatprep.mubr.f32.mxu1 %v3686_v9  ;;  %v2914_v24 = vpop.f32.mrf.mxu0  ;;  %v3697_v9 = vld [vmem:[#allocation4 + $0x151] sm:$0xff] }
 0x33f   : > { %3896 = vmatmul.mubr.f32.gmra.mxu0 %v3690_v58  ;;  %v5123_v62 = vpop.f32.mrf.mxu1 }
 0x340   : > { %3900 = vmatprep.mubr.f32.mxu0 %v3693_v4  ;;  %v2917_v61 = vpop.f32.mrf.mxu0 }
 0x341   : > { %5261 = vmatmul.mubr.f32.gmra.mxu1 %v3687_v51  ;;  %v7472_v7 = vadd.f32 %v5114_v14, %v2917_v61  ;;  %v3701_v14 = vld [vmem:[#allocation4 + $0x191] sm:$0xff] }
 0x342   : > { %5263 = vmatprep.mubr.f32.mxu1 %v3688_v19  ;;  %v2919_v22 = vpop.f32.mrf.mxu0  ;;  %v3167_v19 = vpop.f32.mrf.mxu1  ;;  %v3703_v61 = vld [vmem:[#allocation4 + $0x1b1] sm:$0xff] }
 0x343   : > { %3901 = vmatmul.mubr.f32.gmra.mxu0 %v3691_v25 }
 0x344   : > { %3905 = vmatprep.mubr.f32.mxu0 %v3694_v52  ;;  %v2922_v15 = vpop.f32.mrf.mxu0 }
 0x345   : > { %5264 = vmatmul.mubr.f32.gmra.mxu1 %v3689_v57  ;;  %v7474_v26 = vadd.f32 %v3147_v39, %v2922_v15 }
 0x346   : > { %5266 = vmatprep.mubr.f32.mxu1 %v3690_v58  ;;  %v2924_v44 = vpop.f32.mrf.mxu0 }
 0x347   : > { %3906 = vmatmul.mubr.f32.gmra.mxu0 %v3692_v6  ;;  %v5126_v5 = vpop.f32.mrf.mxu1 }
 0x348   : > { %3910 = vmatprep.mubr.f32.mxu0 %v3695_v37  ;;  %v2927_v28 = vpop.f32.mrf.mxu0 }
 0x349   : > { %5267 = vmatmul.mubr.f32.gmra.mxu1 %v3691_v25  ;;  %v7476_v46 = vadd.f32 %v5117_v30, %v2927_v28  ;;  %v3177_v38 = vpop.f32.mrf.mxu1 }
 0x34a   : > { %5269 = vmatprep.mubr.f32.mxu1 %v3692_v6  ;;  %v2929_v45 = vpop.f32.mrf.mxu0  ;;  %v3702_v6 = vld [vmem:[#allocation4 + $0x1a9] sm:$0xff] }
 0x34b   : > { %3911 = vmatmul.mubr.f32.gmra.mxu0 %v3693_v4  ;;  %v3706_v45 = vld [vmem:[#allocation4 + $0x1e9] sm:$0xff] }
 0x34c   : > { %3915 = vmatprep.mubr.f32.mxu0 %v3696_v48  ;;  %v2932_v29 = vpop.f32.mrf.mxu0 }
 0x34d   : > { %5270 = vmatmul.mubr.f32.gmra.mxu1 %v3693_v4  ;;  %v7478_v8 = vadd.f32 %v3157_v3, %v2932_v29  ;;  %v3707_v29 = vld [vmem:[#allocation4 + $0x1f1] sm:$0xff] }
 0x34e   : > { %5272 = vmatprep.mubr.f32.mxu1 %v3694_v52  ;;  %v2934_v20 = vpop.f32.mrf.mxu0 }
 0x34f   : > { %3916 = vmatmul.mubr.f32.gmra.mxu0 %v3694_v52  ;;  %v5129_v30 = vpop.f32.mrf.mxu1  ;;  %v3704_v52 = vld [vmem:[#allocation4 + $0x1c9] sm:$0xff] }
 0x350   : > { %3920 = vmatprep.mubr.f32.mxu0 %v3697_v9  ;;  %v2937_v34 = vpop.f32.mrf.mxu0 }
 0x351   : > { %5273 = vmatmul.mubr.f32.gmra.mxu1 %v3695_v37  ;;  %v7480_v51 = vadd.f32 %v5120_v47, %v2937_v34  ;;  %v3187_v44 = vpop.f32.mrf.mxu1 }
 0x352   : > { %5275 = vmatprep.mubr.f32.mxu1 %v3696_v48  ;;  %v2939_v54 = vpop.f32.mrf.mxu0 }
 0x353   : > { %3921 = vmatmul.mubr.f32.gmra.mxu0 %v3695_v37  ;;  %v3705_v37 = vld [vmem:[#allocation4 + $0x1d1] sm:$0xff] }
 0x354   : > { %3925 = vmatprep.mubr.f32.mxu0 %v3698_v10  ;;  %v2942_v23 = vpop.f32.mrf.mxu0 }
 0x355   : > { %5276 = vmatmul.mubr.f32.gmra.mxu1 %v3697_v9  ;;  %v7482_v11 = vadd.f32 %v3167_v19, %v2942_v23  ;;  %v3710_v19 = vld [vmem:[#allocation4 + $0x229] sm:$0xff]  ;;  %v3709_v23 = vld [vmem:[#allocation4 + $0x211] sm:$0xff] }
 0x356   : > { %5278 = vmatprep.mubr.f32.mxu1 %v3698_v10  ;;  %v2944_v57 = vpop.f32.mrf.mxu0 }
 0x357   : > { %3926 = vmatmul.mubr.f32.gmra.mxu0 %v3696_v48  ;;  %v5132_v28 = vpop.f32.mrf.mxu1 }
 0x358   : > { %3930 = vmatprep.mubr.f32.mxu0 %v3699_v53  ;;  %v2947_v58 = vpop.f32.mrf.mxu0 }
 0x359   : > { %5279 = vmatmul.mubr.f32.gmra.mxu1 %v3699_v53  ;;  %v7484_v33 = vadd.f32 %v5123_v62, %v2947_v58  ;;  %v3708_v62 = vld [vmem:[#allocation4 + $0x209] sm:$0xff]  ;;  %v3711_v58 = vld [vmem:[#allocation4 + $0x231] sm:$0xff] }
 0x35a   : > { %5281 = vmatprep.mubr.f32.mxu1 %v3700_v18  ;;  %v2949_v25 = vpop.f32.mrf.mxu0 }
 0x35b   : > { %3931 = vmatmul.mubr.f32.gmra.mxu0 %v3697_v9  ;;  %v3197_v9 = vpop.f32.mrf.mxu1 }
 0x35c   : > { %3935 = vmatprep.mubr.f32.mxu0 %v3700_v18  ;;  %v2952_v42 = vpop.f32.mrf.mxu0 }
 0x35d   : > { %5282 = vmatmul.mubr.f32.gmra.mxu1 %v3701_v14  ;;  %v7486_v24 = vadd.f32 %v3177_v38, %v2952_v42 }
 0x35e   : > { %5284 = vmatprep.mubr.f32.mxu1 %v3702_v6  ;;  %v2954_v4 = vpop.f32.mrf.mxu0 }
 0x35f   : > { %3936 = vmatmul.mubr.f32.gmra.mxu0 %v3698_v10  ;;  %v5135_v10 = vpop.f32.mrf.mxu1 }
 0x360   : > { %3940 = vmatprep.mubr.f32.mxu0 %v3701_v14  ;;  %v2957_v22 = vpop.f32.mrf.mxu0 }
 0x361   : > { %5285 = vmatmul.mubr.f32.gmra.mxu1 %v3703_v61  ;;  %v7488_v39 = vadd.f32 %v5126_v5, %v2957_v22 }
 0x362   : > { %5287 = vmatprep.mubr.f32.mxu1 %v3704_v52  ;;  %v2959_v15 = vpop.f32.mrf.mxu0 }
 0x363   : > { %3941 = vmatmul.mubr.f32.gmra.mxu0 %v3699_v53 }
 0x364   : > { %3945 = vmatprep.mubr.f32.mxu0 %v3702_v6  ;;  %v2962_v47 = vpop.f32.mrf.mxu0 }
 0x365   : > { %5288 = vmatmul.mubr.f32.gmra.mxu1 %v3705_v37  ;;  %v7490_v48 = vadd.f32 %v3187_v44, %v2962_v47 }
 0x366   : > { %5290 = vmatprep.mubr.f32.mxu1 %v3706_v45  ;;  %v2964_v3 = vpop.f32.mrf.mxu0 }
 0x367   : > { %3946 = vmatmul.mubr.f32.gmra.mxu0 %v3700_v18  ;;  %v3207_v18 = vpop.f32.mrf.mxu1 }
 0x368   : > { %3950 = vmatprep.mubr.f32.mxu0 %v3703_v61  ;;  %v2967_v20 = vpop.f32.mrf.mxu0 }
 0x369   : > { %5291 = vmatmul.mubr.f32.gmra.mxu1 %v3707_v29  ;;  %v7492_v34 = vadd.f32 %v5129_v30, %v2967_v20  ;;  %v3068_v30 = vadd.f32 %v7381_v12, %v7371_v50  ;;  %v3078_v50 = vadd.f32 %v7397_v59, %v7386_v49  ;;  %v3088_v49 = vadd.f32 %v7413_v32, %v7402_v31 }
 0x36a   : > { %5293 = vmatprep.mubr.f32.mxu1 %v3708_v62  ;;  %v2969_v54 = vpop.f32.mrf.mxu0  ;;  %v3098_v31 = vadd.f32 %v7431_v21, %v7420_v60 }
 0x36b   : > { %3951 = vmatmul.mubr.f32.gmra.mxu0 %v3701_v14 }
 0x36c   : > { %3955 = vmatprep.mubr.f32.mxu0 %v3704_v52  ;;  %v2972_v57 = vpop.f32.mrf.mxu0 }
 0x36d   : > { %5294 = vmatmul.mubr.f32.gmra.mxu1 %v3709_v23  ;;  %v7494_v53 = vadd.f32 %v3197_v9, %v2972_v57 }
 0x36e   : > { %v2974_v5 = vpop.f32.mrf.mxu0  ;;  %5296 = vmatprep.mubr.f32.mxu1 %v3710_v19 }
 0x36f   : > { %3956 = vmatmul.mubr.f32.gmra.mxu0 %v3702_v6 }
 0x370   : > { %3960 = vmatprep.mubr.f32.mxu0 %v3705_v37  ;;  %v2977_v25 = vpop.f32.mrf.mxu0 }
 0x371   : > { %v5138_v38 = vpop.f32.mrf.mxu1  ;;  %v7496_v42 = vadd.f32 %v5132_v28, %v2977_v25  ;;  %5297 = vmatmul.mubr.f32.gmra.mxu1 %v3711_v58 }
 0x372   : > { %v2979_v4 = vpop.f32.mrf.mxu0 }
 0x373   : > { %v3217_v14 = vpop.f32.mrf.mxu1  ;;  %3961 = vmatmul.mubr.f32.gmra.mxu0 %v3703_v61 }
 0x374   : > { %3965 = vmatprep.mubr.f32.mxu0 %v3706_v45  ;;  %v2982_v22 = vpop.f32.mrf.mxu0 }
 0x375   : > { %v3292_v15 = vpop.f32.mrf.mxu1  ;;  %v7500_v44 = vadd.f32 %v3207_v18, %v2982_v22 }
 0x376   : > { %v3293_v47 = vadd.f32 %v3292_v15, %v3068_v30  ;;  %v2984_v3 = vpop.f32.mrf.mxu0 }
 0x377   : > { %v3294_v6 = vpop.f32.mrf.mxu1  ;;  %3966 = vmatmul.mubr.f32.gmra.mxu0 %v3704_v52 }
 0x378   : > { %3970 = vmatprep.mubr.f32.mxu0 %v3707_v29  ;;  %v2987_v20 = vpop.f32.mrf.mxu0 }
 0x379   : > { %v3297_v28 = vpop.f32.mrf.mxu1  ;;  %v7502_v9 = vadd.f32 %v5135_v10, %v2987_v20 }
 0x37a   : > { %v3298_v54 = vadd.f32 %v3297_v28, %v7378_v0  ;;  %v2989_v61 = vpop.f32.mrf.mxu0 }
 0x37b   : > { %v3299_v19 = vpop.f32.mrf.mxu1  ;;  %3971 = vmatmul.mubr.f32.gmra.mxu0 %v3705_v37 }
 0x37c   : > { %3975 = vmatprep.mubr.f32.mxu0 %v3708_v62  ;;  %v2992_v12 = vpop.f32.mrf.mxu0 }
 0x37d   : > { %v3302_v57 = vpop.f32.mrf.mxu1  ;;  %v7507_v5 = vadd.f32 %v3217_v14, %v2992_v12 }
 0x37e   : > { %v3303_v58 = vadd.f32 %v3302_v57, %v3078_v50  ;;  %v2994_v52 = vpop.f32.mrf.mxu0 }
 0x37f   : > { %v3304_v18 = vpop.f32.mrf.mxu1  ;;  %3976 = vmatmul.mubr.f32.gmra.mxu0 %v3706_v45 }
 0x380   : > { %3980 = vmatprep.mubr.f32.mxu0 %v3709_v23  ;;  %v2997_v10 = vpop.f32.mrf.mxu0 }
 0x381   : > { %v3307_v25 = vpop.f32.mrf.mxu1  ;;  %v7509_v4 = vadd.f32 %v5138_v38, %v2997_v10  ;;  %v3108_v10 = vadd.f32 %v7443_v35, %v7435_v43  ;;  %v3118_v43 = vadd.f32 %v7454_v63, %v7447_v36 }
 0x382   : > { %v3308_v0 = vadd.f32 %v3307_v25, %v7394_v2  ;;  %v2999_v37 = vpop.f32.mrf.mxu0 }
 0x383   : > { %v3309_v30 = vpop.f32.mrf.mxu1  ;;  %3981 = vmatmul.mubr.f32.gmra.mxu0 %v3707_v29 }
 0x384   : > { %v5173_v59 = vpop.f32.mrf.mxu0 }
 0x385   : > { %v3312_v62 = vpop.f32.mrf.mxu1  ;;  %v7514_v14 = vadd.f32 %v5173_v59, %v3298_v54 }
 0x386   : > { %v3313_v22 = vadd.f32 %v3312_v62, %v3088_v49  ;;  %v3517_v15 = vpop.f32.mrf.mxu0 }
 0x387   : > { %v3314_v45 = vpop.f32.mrf.mxu1  ;;  %v7516_v23 = vadd.f32 %v3517_v15, %v3293_v47 }
 0x389   : > { %v3317_v3 = vpop.f32.mrf.mxu1  ;;  %v5176_v38 = vpop.f32.mrf.mxu0 }
 0x38a   : > { %v3318_v6 = vadd.f32 %v3317_v3, %v7411_v41  ;;  %v7519_v2 = vadd.f32 %v5176_v38, %v3308_v0 }
 0x38b   : > { %v3319_v20 = vpop.f32.mrf.mxu1  ;;  %v3527_v29 = vpop.f32.mrf.mxu0 }
 0x38c   : > { %v7523_v32 = vadd.f32 %v3527_v29, %v3303_v58 }
 0x38d   : > { %v3322_v28 = vpop.f32.mrf.mxu1 }
 0x38e   : > { %v3323_v54 = vadd.f32 %v3322_v28, %v3098_v31  ;;  %v5179_v61 = vpop.f32.mrf.mxu0 }
 0x38f   : > { %v3324_v19 = vpop.f32.mrf.mxu1  ;;  %v7525_v50 = vadd.f32 %v5179_v61, %v3318_v6 }
 0x390   : > { %v3537_v47 = vpop.f32.mrf.mxu0  ;;  %v3128_v19 = vadd.f32 %v7461_v1, %v7457_v55 }
 0x391   : > { %v3327_v12 = vpop.f32.mrf.mxu1  ;;  %v7527_v57 = vadd.f32 %v3537_v47, %v3313_v22 }
 0x392   : > { %v3328_v41 = vadd.f32 %v3327_v12, %v7429_v17 }
 0x393   : > { %v3329_v52 = vpop.f32.mrf.mxu1  ;;  %v5182_v18 = vpop.f32.mrf.mxu0 }
 0x394   : > { %v7532_v60 = vadd.f32 %v5182_v18, %v3328_v41 }
 0x395   : > { %v3332_v21 = vpop.f32.mrf.mxu1  ;;  %v3547_v58 = vpop.f32.mrf.mxu0 }
 0x396   : > { %v3333_v25 = vadd.f32 %v3332_v21, %v3108_v10  ;;  %v7534_v0 = vadd.f32 %v3547_v58, %v3323_v54 }
 0x397   : > { %v3334_v37 = vpop.f32.mrf.mxu1  ;;  %v5185_v30 = vpop.f32.mrf.mxu0 }
 0x398   : > { %v3138_v37 = vadd.f32 %v7470_v56, %v7467_v27 }
 0x399   : > { %v3337_v49 = vpop.f32.mrf.mxu1  ;;  %v3557_v59 = vpop.f32.mrf.mxu0 }
 0x39a   : > { %v3338_v62 = vadd.f32 %v3337_v49, %v7441_v16  ;;  %v7537_v22 = vadd.f32 %v3557_v59, %v3333_v25 }
 0x39b   : > { %v3339_v17 = vpop.f32.mrf.mxu1  ;;  %v5188_v15 = vpop.f32.mrf.mxu0 }
 0x39c   : > { %v7541_v35 = vadd.f32 %v5185_v30, %v3338_v62 }
 0x39d   : > { %v3342_v45 = vpop.f32.mrf.mxu1  ;;  %v3567_v3 = vpop.f32.mrf.mxu0 }
 0x39e   : > { %v3343_v38 = vadd.f32 %v3342_v45, %v3118_v43 }
 0x39f   : > { %v3344_v6 = vpop.f32.mrf.mxu1  ;;  %v5191_v20 = vpop.f32.mrf.mxu0 }
 0x3a0   : > { %v7543_v29 = vadd.f32 %v3567_v3, %v3343_v38 }
 0x3a1   : > { %v3347_v31 = vpop.f32.mrf.mxu1  ;;  %v3577_v28 = vpop.f32.mrf.mxu0 }
 0x3a2   : > { %v3348_v16 = vadd.f32 %v3347_v31, %v7452_v13 }
 0x3a3   : > { %v3349_v54 = vpop.f32.mrf.mxu1  ;;  %v5194_v61 = vpop.f32.mrf.mxu0 }
 0x3a4   : > { %v7548_v47 = vadd.f32 %v5188_v15, %v3348_v16 }
 0x3a5   : > { %v3352_v36 = vpop.f32.mrf.mxu1  ;;  %v3587_v63 = vpop.f32.mrf.mxu0 }
 0x3a6   : > { %v3353_v12 = vadd.f32 %v3352_v36, %v3128_v19 }
 0x3a7   : > { %v3354_v41 = vpop.f32.mrf.mxu1  ;;  %v5197_v52 = vpop.f32.mrf.mxu0 }
 0x3a8   : > { %v7550_v18 = vadd.f32 %v3577_v28, %v3353_v12 }
 0x3a9   : > { %v3357_v10 = vpop.f32.mrf.mxu1  ;;  %v3597_v21 = vpop.f32.mrf.mxu0 }
 0x3aa   : > { %v3358_v58 = vadd.f32 %v3357_v10, %v7464_v40 }
 0x3ab   : > { %v3359_v25 = vpop.f32.mrf.mxu1  ;;  %v5200_v13 = vpop.f32.mrf.mxu0 }
 0x3ac   : > { %v7555_v30 = vadd.f32 %v5191_v20, %v3358_v58 }
 0x3ad   : > { %v3362_v55 = vpop.f32.mrf.mxu1  ;;  %v3607_v1 = vpop.f32.mrf.mxu0 }
 0x3ae   : > { %v3363_v49 = vadd.f32 %v3362_v55, %v3138_v37 }
 0x3af   : > { %v3364_v59 = vpop.f32.mrf.mxu1  ;;  %v5203_v62 = vpop.f32.mrf.mxu0 }
 0x3b0   : > { %v7557_v17 = vadd.f32 %v3587_v63, %v3363_v49 }
 0x3b1   : > { %v3367_v15 = vpop.f32.mrf.mxu1  ;;  %v3617_v43 = vpop.f32.mrf.mxu0 }
 0x3b2   : > { %v3368_v45 = vadd.f32 %v3367_v15, %v7472_v7 }
 0x3b3   : > { %v3369_v3 = vpop.f32.mrf.mxu1  ;;  %v5206_v40 = vpop.f32.mrf.mxu0 }
 0x3b4   : > { %v7560_v38 = vadd.f32 %v5194_v61, %v3368_v45 }
 0x3b5   : > { %v3372_v6 = vpop.f32.mrf.mxu1  ;;  %v3627_v31 = vpop.f32.mrf.mxu0 }
 0x3b6   : > { %v3373_v27 = vadd.f32 %v3372_v6, %v7474_v26 }
 0x3b7   : > { %v3374_v56 = vpop.f32.mrf.mxu1  ;;  %v5209_v20 = vpop.f32.mrf.mxu0 }
 0x3b8   : > { %v7563_v28 = vadd.f32 %v3597_v21, %v3373_v27 }
 0x3b9   : > { %v3377_v16 = vpop.f32.mrf.mxu1  ;;  %v3637_v54 = vpop.f32.mrf.mxu0 }
 0x3ba   : > { %v3378_v19 = vadd.f32 %v3377_v16, %v7476_v46 }
 0x3bb   : > { %v3379_v36 = vpop.f32.mrf.mxu1  ;;  %v5212_v63 = vpop.f32.mrf.mxu0 }
 0x3bc   : > { %v7566_v12 = vadd.f32 %v5197_v52, %v3378_v19 }
 0x3bd   : > { %v3382_v7 = vpop.f32.mrf.mxu1  ;;  %v3647_v41 = vpop.f32.mrf.mxu0 }
 0x3be   : > { %v3383_v61 = vadd.f32 %v3382_v7, %v7478_v8 }
 0x3bf   : > { %v3384_v10 = vpop.f32.mrf.mxu1  ;;  %v7569_v58 = vpop.f32.mrf.mxu0 }
 0x3c0   : > { %v7571_v26 = vadd.f32 %v3607_v1, %v3383_v61 }
 0x3c1   : > { %v3387_v25 = vpop.f32.mrf.mxu1  ;;  %v3657_v21 = vpop.f32.mrf.mxu0 }
 0x3c2   : > { %v3388_v37 = vadd.f32 %v3387_v25, %v7480_v51 }
 0x3c3   : > { %v3389_v55 = vpop.f32.mrf.mxu1  ;;  %v7574_v49 = vpop.f32.mrf.mxu0 }
 0x3c4   : > { %v7576_v46 = vadd.f32 %v5200_v13, %v3388_v37 }
 0x3c5   : > { %v3392_v52 = vpop.f32.mrf.mxu1  ;;  %v7578_v59 = vpop.f32.mrf.mxu0 }
 0x3c6   : > { %v3393_v15 = vadd.f32 %v3392_v52, %v7482_v11 }
 0x3c7   : > { %v3394_v8 = vpop.f32.mrf.mxu1  ;;  %v7581_v45 = vpop.f32.mrf.mxu0 }
 0x3c8   : > { %v7583_v3 = vadd.f32 %v3617_v43, %v3393_v15 }
 0x3c9   : > { %v3397_v1 = vpop.f32.mrf.mxu1  ;;  %v3829_v6 = vpop.f32.mrf.mxu0 }
 0x3ca   : > { %v3398_v27 = vadd.f32 %v3397_v1, %v7484_v33 }
 0x3cb   : > { %v3399_v51 = vpop.f32.mrf.mxu1  ;;  %v7586_v56 = vpop.f32.mrf.mxu0 }
 0x3cc   : > { %v7588_v16 = vadd.f32 %v5203_v62, %v3398_v27 }
 0x3cd   : > { %v3402_v13 = vpop.f32.mrf.mxu1  ;;  %v3834_v19 = vpop.f32.mrf.mxu0 }
 0x3ce   : > { %v3403_v36 = vadd.f32 %v3402_v13, %v7486_v24 }
 0x3cf   : > { %v3404_v7 = vpop.f32.mrf.mxu1  ;;  %v7591_v11 = vpop.f32.mrf.mxu0 }
 0x3d0   : > { %v7593_v61 = vadd.f32 %v3627_v31, %v3403_v36 }
 0x3d1   : > { %v3407_v43 = vpop.f32.mrf.mxu1  ;;  %v3839_v10 = vpop.f32.mrf.mxu0 }
 0x3d2   : > { %v3408_v25 = vadd.f32 %v3407_v43, %v7488_v39 }
 0x3d3   : > { %v3409_v37 = vpop.f32.mrf.mxu1  ;;  %v3842_v33 = vpop.f32.mrf.mxu0 }
 0x3d4   : > { %v7596_v55 = vadd.f32 %v5206_v40, %v3408_v25 }
 0x3d5   : > { %v3412_v52 = vpop.f32.mrf.mxu1  ;;  %v3844_v62 = vpop.f32.mrf.mxu0 }
 0x3d6   : > { %v3413_v15 = vadd.f32 %v3412_v52, %v7490_v48 }
 0x3d7   : > { %v3414_v8 = vpop.f32.mrf.mxu1  ;;  %v7599_v1 = vpop.f32.mrf.mxu0 }
 0x3d8   : > { %v7601_v24 = vadd.f32 %v3637_v54, %v3413_v15 }
 0x3d9   : > { %v3417_v6 = vpop.f32.mrf.mxu1  ;;  %v3849_v31 = vpop.f32.mrf.mxu0 }
 0x3da   : > { %v3418_v27 = vadd.f32 %v3417_v6, %v7492_v34 }
 0x3db   : > { %v3419_v51 = vpop.f32.mrf.mxu1  ;;  %v7604_v13 = vpop.f32.mrf.mxu0 }
 0x3dc   : > { %v7606_v39 = vadd.f32 %v5209_v20, %v3418_v27 }
 0x3dd   : > { %v3422_v40 = vpop.f32.mrf.mxu1  ;;  %v3854_v19 = vpop.f32.mrf.mxu0 }
 0x3de   : > { %v3423_v36 = vadd.f32 %v3422_v40, %v7494_v53 }
 0x3df   : > { %v3424_v7 = vpop.f32.mrf.mxu1  ;;  %v7609_v48 = vpop.f32.mrf.mxu0 }
 0x3e0   : > { %v7611_v43 = vadd.f32 %v3647_v41, %v3423_v36 }
 0x3e1   : > { %v3427_v54 = vpop.f32.mrf.mxu1  ;;  %v3859_v10 = vpop.f32.mrf.mxu0 }
 0x3e2   : > { %v3428_v25 = vadd.f32 %v3427_v54, %v7496_v42 }
 0x3e3   : > { %v3429_v37 = vpop.f32.mrf.mxu1  ;;  %v7614_v34 = vpop.f32.mrf.mxu0 }
 0x3e4   : > { %v7616_v52 = vadd.f32 %v5212_v63, %v3428_v25 }
 0x3e5   : > { %v3432_v20 = vpop.f32.mrf.mxu1  ;;  %v3864_v62 = vpop.f32.mrf.mxu0 }
 0x3e6   : > { %v3433_v15 = vadd.f32 %v3432_v20, %v7500_v44 }
 0x3e7   : > { %v3434_v8 = vpop.f32.mrf.mxu1  ;;  %v7619_v53 = vpop.f32.mrf.mxu0 }
 0x3e8   : > { %v7621_v6 = vadd.f32 %v3657_v21, %v3433_v15  ;;  %v7645_v15 = vld [vmem:[%s7825_s4] ss:$0 sm:$0xff] }
 0x3e9   : > { %v3437_v41 = vpop.f32.mrf.mxu1  ;;  %v3869_v31 = vpop.f32.mrf.mxu0 }
 0x3ea   : > { %v3438_v27 = vadd.f32 %v3437_v41, %v7502_v9 }
 0x3eb   : > { %v3439_v51 = vpop.f32.mrf.mxu1  ;;  %v7624_v42 = vpop.f32.mrf.mxu0 }
 0x3ec   : > { %v7627_v40 = vadd.f32 %v7569_v58, %v3438_v27 }
 0x3ed   : > { %v3442_v63 = vpop.f32.mrf.mxu1  ;;  %v3874_v19 = vpop.f32.mrf.mxu0 }
 0x3ee   : > { %v3443_v36 = vadd.f32 %v3442_v63, %v7507_v5 }
 0x3ef   : > { %v3444_v44 = vpop.f32.mrf.mxu1  ;;  %v7630_v7 = vpop.f32.mrf.mxu0 }
 0x3f0   : > { %v7633_v21 = vadd.f32 %v7578_v59, %v3443_v36  ;;  %v5421_v36 = vld [vmem:[#allocation2 + $0x50] sm:$0xff] }
 0x3f1   : > { %v3447_v54 = vpop.f32.mrf.mxu1  ;;  %v3879_v10 = vpop.f32.mrf.mxu0 }
 0x3f2   : > { %v3448_v9 = vadd.f32 %v3447_v54, %v7509_v4 }
 0x3f3   : > { %v3449_v25 = vpop.f32.mrf.mxu1  ;;  %v7636_v37 = vpop.f32.mrf.mxu0 }
 0x3f4   : > { %v7639_v58 = vadd.f32 %v7574_v49, %v3448_v9  ;;  %v5422_v25 = vld [vmem:[#allocation2 + $0x48] sm:$0xff] }
 0x3f5   : > { %v5253_v20 = vpop.f32.mrf.mxu1  ;;  %v3884_v62 = vpop.f32.mrf.mxu0 }
 0x3f6   : > { %v4058_v5 = vadd.f32 %v5253_v20, %v7586_v56 }
 0x3f7   : > { %v4052_v59 = vpop.f32.mrf.mxu1  ;;  %v7647_v8 = vpop.f32.mrf.mxu0 }
 0x3f8   : > { %v4212_v4 = vadd.f32 %v4058_v5, %v7514_v14  ;;  %v4053_v41 = vadd.f32 %v4052_v59, %v7581_v45 }
 0x3f9   : > { %v5256_v31 = vpop.f32.mrf.mxu1  ;;  %v3889_v49 = vpop.f32.mrf.mxu0 }
 0x3fa   : > { %v4251_v27 = vadd.f32 %v7645_v15, %v4212_v4  ;;  %v4211_v51 = vadd.f32 %v4053_v41, %v7516_v23  ;;  %v4068_v56 = vadd.f32 %v5256_v31, %v3842_v33 }
 0x3fb   : > { %v4062_v63 = vpop.f32.mrf.mxu1  ;;  %v7653_v19 = vpop.f32.mrf.mxu0 }
 0x3fc   : > { %v4283_v44 = vadd.f32 %v5421_v36, %v4251_v27  ;;  %v4250_v54 = vadd.f32 %v7645_v15, %v4211_v51  ;;  %v4214_v14 = vadd.f32 %v4068_v56, %v7519_v2  ;;  %v4063_v10 = vadd.f32 %v4062_v63, %v7591_v11  ;;  %v5423_v2 = vld [vmem:[#allocation2 + $0x70] sm:$0xff] }
 0x3fd   : > { %v5259_v45 = vpop.f32.mrf.mxu1  ;;  %v3894_v9 = vpop.f32.mrf.mxu0 }
 0x3fe   : > { %4315 = vst [vmem:[%s5766_s11 + $0x8] sm:$0xff] %v4283_v44  ;;  %v4282_v20 = vadd.f32 %v5422_v25, %v4250_v54  ;;  %v4253_v23 = vadd.f32 %v7645_v15, %v4214_v14  ;;  %v4213_v33 = vadd.f32 %v4063_v10, %v7523_v32  ;;  %v4078_v62 = vadd.f32 %v5259_v45, %v7604_v13  ;;  %v5424_v32 = vld [vmem:[#allocation2 + $0x68] sm:$0xff]  ;;  %v5425_v54 = vld [vmem:[#allocation2 + $0x90] sm:$0xff] }
 0x3ff   : > { %v4072_v5 = vpop.f32.mrf.mxu1  ;;  %v7662_v59 = vpop.f32.mrf.mxu0  ;;  %v5426_v25 = vld [vmem:[#allocation2 + $0x88] sm:$0xff] }
 0x400   : > { %4314 = vst [vmem:[%s5766_s11] sm:$0xff] %v4282_v20  ;;  %v4285_v4 = vadd.f32 %v5423_v2, %v4253_v23  ;;  %v4252_v11 = vadd.f32 %v7645_v15, %v4213_v33  ;;  %v4216_v41 = vadd.f32 %v4078_v62, %v7525_v50  ;;  %v4073_v31 = vadd.f32 %v4072_v5, %v7599_v1 }
 0x401   : > { %v5262_v49 = vpop.f32.mrf.mxu1  ;;  %v3899_v27 = vpop.f32.mrf.mxu0 }
 0x402   : > { %4317 = vst [vmem:[%s5766_s11 + $0x18] sm:$0xff] %v4285_v4  ;;  %v4284_v51 = vadd.f32 %v5424_v32, %v4252_v11  ;;  %v4255_v13 = vadd.f32 %v7645_v15, %v4216_v41  ;;  %v4215_v56 = vadd.f32 %v4073_v31, %v7527_v57  ;;  %v4088_v63 = vadd.f32 %v5262_v49, %v7614_v34 }
 0x403   : > { %v4082_v36 = vpop.f32.mrf.mxu1  ;;  %v3902_v44 = vpop.f32.mrf.mxu0 }
 0x404   : > { %4316 = vst [vmem:[%s5766_s11 + $0x10] sm:$0xff] %v4284_v51  ;;  %v4287_v50 = vadd.f32 %v5425_v54, %v4255_v13  ;;  %v4254_v1 = vadd.f32 %v7645_v15, %v4215_v56  ;;  %v4218_v14 = vadd.f32 %v4088_v63, %v7532_v60  ;;  %v4083_v10 = vadd.f32 %v4082_v36, %v7609_v48  ;;  %v5427_v60 = vld [vmem:[#allocation2 + $0xb0] sm:$0xff] }
 0x405   : > { %v5265_v45 = vpop.f32.mrf.mxu1  ;;  %v3904_v9 = vpop.f32.mrf.mxu0  ;;  %v5429_v13 = vld [vmem:[#allocation2 + $0xd0] sm:$0xff] }
 0x406   : > { %4319 = vst [vmem:[%s5766_s11 + $0x28] sm:$0xff] %v4287_v50  ;;  %v4286_v57 = vadd.f32 %v5426_v25, %v4254_v1  ;;  %v4257_v34 = vadd.f32 %v7645_v15, %v4218_v14  ;;  %v4217_v20 = vadd.f32 %v4083_v10, %v7534_v0  ;;  %v4098_v23 = vadd.f32 %v5265_v45, %v7624_v42  ;;  %v5428_v0 = vld [vmem:[#allocation2 + $0xa8] sm:$0xff]  ;;  %v5431_v9 = vld [vmem:[#allocation2 + $0xf0] sm:$0xff] }
 0x407   : > { %v4092_v33 = vpop.f32.mrf.mxu1  ;;  %v7680_v62 = vpop.f32.mrf.mxu0  ;;  %v5430_v50 = vld [vmem:[#allocation2 + $0xc8] sm:$0xff] }
 0x408   : > { %4318 = vst [vmem:[%s5766_s11 + $0x20] sm:$0xff] %v4286_v57  ;;  %v4289_v5 = vadd.f32 %v5427_v60, %v4257_v34  ;;  %v4256_v48 = vadd.f32 %v7645_v15, %v4217_v20  ;;  %v4220_v2 = vadd.f32 %v4098_v23, %v7541_v35  ;;  %v4093_v4 = vadd.f32 %v4092_v33, %v7619_v53  ;;  %v5432_v23 = vld [vmem:[#allocation2 + $0xe8] sm:$0xff] }
 0x409   : > { %v5268_v11 = vpop.f32.mrf.mxu1  ;;  %v3909_v41 = vpop.f32.mrf.mxu0 }
 0x40a   : > { %4321 = vst [vmem:[%s5766_s11 + $0x38] sm:$0xff] %v4289_v5  ;;  %v4288_v31 = vadd.f32 %v5428_v0, %v4256_v48  ;;  %v4259_v42 = vadd.f32 %v7645_v15, %v4220_v2  ;;  %v4219_v49 = vadd.f32 %v4093_v4, %v7537_v22  ;;  %v4108_v27 = vadd.f32 %v5268_v11, %v7636_v37  ;;  %v5433_v2 = vld [vmem:[#allocation2 + $0x110] sm:$0xff] }
 0x40b   : > { %v4102_v32 = vpop.f32.mrf.mxu1  ;;  %v3912_v51 = vpop.f32.mrf.mxu0 }
 0x40c   : > { %4320 = vst [vmem:[%s5766_s11 + $0x30] sm:$0xff] %v4288_v31  ;;  %v4291_v35 = vadd.f32 %v5429_v13, %v4259_v42  ;;  %v4258_v53 = vadd.f32 %v7645_v15, %v4219_v49  ;;  %v4222_v56 = vadd.f32 %v4108_v27, %v7548_v47  ;;  %v4103_v63 = vadd.f32 %v4102_v32, %v7630_v7  ;;  %v5434_v31 = vld [vmem:[#allocation2 + $0x108] sm:$0xff]  ;;  %v5435_v13 = vld [vmem:[#allocation2 + $0x130] sm:$0xff] }
 0x40d   : > { %v5271_v36 = vpop.f32.mrf.mxu1  ;;  %v3914_v54 = vpop.f32.mrf.mxu0 }
 0x40e   : > { %4323 = vst [vmem:[%s5766_s11 + $0x48] sm:$0xff] %v4291_v35  ;;  %v4290_v22 = vadd.f32 %v5430_v50, %v4258_v53  ;;  %v4261_v37 = vadd.f32 %v7645_v15, %v4222_v56  ;;  %v4221_v1 = vadd.f32 %v4103_v63, %v7543_v29  ;;  %v4118_v14 = vadd.f32 %v5271_v36, %v7653_v19  ;;  %v5436_v36 = vld [vmem:[#allocation2 + $0x128] sm:$0xff] }
 0x40f   : > { %v4112_v10 = vpop.f32.mrf.mxu1  ;;  %v3917_v45 = vpop.f32.mrf.mxu0 }
 0x410   : > { %4322 = vst [vmem:[%s5766_s11 + $0x40] sm:$0xff] %v4290_v22  ;;  %v4293_v47 = vadd.f32 %v5431_v9, %v4261_v37  ;;  %v4260_v7 = vadd.f32 %v7645_v15, %v4221_v1  ;;  %v4224_v25 = vadd.f32 %v4118_v14, %v7555_v30  ;;  %v4113_v57 = vadd.f32 %v4112_v10, %v7647_v8  ;;  %v5437_v1 = vld [vmem:[#allocation2 + $0x150] sm:$0xff] }
 0x411   : > { %v5274_v34 = vpop.f32.mrf.mxu1  ;;  %v3919_v20 = vpop.f32.mrf.mxu0 }
 0x412   : > { %4325 = vst [vmem:[%s5766_s11 + $0x58] sm:$0xff] %v4293_v47  ;;  %v4292_v29 = vadd.f32 %v5432_v23, %v4260_v7  ;;  %v4263_v19 = vadd.f32 %v7645_v15, %v4224_v25  ;;  %v4223_v33 = vadd.f32 %v4113_v57, %v7550_v18  ;;  %v4128_v60 = vadd.f32 %v5274_v34, %v3902_v44  ;;  %v5438_v7 = vld [vmem:[#allocation2 + $0x148] sm:$0xff] }
 0x413   : > { %v4122_v5 = vpop.f32.mrf.mxu1  ;;  %v3922_v48 = vpop.f32.mrf.mxu0 }
 0x414   : > { %4324 = vst [vmem:[%s5766_s11 + $0x50] sm:$0xff] %v4292_v29  ;;  %v4295_v4 = vadd.f32 %v5433_v2, %v4263_v19  ;;  %v4262_v30 = vadd.f32 %v7645_v15, %v4223_v33  ;;  %v4226_v8 = vadd.f32 %v4128_v60, %v7560_v38  ;;  %v4123_v11 = vadd.f32 %v4122_v5, %v7662_v59  ;;  %v5439_v29 = vld [vmem:[#allocation2 + $0x170] sm:$0xff] }
 0x415   : > { %v5277_v41 = vpop.f32.mrf.mxu1  ;;  %v3924_v0 = vpop.f32.mrf.mxu0 }
 0x416   : > { %4327 = vst [vmem:[%s5766_s11 + $0x68] sm:$0xff] %v4295_v4  ;;  %v4294_v42 = vadd.f32 %v5434_v31, %v4262_v30  ;;  %v4265_v18 = vadd.f32 %v7645_v15, %v4226_v8  ;;  %v4225_v44 = vadd.f32 %v4123_v11, %v7557_v17  ;;  %v4138_v49 = vadd.f32 %v5277_v41, %v3912_v51  ;;  %v5441_v11 = vld [vmem:[#allocation2 + $0x190] sm:$0xff] }
 0x417   : > { %v4132_v27 = vpop.f32.mrf.mxu1  ;;  %v3927_v32 = vpop.f32.mrf.mxu0 }
 0x418   : > { %4326 = vst [vmem:[%s5766_s11 + $0x60] sm:$0xff] %v4294_v42  ;;  %v4297_v35 = vadd.f32 %v5435_v13, %v4265_v18  ;;  %v4264_v38 = vadd.f32 %v7645_v15, %v4225_v44  ;;  %v4228_v59 = vadd.f32 %v4138_v49, %v7566_v12  ;;  %v4133_v53 = vadd.f32 %v4132_v27, %v7680_v62  ;;  %v5442_v44 = vld [vmem:[#allocation2 + $0x188] sm:$0xff] }
 0x419   : > { %v5280_v56 = vpop.f32.mrf.mxu1  ;;  %v3929_v63 = vpop.f32.mrf.mxu0 }
 0x41a   : > { %4329 = vst [vmem:[%s5766_s11 + $0x78] sm:$0xff] %v4297_v35  ;;  %v4296_v54 = vadd.f32 %v5436_v36, %v4264_v38  ;;  %v4267_v17 = vadd.f32 %v7645_v15, %v4228_v59  ;;  %v4227_v51 = vadd.f32 %v4133_v53, %v7563_v28  ;;  %v4148_v50 = vadd.f32 %v5280_v56, %v3922_v48  ;;  %v5440_v48 = vld [vmem:[#allocation2 + $0x168] sm:$0xff]  ;;  %v5444_v36 = vld [vmem:[#allocation2 + $0x1b0] sm:$0xff] }
 0x41b   : > { %v4142_v22 = vpop.f32.mrf.mxu1  ;;  %v3932_v37 = vpop.f32.mrf.mxu0  ;;  %v5443_v56 = vld [vmem:[#allocation2 + $0x1a8] sm:$0xff] }
 0x41c   : > { %4328 = vst [vmem:[%s5766_s11 + $0x70] sm:$0xff] %v4296_v54  ;;  %v4299_v14 = vadd.f32 %v5437_v1, %v4267_v17  ;;  %v4266_v12 = vadd.f32 %v7645_v15, %v4227_v51  ;;  %v4230_v62 = vadd.f32 %v4148_v50, %v7576_v46  ;;  %v4143_v10 = vadd.f32 %v4142_v22, %v3917_v45 }
 0x41d   : > { %v5283_v9 = vpop.f32.mrf.mxu1  ;;  %v3934_v47 = vpop.f32.mrf.mxu0 }
 0x41e   : > { %4331 = vst [vmem:[%s5766_s11 + $0x88] sm:$0xff] %v4299_v14  ;;  %v4298_v25 = vadd.f32 %v5438_v7, %v4266_v12  ;;  %v4269_v28 = vadd.f32 %v7645_v15, %v4230_v62  ;;  %v4229_v57 = vadd.f32 %v4143_v10, %v7571_v26  ;;  %v4158_v34 = vadd.f32 %v5283_v9, %v3932_v37  ;;  %v5445_v37 = vld [vmem:[#allocation2 + $0x1c8] sm:$0xff]  ;;  %v5446_v47 = vld [vmem:[#allocation2 + $0x1d0] sm:$0xff] }
 0x41f   : > { %v4152_v20 = vpop.f32.mrf.mxu1  ;;  %v3937_v23 = vpop.f32.mrf.mxu0 }
 0x420   : > { %4330 = vst [vmem:[%s5766_s11 + $0x80] sm:$0xff] %v4298_v25  ;;  %v4301_v19 = vadd.f32 %v5439_v29, %v4269_v28  ;;  %v4268_v46 = vadd.f32 %v7645_v15, %v4229_v57  ;;  %v4232_v45 = vadd.f32 %v4158_v34, %v7588_v16  ;;  %v4153_v33 = vadd.f32 %v4152_v20, %v3927_v32 }
 0x421   : > { %v5286_v60 = vpop.f32.mrf.mxu1  ;;  %v3939_v5 = vpop.f32.mrf.mxu0 }
 0x422   : > { %4333 = vst [vmem:[%s5766_s11 + $0x98] sm:$0xff] %v4301_v19  ;;  %v4300_v2 = vadd.f32 %v5440_v48, %v4268_v46  ;;  %v4271_v26 = vadd.f32 %v7645_v15, %v4232_v45  ;;  %v4231_v4 = vadd.f32 %v4153_v33, %v7583_v3  ;;  %v5448_v48 = vld [vmem:[#allocation2 + $0x1f0] sm:$0xff] }
 0x423   : > { %v4162_v30 = vpop.f32.mrf.mxu1  ;;  %v3942_v8 = vpop.f32.mrf.mxu0 }
 0x424   : > { %4332 = vst [vmem:[%s5766_s11 + $0x90] sm:$0xff] %v4300_v2  ;;  %v4303_v41 = vadd.f32 %v5441_v11, %v4271_v26  ;;  %v4270_v0 = vadd.f32 %v7645_v15, %v4231_v4  ;;  %v4163_v16 = vadd.f32 %v4162_v30, %v3937_v23  ;;  %v4168_v31 = vadd.f32 %v5286_v60, %v3942_v8  ;;  %v5447_v23 = vld [vmem:[#allocation2 + $0x1e8] sm:$0xff] }
 0x425   : > { %v5289_v42 = vpop.f32.mrf.mxu1  ;;  %v3944_v18 = vpop.f32.mrf.mxu0 }
 0x426   : > { %4335 = vst [vmem:[%s5766_s11 + $0xa8] sm:$0xff] %v4303_v41  ;;  %v4302_v49 = vadd.f32 %v5442_v44, %v4270_v0  ;;  %v4233_v27 = vadd.f32 %v4163_v16, %v7593_v61  ;;  %v4234_v3 = vadd.f32 %v4168_v31, %v7596_v55  ;;  %v5449_v41 = vld [vmem:[#allocation2 + $0x208] sm:$0xff]  ;;  %v5450_v44 = vld [vmem:[#allocation2 + $0x210] sm:$0xff] }
 0x427   : > { %v4172_v32 = vpop.f32.mrf.mxu1  ;;  %v3947_v13 = vpop.f32.mrf.mxu0 }
 0x428   : > { %4334 = vst [vmem:[%s5766_s11 + $0xa0] sm:$0xff] %v4302_v49  ;;  %v4272_v35 = vadd.f32 %v7645_v15, %v4233_v27  ;;  %v4273_v38 = vadd.f32 %v7645_v15, %v4234_v3  ;;  %v4173_v59 = vadd.f32 %v4172_v32, %v3947_v13 }
 0x429   : > { %v3949_v53 = vpop.f32.mrf.mxu0  ;;  %v5292_v17 = vpop.f32.mrf.mxu1 }
 0x42a   : > { %v4304_v63 = vadd.f32 %v5443_v56, %v4272_v35  ;;  %v4305_v54 = vadd.f32 %v5444_v36, %v4273_v38  ;;  %v4235_v61 = vadd.f32 %v4173_v59, %v7601_v24  ;;  %v5451_v35 = vld [vmem:[#allocation2 + $0x228] sm:$0xff] }
 0x42b   : > { %v3952_v51 = vpop.f32.mrf.mxu0  ;;  %v4182_v12 = vpop.f32.mrf.mxu1 }
 0x42c   : > { %4336 = vst [vmem:[%s5766_s11 + $0xb0] sm:$0xff] %v4304_v63  ;;  %4337 = vst [vmem:[%s5766_s11 + $0xb8] sm:$0xff] %v4305_v54  ;;  %v4274_v55 = vadd.f32 %v7645_v15, %v4235_v61  ;;  %v4178_v50 = vadd.f32 %v5289_v42, %v3952_v51 }
 0x42d   : > { %v3954_v22 = vpop.f32.mrf.mxu0  ;;  %v5295_v28 = vpop.f32.mrf.mxu1 }
 0x42e   : > { %v4306_v1 = vadd.f32 %v5445_v37, %v4274_v55  ;;  %v4236_v14 = vadd.f32 %v4178_v50, %v7606_v39 }
 0x42f   : > { %v3957_v62 = vpop.f32.mrf.mxu0  ;;  %v4192_v46 = vpop.f32.mrf.mxu1 }
 0x430   : > { %4338 = vst [vmem:[%s5766_s11 + $0xc0] sm:$0xff] %v4306_v1  ;;  %v4275_v10 = vadd.f32 %v7645_v15, %v4236_v14  ;;  %v4183_v9 = vadd.f32 %v4182_v12, %v3957_v62 }
 0x431   : > { %v3959_v24 = vpop.f32.mrf.mxu0  ;;  %v5298_v5 = vpop.f32.mrf.mxu1 }
 0x432   : > { %v4307_v7 = vadd.f32 %v5446_v47, %v4275_v10  ;;  %v4237_v25 = vadd.f32 %v4183_v9, %v7611_v43 }
 0x433   : > { %v3962_v57 = vpop.f32.mrf.mxu0  ;;  %v4202_v11 = vpop.f32.mrf.mxu1 }
 0x434   : > { %4339 = vst [vmem:[%s5766_s11 + $0xc8] sm:$0xff] %v4307_v7  ;;  %v4276_v34 = vadd.f32 %v7645_v15, %v4237_v25  ;;  %v4188_v20 = vadd.f32 %v5292_v17, %v3962_v57 }
 0x435   : > { %v3964_v39 = vpop.f32.mrf.mxu0 }
 0x436   : > { %v4308_v29 = vadd.f32 %v5447_v23, %v4276_v34  ;;  %v4238_v19 = vadd.f32 %v4188_v20, %v7616_v52 }
 0x437   : > { %v3967_v45 = vpop.f32.mrf.mxu0 }
 0x438   : > { %4340 = vst [vmem:[%s5766_s11 + $0xd0] sm:$0xff] %v4308_v29  ;;  %v4277_v33 = vadd.f32 %v7645_v15, %v4238_v19  ;;  %v4193_v60 = vadd.f32 %v4192_v46, %v3967_v45 }
 0x439   : > { %v3969_v43 = vpop.f32.mrf.mxu0 }
 0x43a   : > { %v4309_v2 = vadd.f32 %v5448_v48, %v4277_v33  ;;  %v4239_v26 = vadd.f32 %v4193_v60, %v7621_v6 }
 0x43b   : > { %v3972_v4 = vpop.f32.mrf.mxu0 }
 0x43c   : > { %4341 = vst [vmem:[%s5766_s11 + $0xd8] sm:$0xff] %v4309_v2  ;;  %v4278_v30 = vadd.f32 %v7645_v15, %v4239_v26  ;;  %v4198_v8 = vadd.f32 %v5295_v28, %v3972_v4 }
 0x43d   : > { %v3974_v52 = vpop.f32.mrf.mxu0 }
 0x43e   : > { %v4310_v0 = vadd.f32 %v5449_v41, %v4278_v30  ;;  %v4240_v16 = vadd.f32 %v4198_v8, %v7627_v40 }
 0x43f   : > { %v3977_v31 = vpop.f32.mrf.mxu0 }
 0x440   : > { %4342 = vst [vmem:[%s5766_s11 + $0xe0] sm:$0xff] %v4310_v0  ;;  %v4279_v42 = vadd.f32 %v7645_v15, %v4240_v16  ;;  %v4203_v6 = vadd.f32 %v4202_v11, %v3977_v31 }
 0x441   : > { %v3979_v18 = vpop.f32.mrf.mxu0 }
 0x442   : > { %v4311_v49 = vadd.f32 %v5450_v44, %v4279_v42  ;;  %v4241_v27 = vadd.f32 %v4203_v6, %v7633_v21  ;;  %v5452_v21 = vld [vmem:[#allocation2 + $0x230] sm:$0xff] }
 0x443   : > { %v3982_v3 = vpop.f32.mrf.mxu0 }
 0x444   : > { %4343 = vst [vmem:[%s5766_s11 + $0xe8] sm:$0xff] %v4311_v49  ;;  %v4280_v32 = vadd.f32 %v7645_v15, %v4241_v27  ;;  %v4208_v40 = vadd.f32 %v5298_v5, %v3982_v3 }
 0x445   : > { %v3984_v13 = vpop.f32.mrf.mxu0 }
 0x446   : > { %v4312_v38 = vadd.f32 %v5451_v35, %v4280_v32  ;;  %v4242_v59 = vadd.f32 %v4208_v40, %v7639_v58 }
 0x448   : > { %4344 = vst [vmem:[%s5766_s11 + $0xf0] sm:$0xff] %v4312_v38  ;;  %v4281_v53 = vadd.f32 %v7645_v15, %v4242_v59 }
 0x44a   : > { %v4313_v56 = vadd.f32 %v5452_v21, %v4281_v53 }
 0x44c   : > { %4345 = vst [vmem:[%s5766_s11 + $0xf8] sm:$0xff] %v4313_v56 }
 0x44d   : > { %5540 = shalt.err (!%p5537_p11)
}
 0x44e   : > { %s5541_s9 = scalar_lea.hbm %s7769_s27, 4096  ;;  %s5545_s14 = scalar_lea.hbm %s7826_s5, 8192 }
 0x44f   : > { %p5542_p13 = scmp.ne.s32.totalorder %s7769_s27, %s5541_s9  ;;  %p5546_p7 = scmp.lt.s32.totalorder %s7769_s27, %s7826_s5 }
 0x450   : > { %p5547_p9 = scmp.lt.s32.totalorder %s5545_s14, %s5541_s9 }
 0x451   : > { %p5543_p0 = pnand %p5542_p13, %p7880_p2 }
 0x452   : > { %p5548_p12 = por %p5547_p9, %p5546_p7 }
 0x453   : > { %p5544_p6 = pneg %p5543_p0 }
 0x455   : > { %p5549_p1 = pnand %p5548_p12, %p5544_p6 }
 0x457   : > { %5552 = shalt.err (!%p5549_p1)
}
 0x458   : > { %s5622_s17 = smov 128   ;;  %s5623_s8 = smov 8  }
 0x459   : > { %5307 = dma.vmem_to_hbm [thread:$0]  (%p7880_p2), %s7771_s24, 4096, %s7769_s27, %s7776_s29, %s5622_s17, %s5622_s17, %s5623_s8  }
 0x45a PF: > { %p5324_p5 = scmp.ge.s32.totalorder %s5613_s23, 2  ;;  %s4378_s25 = sand.u32 1, %s5593_s18  }
 0x45b   : > { %p7881_p3 = scmp.ne.s32.totalorder %s7831_s30, 0  ;;  %s4379_s21 = scalar_lea.sflag [#allocation7], %s4378_s25 }
 0x45d   : > { %p5317_p4 = pnand %p5324_p5, %p7881_p3 }
 0x45f   : > { %p5318_p8 = pneg %p5317_p4 }
 0x461   : > { %5588 = dma.done.wait (%p5318_p8), %s4379_s21, 4096  }
 0x462   : > { %5590 = vsyncadd (%p5318_p8), %s4379_s21, 4294963200  ;;  %s20_s23 = sadd.s32 1, %s5613_s23   ;;  %s7882_s18 = smov %s5597_s19 }
 0x463   : > { %p17_p10 = scmp.ge.s32.totalorder %s20_s23, 4   ;;  %s7883_s19 = smov %s5601_s20 }
 0x464   : > { %s7884_s20 = smov %s5707_s6  ;;  %s7885_s21 = smov %s5609_s22 }
 0x465   : > { %s7886_s22 = smov %s7888_s26  ;;  %19 = sbr.rel (!%p17_p10) target bundleno = 6 (0x6), region = 111 }
 0x46a   :  { %4384 = vsyncpa [#allocation6], 1 }
 0x46b   :  { %4386 = vsyncpa [#allocation6 + $0x1], 1 }
 0x46c   :  { %4387 = vsyncpa [#allocation9], 1 }
 0x46d   :  { %4388 = vsyncpa [#allocation7], 1 }
 0x46e   :  { %4390 = vsyncpa [#allocation7 + $0x1], 1 }
 0x46f   :  { %4391 = vsyncmov [#allocation3] }
 0x472   :  { %s4392_s28 = vpop.sfrf %4391 }
 0x473   :  { %p4497_p2 = scmp.ne.s32.totalorder %s4392_s28, 0 }
 0x475   :  { %4396 = shalt.err (%p4497_p2)  }
 0x476   :  { %4398 = vsyncmov [#allocation3 + $0x1] }
 0x479   :  { %s4399_s30 = vpop.sfrf %4398 }
 0x47a   :  { %p4498_p11 = scmp.ne.s32.totalorder %s4399_s30, 0 }
 0x47c   :  { %4403 = shalt.err (%p4498_p11)  }

</bundles_post_ra>
